<compile_context>
chip_gen: v7x
topology: tpu7x:2x2x1
jax: 0.10.0
libtpu: 0.0.40
codegen_flags: <defaults>
</compile_context>

<pallas_src>
import functools
import math

import jax
import jax.numpy as jnp
from jax import lax
from jax.experimental import pallas as pl
from jax.experimental.pallas import tpu as pltpu


# ----------------------------------------------------------------------------- kernel
def _diff_layer_kernel(x_ref, w_all_ref, w_qkv_ref, vec_ref, out_ref, *, approx_gelu):
    f32, bf16 = jnp.float32, jnp.bfloat16
    TB, L, H3 = x_ref.shape
    H = H3 // 3
    R = w_qkv_ref.shape[1] // 3
    M = TB * L

    def gelu(t):
        if approx_gelu:
            # tanh-approximate GELU -> EUP slot (v5e relief); slight deviation
            # from torch's exact erf GELU.
            return jax.nn.gelu(t, approximate=True)
        return t * 0.5 * (1.0 + lax.erf(t * (1.0 / math.sqrt(2.0))))

    def mm(a_bf, w):
        # bf16 operands, f32 accumulation on the MXU.
        return jnp.dot(a_bf, w, preferred_element_type=f32)

    vec = vec_ref[...]
    bsi1, bsi2 = vec[0:1], vec[1:2]
    bng1, bng2 = vec[2:3], vec[3:4]
    ln_g, ln_b = vec[4:5], vec[5:6]
    bce1, bce2 = vec[6:7], vec[7:8]

    # Static slices of the two packed weight refs (row offsets are multiples of
    # 16 for H=32 / R=128, i.e. bf16 sublane-tile aligned).
    w_si1 = w_all_ref[0:3 * H, :]
    w_si2 = w_all_ref[3 * H:4 * H, :]
    w_ng1 = w_all_ref[4 * H:6 * H, :]
    w_ng2 = w_all_ref[6 * H:7 * H, :]
    w_o = w_all_ref[7 * H:7 * H + R, :]
    w_ce1 = w_all_ref[7 * H + R:9 * H + R, :]
    w_ce2 = w_all_ref[9 * H + R:10 * H + R, :]
    w_q = w_qkv_ref[:, 0:R]            # already carries the 1/sqrt(L) softmax scale
    w_kv = w_qkv_ref[:, R:]            # fused [K | V] projection

    # Packed activations: merge (TB, L) -> M rows (layout-preserving, L == 8).
    x = x_ref[...].reshape(M, H3)      # [seq | node | chem], f32
    x_bf = x.astype(bf16)
    seq, node, chem = x[:, 0:H], x[:, H:2 * H], x[:, 2 * H:]
    chem_bf = x_bf[:, 2 * H:]

    # ---- sequence += seq_integration([seq|node|chem]): single K=3H matmul ----
    h1 = mm(x_bf, w_si1) + bsi1
    seq = seq + mm(gelu(h1).astype(bf16), w_si2) + bsi2

    # ---- node += node_gen([seq_new|node]): single K=2H matmul ----
    sn_bf = jnp.concatenate([seq, node], axis=-1).astype(bf16)
    h2 = mm(sn_bf, w_ng1) + bng1
    node = node + mm(gelu(h2).astype(bf16), w_ng2) + bng2
    node_bf = node.astype(bf16)

    # ---- attention (flash path: SDPA over the R axis, head-dim L) ----
    q = mm(chem_bf, w_q)               # (M, R); scale pre-folded into w_q
    kv = mm(node_bf, w_kv)             # (M, 2R)
    qb = q.reshape(TB, L, R).astype(bf16)
    kb = kv[:, 0:R].reshape(TB, L, R).astype(bf16)
    vb = kv[:, R:].reshape(TB, L, R).astype(bf16)

    # q/k/v keep L on the sublane axis (the contraction dim of both einsums).
    # scores[b,i,j] = sum_l Q[b,l,i] * K[b,l,j]       (scale already in Q)
    scores = jnp.einsum("bli,blj->bij", qb, kb, preferred_element_type=f32)
    ex = jnp.exp(scores - jnp.max(scores, axis=-1, keepdims=True))      # (TB,R,R)
    denom = jnp.sum(ex, axis=-1)                                        # (TB,R) >= 1
    # context_unnorm[b,l,i] = sum_j V[b,l,j] * E[b,i,j]
    ctx = jnp.einsum("blj,bij->bli", vb, ex.astype(bf16),
                     preferred_element_type=f32)                        # (TB,L,R)
    # Deferred softmax normalization: L*R multiplies instead of R*R divides,
    # reciprocal on the EUP slot.
    ctx = ctx * pl.reciprocal(denom, approx=True)[:, None, :]

    # ---- extracted_information = LayerNorm(node + proj_out(context)) ----
    y = node + mm(ctx.reshape(M, R).astype(bf16), w_o)
    mu = jnp.mean(y, axis=-1, keepdims=True)
    yc = y - mu
    var = jnp.mean(yc * yc, axis=-1, keepdims=True)
    ext = yc * lax.rsqrt(var + 1e-5) * ln_g + ln_b

    # ---- chem += chem_env([ext|chem]): single K=2H matmul ----
    ec_bf = jnp.concatenate([ext, chem], axis=-1).astype(bf16)
    h3 = mm(ec_bf, w_ce1) + bce1
    chem = chem + mm(gelu(h3).astype(bf16), w_ce2) + bce2

    # Lane-dense packed store: one (TB, L, 3H) write instead of three masked ones.
    out = jnp.concatenate([seq, node, chem], axis=-1)
    out_ref[...] = out.reshape(TB, L, H3).astype(out_ref.dtype)


# ----------------------------------------------------------------------------- sizing
def _lane_pad(n):
    return -(-n // 128) * 128


def _num_tensorcores():
    """TensorCores sharing one JAX device (megacore parts): v4 / v5p / v7x -> 2."""
    try:
        kind = jax.devices()[0].device_kind.lower()
    except Exception:
        return 1
    if any(tag in kind for tag in ("v4", "v5p", "v7", "7x")):
        return 2
    return 1


def _per_step_temp_bytes(tb, L, H, R):
    """Rough lane-padded VMEM footprint of in-kernel temporaries for one grid step."""
    M = tb * L
    act = 10 * M * _lane_pad(3 * H) * 4              # packed x, stream temps, h1..h3, out
    qkv = 3 * M * _lane_pad(R) * (4 + 2)             # q/k/v f32 + bf16 copies
    attn = tb * R * _lane_pad(R) * (4 + 2)           # scores f32 + exp bf16
    ctx = M * _lane_pad(R) * 4
    return act + qkv + attn + ctx


def _choose_block_batch(B, L, H, R, num_tc, budget_bytes=20 << 20):
    """One grid step per TensorCore; shrink TB only if VMEM would overflow."""
    tb = max(1, -(-B // num_tc))
    while tb > 1 and _per_step_temp_bytes(tb, L, H, R) > budget_bytes:
        tb = -(-tb // 2)
    return tb


def _padded_bytes(arr):
    lead = 1
    for d in arr.shape[:-1]:
        lead *= d
    return lead * _lane_pad(arr.shape[-1]) * arr.dtype.itemsize


def _vmem_limit_bytes(tb, L, H, R, weight_arrays):
    io_tile = tb * L * _lane_pad(3 * H) * 4
    io = 2 * 2 * io_tile                              # in + out, double buffered
    wts = 2 * sum(_padded_bytes(w) for w in weight_arrays)   # worst case (fallback path)
    est = io + wts + _per_step_temp_bytes(tb, L, H, R)
    est = int(est * 1.25) + (2 << 20)                 # ~25% headroom
    try:
        cap = int(pltpu.get_tpu_info().vmem_capacity_bytes) * 3 // 4
    except Exception:
        cap = 40 << 20
    cap = max(cap, 16 << 20)
    return int(min(max(est, 16 << 20), cap))


# Errors a pl.Buffered(1)/pipeline_mode rejection can plausibly raise.  Any
# genuine (non-Buffered) error re-surfaces from the fallback path, since the
# two paths are otherwise identical.
_BUFFERED_FALLBACK_ERRORS = (
    AttributeError, TypeError, ValueError, NotImplementedError, RuntimeError,
    getattr(pltpu, "LoweringException", NotImplementedError),
)


# ----------------------------------------------------------------------------- wrapper
def diff_layer_pallas(seq, node, chem, p, *, block_batch=None, approx_gelu=False):
    B, L, H = seq.shape
    R = p["wq"].shape[1]
    num_tc = _num_tensorcores()
    tb = block_batch if block_batch is not None else _choose_block_batch(B, L, H, R, num_tc)

    bf16 = jnp.bfloat16
    # --- host-side weight prep: 2 packed bf16 weight arrays + 1 packed f32 vector ---
    w_all = jnp.concatenate(
        [p["w_si1"], p["w_si2"], p["w_ng1"], p["w_ng2"],
         p["wo"], p["w_ce1"], p["w_ce2"]], axis=0).astype(bf16)          # (10H+R, H)
    w_qkv = jnp.concatenate(
        [p["wq"] * (1.0 / math.sqrt(float(L))),                          # scale folded in
         p["wk"], p["wv"]], axis=1).astype(bf16)                         # (H, 3R)
    vec = jnp.concatenate(
        [p["b_si1"], p["b_si2"], p["b_ng1"], p["b_ng2"],
         p["ln_g"], p["ln_b"], p["b_ce1"], p["b_ce2"]], axis=0).astype(jnp.float32)

    # --- lane-pack the three streams; pad batch to a multiple of tb ---
    x = jnp.concatenate([seq, node, chem], axis=-1)                      # (B, L, 3H)
    Bp = -(-B // tb) * tb
    if Bp != B:
        x = jnp.pad(x, ((0, Bp - B), (0, 0), (0, 0)))

    out_sds = jax.ShapeDtypeStruct((Bp, L, 3 * H), jnp.float32)
    cparams = pltpu.CompilerParams(
        dimension_semantics=("parallel",),
        vmem_limit_bytes=_vmem_limit_bytes(tb, L, H, R, [w_all, w_qkv, vec]))

    io_spec = pl.BlockSpec((tb, L, 3 * H), lambda b: (b, 0, 0))

    def wspec(arr, single_buffer):
        idx = lambda b, nd=arr.ndim: (0,) * nd
        if single_buffer:
            # Weight block index never changes -> double buffering is pure VMEM waste.
            return pl.BlockSpec(arr.shape, idx, pipeline_mode=pl.Buffered(1))
        return pl.BlockSpec(arr.shape, idx)

    def run(single_buffer_weights):
        return pl.pallas_call(
            functools.partial(_diff_layer_kernel, approx_gelu=approx_gelu),
            grid=(Bp // tb,),
            in_specs=[io_spec,
                      wspec(w_all, single_buffer_weights),
                      wspec(w_qkv, single_buffer_weights),
                      wspec(vec, single_buffer_weights)],
            out_specs=io_spec,
            out_shape=out_sds,
            compiler_params=cparams,
        )(x, w_all, w_qkv, vec)

    try:
        out = run(True)
    except _BUFFERED_FALLBACK_ERRORS:
        out = run(False)

    out = out[:B]
    return out[..., :H], out[..., H:2 * H], out[..., 2 * H:]


# ----------------------------------------------------------------------------- params / reference
def init_params(key, H, R):
    """Deterministic init mimicking torch.nn.Linear defaults (U(+-1/sqrt(fan_in)))."""
    ks = jax.random.split(key, 16)

    def lin_w(k, fi, fo):
        b = 1.0 / math.sqrt(fi)
        return jax.random.uniform(k, (fi, fo), jnp.float32, -b, b)

    def lin_b(k, fi, fo):
        b = 1.0 / math.sqrt(fi)
        return jax.random.uniform(k, (1, fo), jnp.float32, -b, b)

    p = {}
    p["w_si1"], p["b_si1"] = lin_w(ks[0], 3 * H, H), lin_b(ks[1], 3 * H, H)
    p["w_si2"], p["b_si2"] = lin_w(ks[2], H, H), lin_b(ks[3], H, H)
    p["w_ng1"], p["b_ng1"] = lin_w(ks[4], 2 * H, H), lin_b(ks[5], 2 * H, H)
    p["w_ng2"], p["b_ng2"] = lin_w(ks[6], H, H), lin_b(ks[7], H, H)
    p["wq"], p["wk"] = lin_w(ks[8], H, R), lin_w(ks[9], H, R)
    p["wv"], p["wo"] = lin_w(ks[10], H, R), lin_w(ks[11], R, H)
    p["ln_g"] = jnp.ones((1, H), jnp.float32)
    p["ln_b"] = jnp.zeros((1, H), jnp.float32)
    p["w_ce1"], p["b_ce1"] = lin_w(ks[12], 2 * H, H), lin_b(ks[13], 2 * H, H)
    p["w_ce2"], p["b_ce2"] = lin_w(ks[14], H, H), lin_b(ks[15], H, H)
    return p


def reference_forward(seq, node, chem, p, L):
    """Pure-JAX f32 reference matching the PyTorch forward (flash attn path)."""
    gelu = lambda x: jax.nn.gelu(x, approximate=False)

    cs = jnp.concatenate([seq, node, chem], axis=-1)
    seq = seq + (gelu(cs @ p["w_si1"] + p["b_si1"]) @ p["w_si2"] + p["b_si2"])

    cs = jnp.concatenate([seq, node], axis=-1)
    node = node + (gelu(cs @ p["w_ng1"] + p["b_ng1"]) @ p["w_ng2"] + p["b_ng2"])

    q, k, v = chem @ p["wq"], node @ p["wk"], node @ p["wv"]             # (B, L, R)
    qh, kh, vh = (jnp.swapaxes(t, 1, 2) for t in (q, k, v))              # (B, R, L)
    scores = jnp.einsum("bri,bsi->brs", qh, kh) / math.sqrt(L)
    attn = jax.nn.softmax(scores, axis=-1)
    ctx = jnp.swapaxes(jnp.einsum("brs,bsl->brl", attn, vh), 1, 2)       # (B, L, R)

    y = node + ctx @ p["wo"]
    mu = y.mean(-1, keepdims=True)
    var = ((y - mu) ** 2).mean(-1, keepdims=True)
    ext = (y - mu) / jnp.sqrt(var + 1e-5) * p["ln_g"] + p["ln_b"]

    cs = jnp.concatenate([ext, chem], axis=-1)
    chem = chem + (gelu(cs @ p["w_ce1"] + p["b_ce1"]) @ p["w_ce2"] + p["b_ce2"])
    return seq, node, chem


# ----------------------------------------------------------------------------- demo
if __name__ == "__main__":
    B, L, H, rank = 8, 8, 32, 4
    R = rank * H  # qkv_dim = 128

    key = jax.random.PRNGKey(0)
    k1, k2, k3, kp = jax.random.split(key, 4)
    sequence = jax.random.normal(k1, (B, L, H), jnp.float32)
    node = jax.random.normal(k2, (B, L, H), jnp.float32)
    chem_env = jax.random.normal(k3, (B, L, H), jnp.float32)
    params = init_params(kp, H, R)

    outs = diff_layer_pallas(sequence, node, chem_env, params)
    outs = jax.block_until_ready(outs)

    # True-f32 reference (highest matmul precision); kernel uses bf16 operands,
    # f32 accumulation and an approx softmax reciprocal, so tolerances are sized
    # for bf16 operand rounding (+ ~1e-3 from the approx reciprocal).
    with jax.default_matmul_precision("highest"):
        refs = reference_forward(sequence, node, chem_env, params, L)

    for o, r in zip(outs, refs):
        assert bool(jnp.all(jnp.isfinite(o)))
        max_err = float(jnp.max(jnp.abs(o - r)))
        rel_err = float(jnp.linalg.norm(o - r) / (jnp.linalg.norm(r) + 1e-12))
        assert max_err < 5e-2, f"max abs err {max_err}"
        assert rel_err < 2e-2, f"rel l2 err {rel_err}"

    print("KERNEL_OK")
</pallas_src>

<mosaic_0001>
module attributes {stable_mosaic.version = 11 : i64} {
  func.func @_diff_layer_kernel(%arg0: i32, %arg1: memref<8x8x96xf32, #tpu.memory_space<vmem>>, %arg2: memref<448x32xbf16, #tpu.memory_space<vmem>>, %arg3: memref<32x384xbf16, #tpu.memory_space<vmem>>, %arg4: memref<8x32xf32, #tpu.memory_space<vmem>>, %arg5: memref<8x8x96xf32, #tpu.memory_space<vmem>>) attributes {dimension_semantics = [#tpu.dimension_semantics<parallel>], iteration_bounds = array<i64: 1>, scalar_prefetch = 0 : i64, scratch_operands = 0 : i64, tpu.core_type = #tpu.core_type<tc>, window_params = [{transform_indices = @transform_0, window_bounds = array<i64: 8, 8, 96>}, {pipeline_mode = #tpu.pipeline_mode<synchronous>, transform_indices = @transform_1, window_bounds = array<i64: 448, 32>}, {pipeline_mode = #tpu.pipeline_mode<synchronous>, transform_indices = @transform_2, window_bounds = array<i64: 32, 384>}, {pipeline_mode = #tpu.pipeline_mode<synchronous>, transform_indices = @transform_3, window_bounds = array<i64: 8, 32>}, {transform_indices = @transform_4, window_bounds = array<i64: 8, 8, 96>}]} {
    %c0 = arith.constant 0 : index
    %c0_0 = arith.constant 0 : index
    %0 = vector.load %arg4[%c0, %c0_0] : memref<8x32xf32, #tpu.memory_space<vmem>>, vector<8x32xf32>
    %1 = vector.extract_strided_slice %0 {offsets = [0, 0], sizes = [1, 32], strides = [1, 1]} : vector<8x32xf32> to vector<1x32xf32>
    %2 = vector.extract_strided_slice %0 {offsets = [1, 0], sizes = [1, 32], strides = [1, 1]} : vector<8x32xf32> to vector<1x32xf32>
    %3 = vector.extract_strided_slice %0 {offsets = [2, 0], sizes = [1, 32], strides = [1, 1]} : vector<8x32xf32> to vector<1x32xf32>
    %4 = vector.extract_strided_slice %0 {offsets = [3, 0], sizes = [1, 32], strides = [1, 1]} : vector<8x32xf32> to vector<1x32xf32>
    %5 = vector.extract_strided_slice %0 {offsets = [4, 0], sizes = [1, 32], strides = [1, 1]} : vector<8x32xf32> to vector<1x32xf32>
    %6 = vector.extract_strided_slice %0 {offsets = [5, 0], sizes = [1, 32], strides = [1, 1]} : vector<8x32xf32> to vector<1x32xf32>
    %7 = vector.extract_strided_slice %0 {offsets = [6, 0], sizes = [1, 32], strides = [1, 1]} : vector<8x32xf32> to vector<1x32xf32>
    %8 = vector.extract_strided_slice %0 {offsets = [7, 0], sizes = [1, 32], strides = [1, 1]} : vector<8x32xf32> to vector<1x32xf32>
    %c0_1 = arith.constant 0 : index
    %c0_2 = arith.constant 0 : index
    %9 = vector.load %arg2[%c0_1, %c0_2] : memref<448x32xbf16, #tpu.memory_space<vmem>>, vector<96x32xbf16>
    %c96 = arith.constant 96 : index
    %c0_3 = arith.constant 0 : index
    %10 = vector.load %arg2[%c96, %c0_3] : memref<448x32xbf16, #tpu.memory_space<vmem>>, vector<32x32xbf16>
    %c128 = arith.constant 128 : index
    %c0_4 = arith.constant 0 : index
    %11 = vector.load %arg2[%c128, %c0_4] : memref<448x32xbf16, #tpu.memory_space<vmem>>, vector<64x32xbf16>
    %c192 = arith.constant 192 : index
    %c0_5 = arith.constant 0 : index
    %12 = vector.load %arg2[%c192, %c0_5] : memref<448x32xbf16, #tpu.memory_space<vmem>>, vector<32x32xbf16>
    %c224 = arith.constant 224 : index
    %c0_6 = arith.constant 0 : index
    %13 = vector.load %arg2[%c224, %c0_6] : memref<448x32xbf16, #tpu.memory_space<vmem>>, vector<128x32xbf16>
    %c352 = arith.constant 352 : index
    %c0_7 = arith.constant 0 : index
    %14 = vector.load %arg2[%c352, %c0_7] : memref<448x32xbf16, #tpu.memory_space<vmem>>, vector<64x32xbf16>
    %c416 = arith.constant 416 : index
    %c0_8 = arith.constant 0 : index
    %15 = vector.load %arg2[%c416, %c0_8] : memref<448x32xbf16, #tpu.memory_space<vmem>>, vector<32x32xbf16>
    %c0_9 = arith.constant 0 : index
    %c0_10 = arith.constant 0 : index
    %16 = vector.load %arg3[%c0_9, %c0_10] : memref<32x384xbf16, #tpu.memory_space<vmem>>, vector<32x128xbf16>
    %c0_11 = arith.constant 0 : index
    %c128_12 = arith.constant 128 : index
    %17 = vector.load %arg3[%c0_11, %c128_12] : memref<32x384xbf16, #tpu.memory_space<vmem>>, vector<32x256xbf16>
    %c0_13 = arith.constant 0 : index
    %c0_14 = arith.constant 0 : index
    %c0_15 = arith.constant 0 : index
    %18 = vector.load %arg1[%c0_13, %c0_14, %c0_15] : memref<8x8x96xf32, #tpu.memory_space<vmem>>, vector<8x8x96xf32>
    %19 = vector.shape_cast %18 : vector<8x8x96xf32> to vector<64x96xf32>
    %20 = arith.truncf %19 : vector<64x96xf32> to vector<64x96xbf16>
    %21 = vector.extract_strided_slice %19 {offsets = [0, 0], sizes = [64, 32], strides = [1, 1]} : vector<64x96xf32> to vector<64x32xf32>
    %22 = vector.extract_strided_slice %19 {offsets = [0, 32], sizes = [64, 32], strides = [1, 1]} : vector<64x96xf32> to vector<64x32xf32>
    %23 = vector.extract_strided_slice %19 {offsets = [0, 64], sizes = [64, 32], strides = [1, 1]} : vector<64x96xf32> to vector<64x32xf32>
    %24 = vector.extract_strided_slice %20 {offsets = [0, 64], sizes = [64, 32], strides = [1, 1]} : vector<64x96xbf16> to vector<64x32xbf16>
    %cst = arith.constant dense<0.000000e+00> : vector<64x32xf32>
    %25 = tpu.matmul %20, %9, %cst {dimension_numbers = #tpu.dot_dimension_numbers<[1], [0], [0], [1], [0, 0, 1, 1], [], []>} : vector<64x96xbf16>, vector<96x32xbf16>, vector<64x32xf32> -> vector<64x32xf32>
    %26 = vector.broadcast %1 : vector<1x32xf32> to vector<64x32xf32>
    %27 = arith.addf %25, %26 : vector<64x32xf32>
    %cst_16 = arith.constant 5.000000e-01 : f32
    %28 = vector.broadcast %cst_16 : f32 to vector<64x32xf32>
    %29 = arith.mulf %27, %28 : vector<64x32xf32>
    %cst_17 = arith.constant 0.707106769 : f32
    %30 = vector.broadcast %cst_17 : f32 to vector<64x32xf32>
    %31 = arith.mulf %27, %30 : vector<64x32xf32>
    %32 = math.erf %31 : vector<64x32xf32>
    %cst_18 = arith.constant 1.000000e+00 : f32
    %33 = vector.broadcast %cst_18 : f32 to vector<64x32xf32>
    %34 = arith.addf %33, %32 : vector<64x32xf32>
    %35 = arith.mulf %29, %34 : vector<64x32xf32>
    %36 = arith.truncf %35 : vector<64x32xf32> to vector<64x32xbf16>
    %cst_19 = arith.constant dense<0.000000e+00> : vector<64x32xf32>
    %37 = tpu.matmul %36, %10, %cst_19 {dimension_numbers = #tpu.dot_dimension_numbers<[1], [0], [0], [1], [0, 0, 1, 1], [], []>} : vector<64x32xbf16>, vector<32x32xbf16>, vector<64x32xf32> -> vector<64x32xf32>
    %38 = arith.addf %21, %37 : vector<64x32xf32>
    %39 = vector.broadcast %2 : vector<1x32xf32> to vector<64x32xf32>
    %40 = arith.addf %38, %39 : vector<64x32xf32>
    %41 = tpu.concatenate %40, %22 in 1 : vector<64x32xf32>, vector<64x32xf32> -> vector<64x64xf32>
    %42 = arith.truncf %41 : vector<64x64xf32> to vector<64x64xbf16>
    %cst_20 = arith.constant dense<0.000000e+00> : vector<64x32xf32>
    %43 = tpu.matmul %42, %11, %cst_20 {dimension_numbers = #tpu.dot_dimension_numbers<[1], [0], [0], [1], [0, 0, 1, 1], [], []>} : vector<64x64xbf16>, vector<64x32xbf16>, vector<64x32xf32> -> vector<64x32xf32>
    %44 = vector.broadcast %3 : vector<1x32xf32> to vector<64x32xf32>
    %45 = arith.addf %43, %44 : vector<64x32xf32>
    %cst_21 = arith.constant 5.000000e-01 : f32
    %46 = vector.broadcast %cst_21 : f32 to vector<64x32xf32>
    %47 = arith.mulf %45, %46 : vector<64x32xf32>
    %cst_22 = arith.constant 0.707106769 : f32
    %48 = vector.broadcast %cst_22 : f32 to vector<64x32xf32>
    %49 = arith.mulf %45, %48 : vector<64x32xf32>
    %50 = math.erf %49 : vector<64x32xf32>
    %cst_23 = arith.constant 1.000000e+00 : f32
    %51 = vector.broadcast %cst_23 : f32 to vector<64x32xf32>
    %52 = arith.addf %51, %50 : vector<64x32xf32>
    %53 = arith.mulf %47, %52 : vector<64x32xf32>
    %54 = arith.truncf %53 : vector<64x32xf32> to vector<64x32xbf16>
    %cst_24 = arith.constant dense<0.000000e+00> : vector<64x32xf32>
    %55 = tpu.matmul %54, %12, %cst_24 {dimension_numbers = #tpu.dot_dimension_numbers<[1], [0], [0], [1], [0, 0, 1, 1], [], []>} : vector<64x32xbf16>, vector<32x32xbf16>, vector<64x32xf32> -> vector<64x32xf32>
    %56 = arith.addf %22, %55 : vector<64x32xf32>
    %57 = vector.broadcast %4 : vector<1x32xf32> to vector<64x32xf32>
    %58 = arith.addf %56, %57 : vector<64x32xf32>
    %59 = arith.truncf %58 : vector<64x32xf32> to vector<64x32xbf16>
    %cst_25 = arith.constant dense<0.000000e+00> : vector<64x128xf32>
    %60 = tpu.matmul %24, %16, %cst_25 {dimension_numbers = #tpu.dot_dimension_numbers<[1], [0], [0], [1], [0, 0, 1, 1], [], []>} : vector<64x32xbf16>, vector<32x128xbf16>, vector<64x128xf32> -> vector<64x128xf32>
    %cst_26 = arith.constant dense<0.000000e+00> : vector<64x256xf32>
    %61 = tpu.matmul %59, %17, %cst_26 {dimension_numbers = #tpu.dot_dimension_numbers<[1], [0], [0], [1], [0, 0, 1, 1], [], []>} : vector<64x32xbf16>, vector<32x256xbf16>, vector<64x256xf32> -> vector<64x256xf32>
    %62 = vector.shape_cast %60 : vector<64x128xf32> to vector<8x8x128xf32>
    %63 = arith.truncf %62 : vector<8x8x128xf32> to vector<8x8x128xbf16>
    %64 = vector.extract_strided_slice %61 {offsets = [0, 0], sizes = [64, 128], strides = [1, 1]} : vector<64x256xf32> to vector<64x128xf32>
    %65 = vector.shape_cast %64 : vector<64x128xf32> to vector<8x8x128xf32>
    %66 = arith.truncf %65 : vector<8x8x128xf32> to vector<8x8x128xbf16>
    %67 = vector.extract_strided_slice %61 {offsets = [0, 128], sizes = [64, 128], strides = [1, 1]} : vector<64x256xf32> to vector<64x128xf32>
    %68 = vector.shape_cast %67 : vector<64x128xf32> to vector<8x8x128xf32>
    %69 = arith.truncf %68 : vector<8x8x128xf32> to vector<8x8x128xbf16>
    "tpu.trace_start"() <{level = 10 : i32, message = "bli,blj->bij"}> : () -> ()
    %cst_27 = arith.constant dense<0.000000e+00> : vector<8x128x128xf32>
    %70 = tpu.matmul %63, %66, %cst_27 {dimension_numbers = #tpu.dot_dimension_numbers<[1], [1], [2], [2], [0, 0, 0, 2, 1, 2], [0], [0]>} : vector<8x8x128xbf16>, vector<8x8x128xbf16>, vector<8x128x128xf32> -> vector<8x128x128xf32>
    "tpu.trace_stop"() : () -> ()
    %cst_28 = arith.constant dense<0xFF800000> : vector<8x128xf32>
    %71 = vector.multi_reduction <maximumf>, %70, %cst_28 [2] : vector<8x128x128xf32> to vector<8x128xf32>
    %72 = vector.shape_cast %71 : vector<8x128xf32> to vector<8x128x1xf32>
    %73 = vector.broadcast %72 : vector<8x128x1xf32> to vector<8x128x128xf32>
    %74 = arith.subf %70, %73 : vector<8x128x128xf32>
    %75 = math.exp %74 : vector<8x128x128xf32>
    %cst_29 = arith.constant dense<0.000000e+00> : vector<8x128xf32>
    %76 = vector.multi_reduction <add>, %75, %cst_29 [2] : vector<8x128x128xf32> to vector<8x128xf32>
    %77 = arith.truncf %75 : vector<8x128x128xf32> to vector<8x128x128xbf16>
    "tpu.trace_start"() <{level = 10 : i32, message = "blj,bij->bli"}> : () -> ()
    %cst_30 = arith.constant dense<0.000000e+00> : vector<8x8x128xf32>
    %78 = tpu.matmul %69, %77, %cst_30 {dimension_numbers = #tpu.dot_dimension_numbers<[2], [2], [1], [1], [0, 0, 0, 1, 1, 1], [0], [0]>} : vector<8x8x128xbf16>, vector<8x128x128xbf16>, vector<8x8x128xf32> -> vector<8x8x128xf32>
    "tpu.trace_stop"() : () -> ()
    %79 = tpu.reciprocal %76 {approx = true} : vector<8x128xf32> -> vector<8x128xf32>
    %80 = vector.shape_cast %79 : vector<8x128xf32> to vector<8x1x128xf32>
    %81 = vector.broadcast %80 : vector<8x1x128xf32> to vector<8x8x128xf32>
    %82 = arith.mulf %78, %81 : vector<8x8x128xf32>
    %83 = vector.shape_cast %82 : vector<8x8x128xf32> to vector<64x128xf32>
    %84 = arith.truncf %83 : vector<64x128xf32> to vector<64x128xbf16>
    %cst_31 = arith.constant dense<0.000000e+00> : vector<64x32xf32>
    %85 = tpu.matmul %84, %13, %cst_31 {dimension_numbers = #tpu.dot_dimension_numbers<[1], [0], [0], [1], [0, 0, 1, 1], [], []>} : vector<64x128xbf16>, vector<128x32xbf16>, vector<64x32xf32> -> vector<64x32xf32>
    %86 = arith.addf %58, %85 : vector<64x32xf32>
    %cst_32 = arith.constant dense<0.000000e+00> : vector<64xf32>
    %87 = vector.multi_reduction <add>, %86, %cst_32 [1] : vector<64x32xf32> to vector<64xf32>
    %88 = vector.shape_cast %87 : vector<64xf32> to vector<64x1xf32>
    %cst_33 = arith.constant 3.200000e+01 : f32
    %89 = vector.broadcast %cst_33 : f32 to vector<64x1xf32>
    %90 = arith.divf %88, %89 : vector<64x1xf32>
    %91 = vector.broadcast %90 : vector<64x1xf32> to vector<64x32xf32>
    %92 = arith.subf %86, %91 : vector<64x32xf32>
    %93 = arith.mulf %92, %92 : vector<64x32xf32>
    %cst_34 = arith.constant dense<0.000000e+00> : vector<64xf32>
    %94 = vector.multi_reduction <add>, %93, %cst_34 [1] : vector<64x32xf32> to vector<64xf32>
    %95 = vector.shape_cast %94 : vector<64xf32> to vector<64x1xf32>
    %cst_35 = arith.constant 3.200000e+01 : f32
    %96 = vector.broadcast %cst_35 : f32 to vector<64x1xf32>
    %97 = arith.divf %95, %96 : vector<64x1xf32>
    %cst_36 = arith.constant 9.99999974E-6 : f32
    %98 = vector.broadcast %cst_36 : f32 to vector<64x1xf32>
    %99 = arith.addf %97, %98 : vector<64x1xf32>
    %100 = math.rsqrt %99 : vector<64x1xf32>
    %101 = vector.broadcast %100 : vector<64x1xf32> to vector<64x32xf32>
    %102 = arith.mulf %92, %101 : vector<64x32xf32>
    %103 = vector.broadcast %5 : vector<1x32xf32> to vector<64x32xf32>
    %104 = arith.mulf %102, %103 : vector<64x32xf32>
    %105 = vector.broadcast %6 : vector<1x32xf32> to vector<64x32xf32>
    %106 = arith.addf %104, %105 : vector<64x32xf32>
    %107 = tpu.concatenate %106, %23 in 1 : vector<64x32xf32>, vector<64x32xf32> -> vector<64x64xf32>
    %108 = arith.truncf %107 : vector<64x64xf32> to vector<64x64xbf16>
    %cst_37 = arith.constant dense<0.000000e+00> : vector<64x32xf32>
    %109 = tpu.matmul %108, %14, %cst_37 {dimension_numbers = #tpu.dot_dimension_numbers<[1], [0], [0], [1], [0, 0, 1, 1], [], []>} : vector<64x64xbf16>, vector<64x32xbf16>, vector<64x32xf32> -> vector<64x32xf32>
    %110 = vector.broadcast %7 : vector<1x32xf32> to vector<64x32xf32>
    %111 = arith.addf %109, %110 : vector<64x32xf32>
    %cst_38 = arith.constant 5.000000e-01 : f32
    %112 = vector.broadcast %cst_38 : f32 to vector<64x32xf32>
    %113 = arith.mulf %111, %112 : vector<64x32xf32>
    %cst_39 = arith.constant 0.707106769 : f32
    %114 = vector.broadcast %cst_39 : f32 to vector<64x32xf32>
    %115 = arith.mulf %111, %114 : vector<64x32xf32>
    %116 = math.erf %115 : vector<64x32xf32>
    %cst_40 = arith.constant 1.000000e+00 : f32
    %117 = vector.broadcast %cst_40 : f32 to vector<64x32xf32>
    %118 = arith.addf %117, %116 : vector<64x32xf32>
    %119 = arith.mulf %113, %118 : vector<64x32xf32>
    %120 = arith.truncf %119 : vector<64x32xf32> to vector<64x32xbf16>
    %cst_41 = arith.constant dense<0.000000e+00> : vector<64x32xf32>
    %121 = tpu.matmul %120, %15, %cst_41 {dimension_numbers = #tpu.dot_dimension_numbers<[1], [0], [0], [1], [0, 0, 1, 1], [], []>} : vector<64x32xbf16>, vector<32x32xbf16>, vector<64x32xf32> -> vector<64x32xf32>
    %122 = arith.addf %23, %121 : vector<64x32xf32>
    %123 = vector.broadcast %8 : vector<1x32xf32> to vector<64x32xf32>
    %124 = arith.addf %122, %123 : vector<64x32xf32>
    %125 = tpu.concatenate %40, %58, %124 in 1 : vector<64x32xf32>, vector<64x32xf32>, vector<64x32xf32> -> vector<64x96xf32>
    %126 = vector.shape_cast %125 : vector<64x96xf32> to vector<8x8x96xf32>
    %c0_42 = arith.constant 0 : index
    %c0_43 = arith.constant 0 : index
    %c0_44 = arith.constant 0 : index
    %127 = vector.load %arg5[%c0_42, %c0_43, %c0_44] : memref<8x8x96xf32, #tpu.memory_space<vmem>>, vector<8x8x96xf32>
    tpu.vector_store %arg5[%c0_42, %c0_43, %c0_44], %126 {strides = array<i32>} : memref<8x8x96xf32, #tpu.memory_space<vmem>>, vector<8x8x96xf32>,
    return
  }
  func.func @transform_0(%arg0: i32) -> (i32, i32, i32) {
    %c0_i32 = arith.constant 0 : i32
    %c0_i32_0 = arith.constant 0 : i32
    %c0_i32_1 = arith.constant 0 : i32
    return %arg0, %c0_i32, %c0_i32_0 : i32, i32, i32
  }
  func.func @transform_1(%arg0: i32) -> (i32, i32) {
    %c0_i32 = arith.constant 0 : i32
    %c0_i32_0 = arith.constant 0 : i32
    %c0_i32_1 = arith.constant 0 : i32
    return %c0_i32, %c0_i32_0 : i32, i32
  }
  func.func @transform_2(%arg0: i32) -> (i32, i32) {
    %c0_i32 = arith.constant 0 : i32
    %c0_i32_0 = arith.constant 0 : i32
    %c0_i32_1 = arith.constant 0 : i32
    return %c0_i32, %c0_i32_0 : i32, i32
  }
  func.func @transform_3(%arg0: i32) -> (i32, i32) {
    %c0_i32 = arith.constant 0 : i32
    %c0_i32_0 = arith.constant 0 : i32
    %c0_i32_1 = arith.constant 0 : i32
    return %c0_i32, %c0_i32_0 : i32, i32
  }
  func.func @transform_4(%arg0: i32) -> (i32, i32, i32) {
    %c0_i32 = arith.constant 0 : i32
    %c0_i32_0 = arith.constant 0 : i32
    %c0_i32_1 = arith.constant 0 : i32
    return %arg0, %c0_i32, %c0_i32_0 : i32, i32, i32
  }
}

</mosaic_0001>

<bundles_post_ra>
// kernel: tpu_custom_call.1
= control target key start
LH: loop header
LB: loop body
LE: loop exit
PB: predicated region body
PF: predicated region fallthrough
CT: control target
= control target key end

     0   :  { %vm8928_vm0 = vcmask 785408   ;;  %s8777_s0 = inlined_call_operand.vmem [shape: f32[8,8,96], index: 0, kind: input, shape index: {}]   ;;  %s8778_s1 = inlined_call_operand.vmem [shape: bf16[448,32], index: 1, kind: input, shape index: {}]   ;;  %s8779_s2 = inlined_call_operand.vmem [shape: bf16[32,384], index: 2, kind: input, shape index: {}]   ;;  %s8780_s3 = inlined_call_operand.vmem [shape: f32[8,32], index: 3, kind: input, shape index: {}]   ;;  %s8781_s4 = inlined_call_operand.hbm [shape: f32[8,8,96], index: 4, kind: output, shape index: {}]  }
   0x1   :  { %v5902_v0 = vld [vmem:[%s8778_s1] sm:$0xff]   ;;  %v5903_v1 = vld [vmem:[%s8778_s1 + $0x8] sm:$0xff]   ;;  %v5904_v2 = vld [vmem:[%s8778_s1 + $0x10] sm:$0xff]  }
   0x2   :  { %5417 = vmatprep.subr.bf16.mxu0 %v5902_v0  ;;  %v6593_v3 = vld [vmem:[%s8777_s0] sm:$0xff]  ;;  %v6598_v4 = vld [vmem:[%s8777_s0 + $0x8] sm:$0xff]  ;;  %v5905_v6 = vld [vmem:[%s8778_s1 + $0x18] sm:$0xff]  }
   0x3   :  { %5418 = vmatpush3.bf16.msra.mxu0 %v5902_v0  ;;  %v6602_v5 = vpack.c.bf16 %v6598_v4, %v6593_v3  ;;  %v5906_v7 = vld [vmem:[%s8778_s1 + $0x20] sm:$0xff]   ;;  %v5907_v8 = vld [vmem:[%s8778_s1 + $0x28] sm:$0xff]   ;;  %v6618_v9 = vld [vmem:[%s8777_s0 + $0x10] sm:$0xff] }
   0x4   :  { %5419 = vmatprep.subr.bf16.mxu0 %v5903_v1  ;;  %v6623_v10 = vld [vmem:[%s8777_s0 + $0x18] sm:$0xff]  ;;  %v6628_v11 = vld [vmem:[%s8777_s0 + $0x20] sm:$0xff]  ;;  %v6633_v12 = vld [vmem:[%s8777_s0 + $0x28] sm:$0xff] }
   0x5   :  { %5429 = vmatprep.mubr.msk.bf16.mxu0 %vm8928_vm0, %v6602_v5  ;;  %v6637_v13 = vpack.c.bf16 %v6623_v10, %v6618_v9  ;;  %v6641_v14 = vpack.c.bf16 %v6633_v12, %v6628_v11 }
   0x7   :  { %5420 = vmatpush3.bf16.msra.mxu0 %v5903_v1 }
   0x8   :  { %5421 = vmatprep.subr.bf16.mxu0 %v5904_v2 }
   0xb   :  { %5422 = vmatpush3.bf16.msra.mxu0 %v5904_v2 }
   0xc   :  { %5423 = vmatprep.subr.bf16.mxu0 %v5905_v6 }
   0xf   :  { %5424 = vmatpush3.bf16.msra.mxu0 %v5905_v6 }
  0x10   :  { %5425 = vmatprep.subr.bf16.mxu0 %v5906_v7 }
  0x13   :  { %5426 = vmatpush3.bf16.msra.mxu0 %v5906_v7 }
  0x14   :  { %5427 = vmatprep.subr.bf16.mxu0 %v5907_v8 }
  0x17   :  { %5428 = vmatpush3.bf16.msra.mxu0 %v5907_v8 }
  0x1a   :  { %5430 = vmatmul.mubr.msk.bf16.vlgmr.msra.gmra.mrb[0].mxu0 %vm8928_vm0, %v6637_v13 }
  0x1b   :  { %9 = vsyncpa [#allocation3], 0  ;;  %5433 = vmatprep.mubr.msk.bf16.mxu0 %vm8928_vm0, %v6641_v14  ;;  %v6650_v15 = vld [vmem:[%s8777_s0 + $0x30] sm:$0xff]  ;;  %v6655_v16 = vld [vmem:[%s8777_s0 + $0x38] sm:$0xff]  ;;  %v8782_v21 = vlaneseq  ;;  %vm270_vm1 = vcmask 261120   ;;  %vm8929_vm2 = vcmask 523264  }
  0x1c   :  { %v6659_v17 = vpack.c.bf16 %v6655_v16, %v6650_v15  ;;  %v5908_v18 = vld [vmem:[%s8778_s1 + $0x30] sm:$0xff]   ;;  %v5909_v19 = vld [vmem:[%s8778_s1 + $0x38] sm:$0xff]   ;;  %v6672_v20 = vld [vmem:[%s8778_s1 + $0x40] sm:$0xff]   ;;  %s6547_s9 = smov 32   ;;  %s6548_s10 = smov 64   ;;  %vm937_vm3 = vcmask 64512  }
  0x1d   :  { %5437 = vmatprep.subr.bf16.mxu1 %v5908_v18  ;;  %v6676_v22 = vshrl.u32 %v8782_v21, 7  ;;  %v6682_v24 = vld [vmem:[%s8780_s3] sm:$0xff]  ;;  %vm962_vm4 = vcmask 1043456   ;;  %vm6552_vm5 = vmmov 0   ;;  %vm3590_vm6 = vcmask 130112  }
  0x1e   :  { %5438 = vmatpush3.bf16.msra.mxu1 %v5908_v18  ;;  %vm3597_vm7 = vcmask 195712   ;;  %vm3604_vm8 = vcmask 261312   ;;  %vm3611_vm9 = vcmask 326912   ;;  %vm3618_vm10 = vcmask 392512  }
  0x1f   :  { %5439 = vmatprep.subr.bf16.mxu1 %v5909_v19  ;;  %8930 = vst [vmem:[#allocation5_spill] sm:$0xff] %v6676_v22  ;;  %v98_v23 = vsub.s32 0, %v6676_v22  ;;  %vm3625_vm11 = vcmask 458112   ;;  %vm3632_vm12 = vcmask 523712   ;;  %vm3639_vm13 = vcmask 589312  }
  0x20   :  { %vm3646_vm14 = vcmask 654912   ;;  %vm3653_vm15 = vcmask 720512  }
  0x21   :  { %v99_v25 = vrot.slane %v6682_v24, %v98_v23 }
  0x22   :  { %5434 = vmatmul.mubr.msk.bf16.gmra.mrb[4].mxu0 %vm8928_vm0, %v6659_v17  ;;  %5440 = vmatpush3.bf16.msra.mxu1 %v5909_v19  ;;  %vm3681_vm0 = vcmask 982912  }
  0x23   :  { %5449 = vmatprep.subr.bf16.mxu1 %v6672_v20 }
  0xed   :  { %v5431_v26 = vpop.f32.mrb[0].mxu0 }
  0xee   :  { %v192_v27 = vadd.f32 %v5431_v26, %v99_v25  ;;  %v183_v28 = vpop.f32.mrb[1].mxu0 }
  0xef   :  { %v184_v29 = vadd.f32 %v183_v28, %v99_v25  ;;  %v5432_v30 = vpop.f32.mrb[2].mxu0 }
  0xf0   :  { %v224_v31 = vmul.f32 0.70710677, %v192_v27  ;;  %v195_v32 = vadd.f32 %v5432_v30, %v99_v25  ;;  %v186_v33 = vpop.f32.mrb[3].mxu0  ;;  %v216_v56 = vmul.f32 0.5, %v192_v27 }
  0xf1   :  { %v222_v34 = vmul.f32 0.70710677, %v184_v29  ;;  %v187_v35 = vadd.f32 %v186_v33, %v99_v25  ;;  %v214_v59 = vmul.f32 0.5, %v184_v29 }
  0xf2   :  { %5938 = verf.f32 %v224_v31  ;;  %v225_v36 = vmul.f32 0.70710677, %v195_v32  ;;  %v217_v57 = vmul.f32 0.5, %v195_v32 }
  0xf3   :  { %5940 = verf.f32 %v222_v34  ;;  %v223_v37 = vmul.f32 0.70710677, %v187_v35  ;;  %v215_v60 = vmul.f32 0.5, %v187_v35 }
  0xf4   :  { %5942 = verf.f32 %v225_v36 }
  0xf5   :  { %5944 = verf.f32 %v223_v37  ;;  %v5435_v38 = vpop.f32.mrb[4].mxu0 }
  0xf6   :  { %v208_v39 = vadd.f32 %v5435_v38, %v99_v25  ;;  %v199_v40 = vpop.f32.mrb[5].mxu0  ;;  %v5911_v38 = vld [vmem:[%s8778_s1 + $0x48] sm:$0xff]  }
  0xf7   :  { %v200_v41 = vadd.f32 %v199_v40, %v99_v25  ;;  %v5436_v42 = vpop.f32.mrb[6].mxu0  ;;  %v358_v40 = vsub.s32 1, %v6676_v22 }
  0xf8   :  { %v228_v43 = vmul.f32 0.70710677, %v208_v39  ;;  %v211_v44 = vadd.f32 %v5436_v42, %v99_v25  ;;  %v202_v45 = vpop.f32.mrb[7].mxu0  ;;  %v220_v6 = vmul.f32 0.5, %v208_v39  ;;  %v5912_v39 = vld [vmem:[%s8778_s1 + $0x50] sm:$0xff]  }
  0xf9   :  { %v226_v46 = vmul.f32 0.70710677, %v200_v41  ;;  %v203_v47 = vadd.f32 %v202_v45, %v99_v25  ;;  %v218_v8 = vmul.f32 0.5, %v200_v41  ;;  %v359_v42 = vrot.slane %v6682_v24, %v358_v40 }
  0xfa   :  { %5946 = verf.f32 %v228_v43  ;;  %v229_v48 = vmul.f32 0.70710677, %v211_v44  ;;  %v221_v25 = vmul.f32 0.5, %v211_v44 }
  0xfb   :  { %5948 = verf.f32 %v226_v46  ;;  %v227_v49 = vmul.f32 0.70710677, %v203_v47  ;;  %v219_v28 = vmul.f32 0.5, %v203_v47 }
  0xfc   :  { %v5939_v50 = vpop.eup %5938  ;;  %5950 = verf.f32 %v229_v48 }
  0xfd   :  { %v5941_v51 = vpop.eup %5940  ;;  %v240_v52 = vadd.f32 1.0, %v5939_v50  ;;  %5952 = verf.f32 %v227_v49 }
  0xfe   :  { %v5943_v53 = vpop.eup %5942  ;;  %v238_v54 = vadd.f32 1.0, %v5941_v51 }
  0xff   :  { %v5945_v55 = vpop.eup %5944  ;;  %v241_v58 = vadd.f32 1.0, %v5943_v53  ;;  %v248_v62 = vmul.f32 %v240_v52, %v216_v56 }
 0x100   :  { %v239_v61 = vadd.f32 1.0, %v5945_v55  ;;  %v246_v0 = vmul.f32 %v238_v54, %v214_v59 }
 0x101   :  { %v249_v63 = vmul.f32 %v241_v58, %v217_v57 }
 0x102   :  { %v247_v1 = vmul.f32 %v239_v61, %v215_v60 }
 0x103   :  { %v255_v2 = vpack.c.bf16 %v249_v63, %v248_v62 }
 0x104   :  { %v5947_v7 = vpop.eup %5946  ;;  %v254_v18 = vpack.c.bf16 %v247_v1, %v246_v0 }
 0x105   :  { %v5949_v19 = vpop.eup %5948  ;;  %v244_v23 = vadd.f32 1.0, %v5947_v7 }
 0x106   :  { %v5951_v26 = vpop.eup %5950  ;;  %v242_v27 = vadd.f32 1.0, %v5949_v19  ;;  %5441 = vmatprep.mubr.msk.bf16.mxu1 %vm270_vm1, %v254_v18 }
 0x107   :  { %v5953_v29 = vpop.eup %5952  ;;  %v252_v30 = vmul.f32 %v244_v23, %v220_v6  ;;  %v245_v31 = vadd.f32 1.0, %v5951_v26  ;;  %5442 = vmatmul.mubr.msk.bf16.vlgmr.msra.gmra.mrb[0].mxu1 %vm270_vm1, %v255_v2 }
 0x108   :  { %v250_v32 = vmul.f32 %v242_v27, %v218_v8  ;;  %v243_v33 = vadd.f32 1.0, %v5953_v29  ;;  %5450 = vmatpush3.bf16.msra.mxu1 %v6672_v20  ;;  %v5913_v20 = vld [vmem:[%s8778_s1 + $0x58] sm:$0xff]  }
 0x109   :  { %v253_v34 = vmul.f32 %v245_v31, %v221_v25  ;;  %5451 = vmatprep.subr.bf16.mxu1 %v5911_v38  ;;  %v5915_v31 = vld [vmem:[%s8778_s1 + $0x68] sm:$0xff]  }
 0x10a   :  { %v251_v35 = vmul.f32 %v243_v33, %v219_v28 }
 0x10b   :  { %v257_v36 = vpack.c.bf16 %v253_v34, %v252_v30  ;;  %v5914_v30 = vld [vmem:[%s8778_s1 + $0x60] sm:$0xff]   ;;  %v382_v34 = vsub.s32 2, %v6676_v22 }
 0x10c   :  { %v256_v37 = vpack.c.bf16 %v251_v35, %v250_v32  ;;  %5452 = vmatpush3.bf16.msra.mxu1 %v5911_v38  ;;  %5465 = vmatprep.subr.bf16.mxu0 %v5914_v30  ;;  %v661_v32 = vsub.s32 3, %v6676_v22 }
 0x10d   :  { %5453 = vmatprep.subr.bf16.mxu1 %v5912_v39  ;;  %5466 = vmatpush3.bf16.msra.mxu0 %v5914_v30  ;;  %v383_v35 = vrot.slane %v6682_v24, %v382_v34 }
 0x10e   :  { %5445 = vmatprep.mubr.msk.bf16.mxu1 %vm270_vm1, %v256_v37  ;;  %5467 = vmatprep.subr.bf16.mxu0 %v5915_v31  ;;  %v662_v33 = vrot.slane %v6682_v24, %v661_v32 }
 0x10f   :  { %5446 = vmatmul.mubr.msk.bf16.gmra.mrb[4].mxu1 %vm270_vm1, %v257_v36 }
 0x110   :  { %5454 = vmatpush3.bf16.msra.mxu1 %v5912_v39  ;;  %664 = vrot.lane.b32.xlu1 %v662_v33, %s6547_s9 }
 0x111   :  { %5455 = vmatprep.subr.bf16.mxu1 %v5913_v20  ;;  %5468 = vmatpush3.bf16.msra.mxu0 %v5915_v31 }
 0x114   :  { %5456 = vmatpush3.bf16.msra.mxu1 %v5913_v20  ;;  %683 = vrot.lane.b32.xlu1 %v6602_v5, %s6548_s10 }
 0x1da   :  { %v5443_v41 = vpop.f32.mrb[0].mxu1 }
 0x1db   :  { %v350_v43 = vadd.f32 %v5443_v41, %v6618_v9  ;;  %v317_v44 = vpop.f32.mrb[1].mxu1 }
 0x1dc   :  { %v348_v45 = vadd.f32 %v317_v44, %v6593_v3  ;;  %v5444_v46 = vpop.f32.mrb[2].mxu1 }
 0x1dd   :  { %v351_v47 = vadd.f32 %v5444_v46, %v6623_v10  ;;  %v320_v48 = vpop.f32.mrb[3].mxu1  ;;  %v6707_v51 = vadd.f32 %v359_v42, %v350_v43 }
 0x1de   :  { %v6704_v49 = vadd.f32 %v359_v42, %v348_v45  ;;  %v349_v50 = vadd.f32 %v320_v48, %v6598_v4 }
 0x1df   :  { %8932 = vst [vmem:[#allocation7_spill] sm:$0xff] %v6707_v51  ;;  %v6709_v52 = vadd.f32 %v359_v42, %v351_v47  ;;  %v370_v58 = vsel %vm270_vm1, %v6707_v51, %v6618_v9 }
 0x1e0   :  { %8931 = vst [vmem:[#allocation6_spill] sm:$0xff] %v6704_v49  ;;  %v6711_v53 = vadd.f32 %v359_v42, %v349_v50  ;;  %v368_v55 = vsel %vm270_vm1, %v6704_v49, %v6593_v3 }
 0x1e1   :  { %8933 = vst [vmem:[#allocation8_spill] sm:$0xff] %v6709_v52  ;;  %v371_v54 = vsel %vm270_vm1, %v6709_v52, %v6623_v10 }
 0x1e2   :  { %8934 = vst [vmem:[#allocation9_spill] sm:$0xff] %v6711_v53  ;;  %v369_v56 = vsel %vm270_vm1, %v6711_v53, %v6598_v4  ;;  %v5447_v57 = vpop.f32.mrb[4].mxu1  ;;  %v377_v62 = vpack.c.bf16 %v371_v54, %v370_v58 }
 0x1e3   :  { %v376_v59 = vpack.c.bf16 %v369_v56, %v368_v55  ;;  %v354_v60 = vadd.f32 %v5447_v57, %v6650_v15  ;;  %v333_v61 = vpop.f32.mrb[5].mxu1 }
 0x1e4   :  { %v352_v63 = vadd.f32 %v333_v61, %v6628_v11  ;;  %v5448_v0 = vpop.f32.mrb[6].mxu1 }
 0x1e5   :  { %5457 = vmatprep.mubr.msk.bf16.mxu1 %vm8929_vm2, %v376_v59  ;;  %v6728_v1 = vadd.f32 %v359_v42, %v354_v60  ;;  %v355_v2 = vadd.f32 %v5448_v0, %v6655_v16  ;;  %v336_v6 = vpop.f32.mrb[7].mxu1 }
 0x1e6   :  { %5458 = vmatmul.mubr.msk.bf16.vlgmr.msra.gmra.mrb[8].mxu1 %vm8929_vm2, %v377_v62  ;;  %v6732_v7 = vadd.f32 %v359_v42, %v352_v63  ;;  %v353_v8 = vadd.f32 %v336_v6, %v6633_v12 }
 0x1e7   :  { %8935 = vst [vmem:[#allocation10_spill] sm:$0xff] %v6728_v1  ;;  %v374_v18 = vsel %vm270_vm1, %v6728_v1, %v6650_v15  ;;  %v6738_v19 = vadd.f32 %v359_v42, %v355_v2  ;;  %v8793_v1 = vmov 0.0  }
 0x1e8   :  { %8936 = vst [vmem:[#allocation11_spill] sm:$0xff] %v6732_v7  ;;  %v372_v23 = vsel %vm270_vm1, %v6732_v7, %v6628_v11  ;;  %v6743_v25 = vadd.f32 %v359_v42, %v353_v8 }
 0x1e9   :  { %8937 = vst [vmem:[#allocation12_spill] sm:$0xff] %v6738_v19  ;;  %v375_v26 = vsel %vm270_vm1, %v6738_v19, %v6655_v16 }
 0x1ea   :  { %8938 = vst [vmem:[#allocation13_spill] sm:$0xff] %v6743_v25  ;;  %v373_v27 = vsel %vm270_vm1, %v6743_v25, %v6633_v12  ;;  %v379_v28 = vpack.c.bf16 %v375_v26, %v374_v18 }
 0x1eb   :  { %v378_v29 = vpack.c.bf16 %v373_v27, %v372_v23 }
 0x1ed   :  { %5461 = vmatprep.mubr.msk.bf16.mxu1 %vm8929_vm2, %v378_v29 }
 0x1ee   :  { %5462 = vmatmul.mubr.msk.bf16.gmra.mrb[12].mxu1 %vm8929_vm2, %v379_v28  ;;  %vm3688_vm2 = vcmask 1048512  }
 0x2b9   :  { %v5459_v36 = vpop.f32.mrb[8].mxu1 }
 0x2ba   :  { %v464_v37 = vadd.f32 %v5459_v36, %v383_v35  ;;  %v455_v38 = vpop.f32.mrb[9].mxu1 }
 0x2bb   :  { %v456_v39 = vadd.f32 %v455_v38, %v383_v35  ;;  %v5460_v20 = vpop.f32.mrb[10].mxu1 }
 0x2bc   :  { %v496_v40 = vmul.f32 0.70710677, %v464_v37  ;;  %v467_v41 = vadd.f32 %v5460_v20, %v383_v35  ;;  %v458_v42 = vpop.f32.mrb[11].mxu1  ;;  %v488_v8 = vmul.f32 0.5, %v464_v37 }
 0x2bd   :  { %v494_v43 = vmul.f32 0.70710677, %v456_v39  ;;  %v459_v44 = vadd.f32 %v458_v42, %v383_v35  ;;  %v486_v26 = vmul.f32 0.5, %v456_v39 }
 0x2be   :  { %5954 = verf.f32 %v496_v40  ;;  %v497_v45 = vmul.f32 0.70710677, %v467_v41  ;;  %v489_v18 = vmul.f32 0.5, %v467_v41 }
 0x2bf   :  { %5956 = verf.f32 %v494_v43  ;;  %v495_v46 = vmul.f32 0.70710677, %v459_v44  ;;  %v487_v27 = vmul.f32 0.5, %v459_v44 }
 0x2c0   :  { %5958 = verf.f32 %v497_v45 }
 0x2c1   :  { %5960 = verf.f32 %v495_v46  ;;  %v5463_v5 = vpop.f32.mrb[12].mxu1 }
 0x2c2   :  { %v480_v47 = vadd.f32 %v5463_v5, %v383_v35  ;;  %v471_v48 = vpop.f32.mrb[13].mxu1 }
 0x2c3   :  { %v472_v24 = vadd.f32 %v471_v48, %v383_v35  ;;  %v5464_v50 = vpop.f32.mrb[14].mxu1 }
 0x2c4   :  { %v500_v54 = vmul.f32 0.70710677, %v480_v47  ;;  %v483_v55 = vadd.f32 %v5464_v50, %v383_v35  ;;  %v474_v56 = vpop.f32.mrb[15].mxu1  ;;  %v492_v34 = vmul.f32 0.5, %v480_v47 }
 0x2c5   :  { %v498_v57 = vmul.f32 0.70710677, %v472_v24  ;;  %v475_v58 = vadd.f32 %v474_v56, %v383_v35  ;;  %v490_v38 = vmul.f32 0.5, %v472_v24  ;;  %v6770_v24 = vpop.permute.xlu1 %664  ;;  %v5916_v56 = vld [vmem:[%s8779_s2] ss:$12 sps:$4 sm:$0xff]  }
 0x2c6   :  { %5962 = verf.f32 %v500_v54  ;;  %v501_v59 = vmul.f32 0.70710677, %v483_v55  ;;  %v493_v42 = vmul.f32 0.5, %v483_v55  ;;  %5477 = vmatprep.subr.bf16.mxu1 %v5916_v56 }
 0x2c7   :  { %5964 = verf.f32 %v498_v57  ;;  %v499_v60 = vmul.f32 0.70710677, %v475_v58  ;;  %v491_v37 = vmul.f32 0.5, %v475_v58  ;;  %5478 = vmatpush3.bf16.msra.mxu1 %v5916_v56  ;;  %v5917_v57 = vld [vmem:[%s8779_s2 + $0x18] ss:$12 sps:$4 sm:$0xff]  }
 0x2c8   :  { %v5955_v61 = vpop.eup %5954  ;;  %5966 = verf.f32 %v501_v59  ;;  %5479 = vmatprep.subr.bf16.mxu1 %v5917_v57 }
 0x2c9   :  { %v5957_v62 = vpop.eup %5956  ;;  %v512_v63 = vadd.f32 1.0, %v5955_v61  ;;  %5968 = verf.f32 %v499_v60  ;;  %v684_v55 = vpop.permute.xlu1 %683 }
 0x2ca   :  { %v5959_v0 = vpop.eup %5958  ;;  %v510_v2 = vadd.f32 1.0, %v5957_v62  ;;  %5481 = vmatprep.mubr.msk.bf16.mxu1 %vm270_vm1, %v684_v55 }
 0x2cb   :  { %v5961_v6 = vpop.eup %5960  ;;  %v513_v23 = vadd.f32 1.0, %v5959_v0  ;;  %v520_v29 = vmul.f32 %v512_v63, %v488_v8  ;;  %5480 = vmatpush3.bf16.msra.mxu1 %v5917_v57  ;;  %v5920_v8 = vld [vmem:[%s8779_s2 + $0x8] ss:$12 sps:$4 sm:$0xff]  }
 0x2cc   :  { %v511_v28 = vadd.f32 1.0, %v5961_v6  ;;  %v518_v31 = vmul.f32 %v510_v2, %v486_v26  ;;  %v5918_v6 = vld [vmem:[%s8779_s2 + $0x4] ss:$12 sps:$4 sm:$0xff]   ;;  %824 = vmatprep.subr.bf16.mxu0 %v5920_v8 }
 0x2cd   :  { %v521_v30 = vmul.f32 %v513_v23, %v489_v18  ;;  %v5923_v18 = vld [vmem:[%s8779_s2 + $0x20] ss:$12 sps:$4 sm:$0xff]   ;;  %v6549_v23 = vmov 0  }
 0x2ce   :  { %v519_v32 = vmul.f32 %v511_v28, %v487_v27 }
 0x2cf   :  { %v527_v33 = vpack.c.bf16 %v521_v30, %v520_v29 }
 0x2d0   :  { %v5963_v35 = vpop.eup %5962  ;;  %v526_v36 = vpack.c.bf16 %v519_v32, %v518_v31 }
 0x2d1   :  { %v5965_v20 = vpop.eup %5964  ;;  %v516_v40 = vadd.f32 1.0, %v5963_v35 }
 0x2d2   :  { %v5967_v43 = vpop.eup %5966  ;;  %v514_v45 = vadd.f32 1.0, %v5965_v20  ;;  %5469 = vmatprep.mubr.msk.bf16.mxu0 %vm270_vm1, %v526_v36 }
 0x2d3   :  { %v5969_v39 = vpop.eup %5968  ;;  %v524_v41 = vmul.f32 %v516_v40, %v492_v34  ;;  %v517_v44 = vadd.f32 1.0, %v5967_v43  ;;  %5470 = vmatmul.mubr.msk.bf16.vlgmr.msra.gmra.mrb[8].mxu0 %vm270_vm1, %v527_v33 }
 0x2d4   :  { %v522_v46 = vmul.f32 %v514_v45, %v490_v38  ;;  %v515_v5 = vadd.f32 1.0, %v5969_v39  ;;  %825 = vmatpush1.bf16.msra.mxu0 %v5918_v6 }
 0x2d5   :  { %v525_v48 = vmul.f32 %v517_v44, %v493_v42  ;;  %826 = vmatprep.subr.bf16.mxu0 %v5923_v18 }
 0x2d6   :  { %v523_v47 = vmul.f32 %v515_v5, %v491_v37 }
 0x2d7   :  { %v529_v50 = vpack.c.bf16 %v525_v48, %v524_v41 }
 0x2d8   :  { %v528_v54 = vpack.c.bf16 %v523_v47, %v522_v46 }
 0x2da   :  { %5473 = vmatprep.mubr.msk.bf16.mxu0 %vm270_vm1, %v528_v54 }
 0x2db   :  { %5474 = vmatmul.mubr.msk.bf16.gmra.mrb[12].mxu0 %vm270_vm1, %v529_v50 }
 0x2dc   :  { %856 = vmatprep.mubr.bf16.mxu0 %v6549_v23 }
 0x3a6   :  { %v5471_v58 = vpop.f32.mrb[8].mxu0 }
 0x3a7   :  { %631 = vrot.lane.b32.xlu1 %v5471_v58, %s6547_s9  ;;  %v588_v59 = vpop.f32.mrb[9].mxu0 }
 0x3a8   :  { %627 = vrot.lane.b32.xlu0 %v588_v59, %s6547_s9  ;;  %v5472_v60 = vpop.f32.mrb[10].mxu0 }
 0x3a9   :  { %v591_v61 = vpop.f32.mrb[11].mxu0 }
 0x3ac   :  { %629 = vrot.lane.b32.xlu0 %v591_v61, %s6547_s9 }
 0x3ae   :  { %v5475_v62 = vpop.f32.mrb[12].mxu0 }
 0x3af   :  { %v604_v63 = vpop.f32.mrb[13].mxu0 }
 0x3b0   :  { %685 = vrot.lane.b32.xlu0 %v6637_v13, %s6548_s10  ;;  %v5476_v0 = vpop.f32.mrb[14].mxu0  ;;  %v5921_v13 = vld [vmem:[%s8779_s2 + $0x1c] ss:$12 sps:$4 sm:$0xff]   ;;  %s6550_s2 = smov 96  }
 0x3b1   :  { %v607_v2 = vpop.f32.mrb[15].mxu0  ;;  %827 = vmatpush1.bf16.msra.mxu0 %v5921_v13 }
 0x3b4   :  { %633 = vrot.lane.b32.xlu0 %v5472_v60, %s6547_s9 }
 0x3b8   :  { %635 = vrot.lane.b32.xlu0 %v604_v63, %s6547_s9 }
 0x419   :  { %v632_v32 = vpop.permute.xlu1 %631 }
 0x41a   :  { %v628_v26 = vpop.permute.xlu0 %627  ;;  %v653_v35 = vadd.f32 %v632_v32, %v6618_v9 }
 0x41b   :  { %v651_v27 = vadd.f32 %v628_v26, %v6593_v3 }
 0x41c   :  { %v6814_v36 = vadd.f32 %v6770_v24, %v653_v35 }
 0x41d   :  { %v6802_v30 = vadd.f32 %v6770_v24, %v651_v27 }
 0x41e   :  { %v630_v28 = vpop.permute.xlu0 %629  ;;  %8941 = vst [vmem:[#allocation16_spill] sm:$0xff] %v6814_v36 }
 0x41f   :  { %v652_v29 = vadd.f32 %v630_v28, %v6598_v4  ;;  %8939 = vst [vmem:[#allocation14_spill] sm:$0xff] %v6802_v30 }
 0x421   :  { %v6805_v31 = vadd.f32 %v6770_v24, %v652_v29 }
 0x422   :  { %v686_v33 = vpop.permute.xlu0 %685 }
 0x423   :  { %8940 = vst [vmem:[#allocation15_spill] sm:$0xff] %v6805_v31  ;;  %v675_v34 = vpack.c.bf16 %v6805_v31, %v6802_v30  ;;  %5482 = vmatmul.mubr.msk.bf16.vlgmr.msra.gmra.mrb[16].mxu1 %vm270_vm1, %v686_v33 }
 0x425   :  { %784 = vrot.lane.b32.xlu1 %v675_v34, %s6550_s2 }
 0x426   :  { %v634_v3 = vpop.permute.xlu0 %633 }
 0x427   :  { %v654_v4 = vadd.f32 %v634_v3, %v6623_v10 }
 0x429   :  { %v6817_v38 = vadd.f32 %v6770_v24, %v654_v4  ;;  %637 = vrot.lane.b32.xlu1 %v607_v2, %s6547_s9 }
 0x42a   :  { %v636_v9 = vpop.permute.xlu0 %635 }
 0x42b   :  { %8942 = vst [vmem:[#allocation17_spill] sm:$0xff] %v6817_v38  ;;  %v676_v20 = vpack.c.bf16 %v6817_v38, %v6814_v36  ;;  %v655_v40 = vadd.f32 %v636_v9, %v6628_v11 }
 0x42d   :  { %786 = vrot.lane.b32.xlu0 %v676_v20, %s6550_s2  ;;  %687 = vrot.lane.b32.xlu1 %v6641_v14, %s6548_s10  ;;  %v6834_v14 = vadd.f32 %v6770_v24, %v655_v40 }
 0x42f   :  { %8943 = vst [vmem:[#allocation18_spill] sm:$0xff] %v6834_v14 }
 0x431   :  { %689 = vrot.lane.b32.xlu0 %v6659_v17, %s6548_s10  ;;  %639 = vrot.lane.b32.xlu1 %v5475_v62, %s6547_s9 }
 0x435   :  { %641 = vrot.lane.b32.xlu0 %v5476_v0, %s6547_s9 }
 0x497   :  { %v785_v10 = vpop.permute.xlu1 %784 }
 0x498   :  { %5121 = vmatmul.mubr.msk.bf16.vlgmr.msra.gmra.mrb[16].mxu0 %vm270_vm1, %v785_v10 }
 0x499   :  { %866 = vmatprep.mubr.bf16.mxu0 %v6549_v23 }
 0x49b   :  { %v638_v42 = vpop.permute.xlu1 %637 }
 0x49c   :  { %v656_v43 = vadd.f32 %v638_v42, %v6633_v12 }
 0x49e   :  { %v6837_v17 = vadd.f32 %v6770_v24, %v656_v43 }
 0x49f   :  { %v787_v45 = vpop.permute.xlu0 %786  ;;  %v688_v37 = vpop.permute.xlu1 %687 }
 0x4a0   :  { %8944 = vst [vmem:[#allocation19_spill] sm:$0xff] %v6837_v17  ;;  %5122 = vmatmul.mubr.msk.bf16.gmra.mrb[20].mxu0 %vm270_vm1, %v787_v45  ;;  %v677_v39 = vpack.c.bf16 %v6837_v17, %v6834_v14  ;;  %5485 = vmatprep.mubr.msk.bf16.mxu1 %vm270_vm1, %v688_v37 }
 0x4a1   :  { %876 = vmatprep.mubr.bf16.mxu0 %v6549_v23 }
 0x4a2   :  { %788 = vrot.lane.b32.xlu1 %v677_v39, %s6550_s2 }
 0x4a3   :  { %v690_v11 = vpop.permute.xlu0 %689  ;;  %v640_v12 = vpop.permute.xlu1 %639 }
 0x4a4   :  { %5486 = vmatmul.mubr.msk.bf16.gmra.mrb[20].mxu1 %vm270_vm1, %v690_v11  ;;  %v657_v41 = vadd.f32 %v640_v12, %v6650_v15 }
 0x4a6   :  { %v6849_v5 = vadd.f32 %v6770_v24, %v657_v41 }
 0x4a7   :  { %v642_v44 = vpop.permute.xlu0 %641 }
 0x4a8   :  { %v658_v46 = vadd.f32 %v642_v44, %v6655_v16  ;;  %8945 = vst [vmem:[#allocation20_spill] sm:$0xff] %v6849_v5 }
 0x4aa   :  { %v6852_v48 = vadd.f32 %v6770_v24, %v658_v46 }
 0x4ac   :  { %8946 = vst [vmem:[#allocation21_spill] sm:$0xff] %v6852_v48  ;;  %v678_v47 = vpack.c.bf16 %v6852_v48, %v6849_v5 }
 0x4ae   :  { %790 = vrot.lane.b32.xlu0 %v678_v47, %s6550_s2 }
 0x4f6   :  { %v5483_v50 = vpop.f32.mrb[16].mxu1 }
 0x4f7   :  { %v749_v54 = vpop.f32.mrb[17].mxu1  ;;  %v899_v24 = vpack.c.bf16 %v5483_v50, %v5483_v50 }
 0x4f8   :  { %v897_v55 = vpack.c.bf16 %v749_v54, %v749_v54  ;;  %v5484_v56 = vpop.f32.mrb[18].mxu1 }
 0x4f9   :  { %v752_v57 = vpop.f32.mrb[19].mxu1  ;;  %v900_v58 = vpack.c.bf16 %v5484_v56, %v5484_v56 }
 0x4fa   :  { %v898_v15 = vpack.c.bf16 %v752_v57, %v752_v57  ;;  %921 = vxpose.xlu1.c.b16.start.end [1/1] (short) %v897_v55, 128 }
 0x4fc   :  { %1063 = vxpose.xlu0.c.b16.start.end [1/1] (short) %v898_v15, 128 }
 0x514   :  { %v789_v16 = vpop.permute.xlu1 %788 }
 0x515   :  { %5123 = vmatmul.mubr.msk.bf16.gmra.mrb[24].mxu0 %vm270_vm1, %v789_v16 }
 0x516   :  { %886 = vmatprep.mubr.bf16.mxu0 %v6549_v23 }
 0x517   :  { %1343 = vxpose.xlu1.c.b16.start.end [1/1] (short) %v900_v58, 128 }
 0x519   :  { %1203 = vxpose.xlu0.c.b16.start.end [1/1] (short) %v899_v24, 128 }
 0x520   :  { %v791_v59 = vpop.permute.xlu0 %790 }
 0x521   :  { %5124 = vmatmul.mubr.msk.bf16.gmra.mrb[28].mxu0 %vm270_vm1, %v791_v59 }
 0x560   :  { %v929_v60 = vpop.trf.xlu1 }
 0x561   :  { %5491 = vmatprep.mubr.msk.bf16.mxu1 %vm937_vm3, %v929_v60 }
 0x562   :  { %v1071_v61 = vpop.trf.xlu0 }
 0x563   :  { %5509 = vmatprep.mubr.msk.bf16.mxu0 %vm937_vm3, %v1071_v61 }
 0x564   :  { %v930_v62 = vpop.trf.xlu1 }
 0x566   :  { %v1072_v63 = vpop.trf.xlu0 }
 0x568   :  { %v931_v0 = vpop.trf.xlu1 }
 0x56a   :  { %v1073_v2 = vpop.trf.xlu0 }
 0x56b   :  { %v858_v6 = vpop.f32.mrb[16].mxu0 }
 0x56c   :  { %v905_v8 = vpack.c.bf16 %v858_v6, %v858_v6  ;;  %v6862_v18 = vpop.f32.mrb[17].mxu0  ;;  %v932_v23 = vpop.trf.xlu1 }
 0x56d   :  { %8947 = vst [vmem:[#allocation22_spill] sm:$0xff] %v6862_v18  ;;  %v862_v13 = vpop.f32.mrb[18].mxu0 }
 0x56e   :  { %v964_v26 = vsel %vm962_vm4, %v905_v8, 0  ;;  %v906_v27 = vpack.c.bf16 %v862_v13, %v862_v13  ;;  %v6865_v28 = vpop.f32.mrb[19].mxu0  ;;  %5845 = vmatprep.subr.msk.bf16.mxu1 %vm962_vm4, %v905_v8  ;;  %v1074_v29 = vpop.trf.xlu0 }
 0x56f   :  { %8948 = vst [vmem:[#allocation23_spill] sm:$0xff] %v6865_v28  ;;  %5490 = vmatpush3.bf16.msra.mxu1 %v964_v26 }
 0x570   :  { %v1104_v32 = vsel %vm962_vm4, %v906_v27, 0  ;;  %5846 = vmatprep.subr.msk.bf16.mxu0 %vm962_vm4, %v906_v27  ;;  %v933_v33 = vpop.trf.xlu1 }
 0x571   :  { %5508 = vmatpush3.bf16.msra.mxu0 %v1104_v32 }
 0x572   :  { %5492 = vmatmul.mubr.msk.bf16.vlgmr.msra.gmra.mrb[24].mxu1 %vm937_vm3, %v930_v62  ;;  %v1075_v34 = vpop.trf.xlu0 }
 0x573   :  { %v868_v35 = vpop.f32.mrb[20].mxu0  ;;  %5495 = vmatprep.mubr.msk.bf16.mxu1 %vm937_vm3, %v931_v0 }
 0x574   :  { %v907_v3 = vpack.c.bf16 %v868_v35, %v868_v35  ;;  %v6872_v4 = vpop.f32.mrb[21].mxu0  ;;  %5510 = vmatmul.mubr.msk.bf16.vlgmr.msra.gmra.mrb[32].mxu0 %vm937_vm3, %v1072_v63  ;;  %v934_v45 = vpop.trf.xlu1 }
 0x575   :  { %8949 = vst [vmem:[#allocation24_spill] sm:$0xff] %v6872_v4  ;;  %v872_v20 = vpop.f32.mrb[22].mxu0  ;;  %5513 = vmatprep.mubr.msk.bf16.mxu0 %vm937_vm3, %v1073_v2 }
 0x576   :  { %v1244_v9 = vsel %vm962_vm4, %v907_v3, 0  ;;  %v908_v10 = vpack.c.bf16 %v872_v20, %v872_v20  ;;  %v6877_v40 = vpop.f32.mrb[23].mxu0  ;;  %5847 = vmatprep.subr.msk.bf16.mxu1 %vm962_vm4, %v907_v3  ;;  %v1076_v42 = vpop.trf.xlu0 }
 0x577   :  { %8950 = vst [vmem:[#allocation25_spill] sm:$0xff] %v6877_v40  ;;  %5526 = vmatpush3.bf16.msra.mxu1 %v1244_v9  ;;  %v5487_v43 = vpop.f32.mrb[20].mxu1 }
 0x578   :  { %v1384_v37 = vsel %vm962_vm4, %v908_v10, 0  ;;  %5848 = vmatprep.subr.msk.bf16.mxu0 %vm962_vm4, %v908_v10  ;;  %v765_v39 = vpop.f32.mrb[21].mxu1  ;;  %v935_v47 = vpop.trf.xlu1  ;;  %v903_v60 = vpack.c.bf16 %v5487_v43, %v5487_v43 }
 0x579   :  { %5544 = vmatpush3.bf16.msra.mxu0 %v1384_v37  ;;  %v901_v11 = vpack.c.bf16 %v765_v39, %v765_v39  ;;  %v5488_v12 = vpop.f32.mrb[22].mxu1 }
 0x57a   :  { %v768_v41 = vpop.f32.mrb[23].mxu1  ;;  %5496 = vmatmul.mubr.msk.bf16.gmra.mrb[28].mxu1 %vm937_vm3, %v932_v23  ;;  %v1077_v44 = vpop.trf.xlu0  ;;  %v904_v62 = vpack.c.bf16 %v5488_v12, %v5488_v12 }
 0x57b   :  { %v902_v46 = vpack.c.bf16 %v768_v41, %v768_v41  ;;  %1483 = vxpose.xlu0.c.b16.start.end [1/1] (short) %v901_v11, 128  ;;  %5499 = vmatprep.mubr.msk.bf16.mxu1 %vm937_vm3, %v933_v33 }
 0x57c   :  { %5514 = vmatmul.mubr.msk.bf16.gmra.mrb[36].mxu0 %vm937_vm3, %v1074_v29  ;;  %v936_v54 = vpop.trf.xlu1 }
 0x57d   :  { %1623 = vxpose.xlu1.c.b16.start.end [1/1] (short) %v902_v46, 128  ;;  %5517 = vmatprep.mubr.msk.bf16.mxu0 %vm937_vm3, %v1075_v34 }
 0x57e   :  { %v1078_v50 = vpop.trf.xlu0 }
 0x580   :  { %v1351_v56 = vpop.trf.xlu1 }
 0x582   :  { %5500 = vmatmul.mubr.msk.bf16.gmra.mrb[32].mxu1 %vm937_vm3, %v934_v45  ;;  %v1211_v55 = vpop.trf.xlu0 }
 0x583   :  { %5503 = vmatprep.mubr.msk.bf16.mxu1 %vm937_vm3, %v935_v47 }
 0x584   :  { %5518 = vmatmul.mubr.msk.bf16.gmra.mrb[40].mxu0 %vm937_vm3, %v1076_v42  ;;  %v1352_v15 = vpop.trf.xlu1 }
 0x585   :  { %5521 = vmatprep.mubr.msk.bf16.mxu0 %vm937_vm3, %v1077_v44 }
 0x586   :  { %v1212_v57 = vpop.trf.xlu0 }
 0x588   :  { %v1353_v58 = vpop.trf.xlu1 }
 0x58a   :  { %5504 = vmatmul.mubr.msk.bf16.gmra.mrb[36].mxu1 %vm937_vm3, %v936_v54  ;;  %v1213_v16 = vpop.trf.xlu0 }
 0x58b   :  { %5527 = vmatprep.mubr.msk.bf16.mxu1 %vm937_vm3, %v1211_v55 }
 0x58c   :  { %5522 = vmatmul.mubr.msk.bf16.gmra.mrb[44].mxu0 %vm937_vm3, %v1078_v50  ;;  %v1354_v59 = vpop.trf.xlu1 }
 0x58d   :  { %5545 = vmatprep.mubr.msk.bf16.mxu0 %vm937_vm3, %v1351_v56 }
 0x58e   :  { %v1214_v24 = vpop.trf.xlu0 }
 0x590   :  { %v1355_v63 = vpop.trf.xlu1 }
 0x592   :  { %5528 = vmatmul.mubr.msk.bf16.vlgmr.msra.gmra.mrb[40].mxu1 %vm937_vm3, %v1212_v57  ;;  %v1215_v61 = vpop.trf.xlu0 }
 0x593   :  { %5531 = vmatprep.mubr.msk.bf16.mxu1 %vm937_vm3, %v1213_v16 }
 0x594   :  { %5546 = vmatmul.mubr.msk.bf16.vlgmr.msra.gmra.mrb[48].mxu0 %vm937_vm3, %v1352_v15  ;;  %v1356_v2 = vpop.trf.xlu1 }
 0x595   :  { %5549 = vmatprep.mubr.msk.bf16.mxu0 %vm937_vm3, %v1353_v58 }
 0x596   :  { %v1216_v0 = vpop.trf.xlu0 }
 0x598   :  { %1763 = vxpose.xlu0.c.b16.start.end [1/1] (short) %v903_v60, 128  ;;  %v1357_v8 = vpop.trf.xlu1 }
 0x59a   :  { %1903 = vxpose.xlu1.c.b16.start.end [1/1] (short) %v904_v62, 128  ;;  %5532 = vmatmul.mubr.msk.bf16.gmra.mrb[44].mxu1 %vm937_vm3, %v1214_v24  ;;  %v1217_v6 = vpop.trf.xlu0 }
 0x59b   :  { %5535 = vmatprep.mubr.msk.bf16.mxu1 %vm937_vm3, %v1215_v61 }
 0x59c   :  { %5550 = vmatmul.mubr.msk.bf16.gmra.mrb[52].mxu0 %vm937_vm3, %v1354_v59  ;;  %v1358_v23 = vpop.trf.xlu1 }
 0x59d   :  { %5553 = vmatprep.mubr.msk.bf16.mxu0 %vm937_vm3, %v1355_v63 }
 0x59e   :  { %v1218_v13 = vpop.trf.xlu0 }
 0x5a2   :  { %5536 = vmatmul.mubr.msk.bf16.gmra.mrb[48].mxu1 %vm937_vm3, %v1216_v0 }
 0x5a3   :  { %5539 = vmatprep.mubr.msk.bf16.mxu1 %vm937_vm3, %v1217_v6 }
 0x5a4   :  { %5554 = vmatmul.mubr.msk.bf16.gmra.mrb[56].mxu0 %vm937_vm3, %v1356_v2 }
 0x5a5   :  { %5557 = vmatprep.mubr.msk.bf16.mxu0 %vm937_vm3, %v1357_v8 }
 0x5aa   :  { %5540 = vmatmul.mubr.msk.bf16.gmra.mrb[52].mxu1 %vm937_vm3, %v1218_v13 }
 0x5ac   :  { %5558 = vmatmul.mubr.msk.bf16.gmra.mrb[60].mxu0 %vm937_vm3, %v1358_v23 }
 0x5e1   :  { %v1491_v26 = vpop.trf.xlu0 }
 0x5e2   :  { %5563 = vmatprep.mubr.msk.bf16.mxu1 %vm937_vm3, %v1491_v26 }
 0x5e3   :  { %v1631_v27 = vpop.trf.xlu1 }
 0x5e4   :  { %5581 = vmatprep.mubr.msk.bf16.mxu0 %vm937_vm3, %v1631_v27 }
 0x5e5   :  { %v1492_v29 = vpop.trf.xlu0 }
 0x5e7   :  { %v1632_v32 = vpop.trf.xlu1 }
 0x5e8   :  { %v878_v33 = vpop.f32.mrb[24].mxu0 }
 0x5e9   :  { %v909_v34 = vpack.c.bf16 %v878_v33, %v878_v33  ;;  %v6910_v35 = vpop.f32.mrb[25].mxu0  ;;  %v1493_v3 = vpop.trf.xlu0 }
 0x5ea   :  { %8951 = vst [vmem:[#allocation26_spill] sm:$0xff] %v6910_v35  ;;  %v882_v20 = vpop.f32.mrb[26].mxu0 }
 0x5eb   :  { %v1524_v9 = vsel %vm962_vm4, %v909_v34, 0  ;;  %v910_v10 = vpack.c.bf16 %v882_v20, %v882_v20  ;;  %v6913_v42 = vpop.f32.mrb[27].mxu0  ;;  %5849 = vmatprep.subr.msk.bf16.mxu1 %vm962_vm4, %v909_v34  ;;  %v1633_v43 = vpop.trf.xlu1 }
 0x5ec   :  { %8952 = vst [vmem:[#allocation27_spill] sm:$0xff] %v6913_v42  ;;  %5562 = vmatpush3.bf16.msra.mxu1 %v1524_v9 }
 0x5ed   :  { %v1664_v45 = vsel %vm962_vm4, %v910_v10, 0  ;;  %5850 = vmatprep.subr.msk.bf16.mxu0 %vm962_vm4, %v910_v10  ;;  %v1494_v37 = vpop.trf.xlu0 }
 0x5ee   :  { %5580 = vmatpush3.bf16.msra.mxu0 %v1664_v45 }
 0x5ef   :  { %5564 = vmatmul.mubr.msk.bf16.vlgmr.msra.gmra.mrb[56].mxu1 %vm937_vm3, %v1492_v29  ;;  %v1634_v39 = vpop.trf.xlu1 }
 0x5f0   :  { %5567 = vmatprep.mubr.msk.bf16.mxu1 %vm937_vm3, %v1493_v3 }
 0x5f1   :  { %5582 = vmatmul.mubr.msk.bf16.vlgmr.msra.gmra.mrb[64].mxu0 %vm937_vm3, %v1632_v32  ;;  %v1495_v11 = vpop.trf.xlu0 }
 0x5f2   :  { %5585 = vmatprep.mubr.msk.bf16.mxu0 %vm937_vm3, %v1633_v43 }
 0x5f3   :  { %v1635_v12 = vpop.trf.xlu1 }
 0x5f4   :  { %v888_v41 = vpop.f32.mrb[28].mxu0 }
 0x5f5   :  { %v911_v44 = vpack.c.bf16 %v888_v41, %v888_v41  ;;  %v6922_v46 = vpop.f32.mrb[29].mxu0  ;;  %v1496_v47 = vpop.trf.xlu0 }
 0x5f6   :  { %8953 = vst [vmem:[#allocation28_spill] sm:$0xff] %v6922_v46  ;;  %v892_v50 = vpop.f32.mrb[30].mxu0 }
 0x5f7   :  { %v1804_v54 = vsel %vm962_vm4, %v911_v44, 0  ;;  %v912_v55 = vpack.c.bf16 %v892_v50, %v892_v50  ;;  %v6925_v56 = vpop.f32.mrb[31].mxu0  ;;  %5851 = vmatprep.subr.msk.bf16.mxu1 %vm962_vm4, %v911_v44  ;;  %5568 = vmatmul.mubr.msk.bf16.gmra.mrb[60].mxu1 %vm937_vm3, %v1494_v37  ;;  %v1636_v57 = vpop.trf.xlu1 }
 0x5f8   :  { %8954 = vst [vmem:[#allocation29_spill] sm:$0xff] %v6925_v56  ;;  %5598 = vmatpush3.bf16.msra.mxu1 %v1804_v54  ;;  %5571 = vmatprep.mubr.msk.bf16.mxu1 %vm937_vm3, %v1495_v11 }
 0x5f9   :  { %v1944_v15 = vsel %vm962_vm4, %v912_v55, 0  ;;  %5852 = vmatprep.subr.msk.bf16.mxu0 %vm962_vm4, %v912_v55  ;;  %5586 = vmatmul.mubr.msk.bf16.gmra.mrb[68].mxu0 %vm937_vm3, %v1634_v39  ;;  %v1497_v16 = vpop.trf.xlu0  ;;  %vm3667_vm4 = vcmask 851712  }
 0x5fa   :  { %5616 = vmatpush3.bf16.msra.mxu0 %v1944_v15  ;;  %5589 = vmatprep.mubr.msk.bf16.mxu0 %vm937_vm3, %v1635_v12 }
 0x5fb   :  { %v1637_v58 = vpop.trf.xlu1  ;;  %5633 = vmatprep.subr.bf16.mxu1 %v8793_v1  ;;  %5653 = vmatprep.subr.bf16.mxu0 %v8793_v1 }
 0x5fd   :  { %v1498_v24 = vpop.trf.xlu0 }
 0x5ff   :  { %5572 = vmatmul.mubr.msk.bf16.gmra.mrb[64].mxu1 %vm937_vm3, %v1496_v47  ;;  %v1638_v59 = vpop.trf.xlu1 }
 0x600   :  { %5575 = vmatprep.mubr.msk.bf16.mxu1 %vm937_vm3, %v1497_v16 }
 0x601   :  { %5590 = vmatmul.mubr.msk.bf16.gmra.mrb[72].mxu0 %vm937_vm3, %v1636_v57  ;;  %v1771_v60 = vpop.trf.xlu0 }
 0x602   :  { %5593 = vmatprep.mubr.msk.bf16.mxu0 %vm937_vm3, %v1637_v58 }
 0x603   :  { %v1911_v61 = vpop.trf.xlu1 }
 0x605   :  { %v1772_v62 = vpop.trf.xlu0 }
 0x607   :  { %5576 = vmatmul.mubr.msk.bf16.gmra.mrb[68].mxu1 %vm937_vm3, %v1498_v24  ;;  %v1912_v63 = vpop.trf.xlu1 }
 0x608   :  { %5599 = vmatprep.mubr.msk.bf16.mxu1 %vm937_vm3, %v1771_v60 }
 0x609   :  { %5594 = vmatmul.mubr.msk.bf16.gmra.mrb[76].mxu0 %vm937_vm3, %v1638_v59  ;;  %v1773_v0 = vpop.trf.xlu0 }
 0x60a   :  { %5617 = vmatprep.mubr.msk.bf16.mxu0 %vm937_vm3, %v1911_v61 }
 0x60b   :  { %v1913_v2 = vpop.trf.xlu1 }
 0x60d   :  { %v1774_v6 = vpop.trf.xlu0 }
 0x60f   :  { %5600 = vmatmul.mubr.msk.bf16.vlgmr.msra.gmra.mrb[72].mxu1 %vm937_vm3, %v1772_v62  ;;  %v1914_v8 = vpop.trf.xlu1 }
 0x610   :  { %5603 = vmatprep.mubr.msk.bf16.mxu1 %vm937_vm3, %v1773_v0 }
 0x611   :  { %5618 = vmatmul.mubr.msk.bf16.vlgmr.msra.gmra.mrb[80].mxu0 %vm937_vm3, %v1912_v63  ;;  %v1775_v13 = vpop.trf.xlu0 }
 0x612   :  { %5621 = vmatprep.mubr.msk.bf16.mxu0 %vm937_vm3, %v1913_v2 }
 0x613   :  { %v1915_v23 = vpop.trf.xlu1 }
 0x615   :  { %v1776_v26 = vpop.trf.xlu0 }
 0x617   :  { %5604 = vmatmul.mubr.msk.bf16.gmra.mrb[76].mxu1 %vm937_vm3, %v1774_v6  ;;  %v1916_v27 = vpop.trf.xlu1 }
 0x618   :  { %5607 = vmatprep.mubr.msk.bf16.mxu1 %vm937_vm3, %v1775_v13 }
 0x619   :  { %5622 = vmatmul.mubr.msk.bf16.gmra.mrb[84].mxu0 %vm937_vm3, %v1914_v8  ;;  %v1777_v29 = vpop.trf.xlu0 }
 0x61a   :  { %5625 = vmatprep.mubr.msk.bf16.mxu0 %vm937_vm3, %v1915_v23 }
 0x61b   :  { %v1917_v32 = vpop.trf.xlu1 }
 0x61d   :  { %v1778_v33 = vpop.trf.xlu0 }
 0x61f   :  { %5608 = vmatmul.mubr.msk.bf16.gmra.mrb[80].mxu1 %vm937_vm3, %v1776_v26  ;;  %v1918_v34 = vpop.trf.xlu1 }
 0x620   :  { %5611 = vmatprep.mubr.msk.bf16.mxu1 %vm937_vm3, %v1777_v29 }
 0x621   :  { %5626 = vmatmul.mubr.msk.bf16.gmra.mrb[88].mxu0 %vm937_vm3, %v1916_v27 }
 0x622   :  { %5629 = vmatprep.mubr.msk.bf16.mxu0 %vm937_vm3, %v1917_v32 }
 0x627   :  { %5612 = vmatmul.mubr.msk.bf16.gmra.mrb[84].mxu1 %vm937_vm3, %v1778_v33 }
 0x629   :  { %5630 = vmatmul.mubr.msk.bf16.gmra.mrb[92].mxu0 %vm937_vm3, %v1918_v34  ;;  %vm3660_vm3 = vcmask 786112  }
 0x645   :  { %v6956_v3 = vpop.f32.mrb[24].mxu1 }
 0x646   :  { %2047 = vmax.xlane.f32.xlu0 %v6956_v3  ;;  %v6959_v20 = vpop.f32.mrb[25].mxu1 }
 0x647   :  { %v6961_v9 = vpop.f32.mrb[26].mxu1  ;;  %v6963_v10 = vpop.f32.mrb[32].mxu0 }
 0x648   :  { %2049 = vmax.xlane.f32.xlu1 %v6961_v9  ;;  %v6966_v43 = vpop.f32.mrb[27].mxu1  ;;  %v6968_v45 = vpop.f32.mrb[33].mxu0 }
 0x649   :  { %v6970_v37 = vpop.f32.mrb[34].mxu0 }
 0x64a   :  { %2043 = vmax.xlane.f32.xlu0 %v6959_v20  ;;  %v6973_v39 = vpop.f32.mrb[35].mxu0 }
 0x64c   :  { %2045 = vmax.xlane.f32.xlu1 %v6966_v43 }
 0x64d   :  { %v6976_v11 = vpop.f32.mrb[28].mxu1 }
 0x64e   :  { %2079 = vmax.xlane.f32.xlu0 %v6963_v10  ;;  %v6979_v12 = vpop.f32.mrb[29].mxu1 }
 0x64f   :  { %v6981_v41 = vpop.f32.mrb[30].mxu1  ;;  %v6983_v44 = vpop.f32.mrb[36].mxu0 }
 0x650   :  { %2081 = vmax.xlane.f32.xlu1 %v6970_v37  ;;  %v6986_v47 = vpop.f32.mrb[31].mxu1  ;;  %v6988_v50 = vpop.f32.mrb[37].mxu0 }
 0x651   :  { %v6990_v54 = vpop.f32.mrb[38].mxu0 }
 0x652   :  { %2075 = vmax.xlane.f32.xlu0 %v6968_v45  ;;  %v6993_v55 = vpop.f32.mrb[39].mxu0 }
 0x654   :  { %2077 = vmax.xlane.f32.xlu1 %v6973_v39 }
 0x655   :  { %v6996_v57 = vpop.f32.mrb[32].mxu1 }
 0x656   :  { %2055 = vmax.xlane.f32.xlu0 %v6976_v11  ;;  %v6999_v15 = vpop.f32.mrb[33].mxu1 }
 0x657   :  { %v7001_v16 = vpop.f32.mrb[34].mxu1  ;;  %v7003_v58 = vpop.f32.mrb[40].mxu0 }
 0x658   :  { %2057 = vmax.xlane.f32.xlu1 %v6981_v41  ;;  %v7006_v24 = vpop.f32.mrb[35].mxu1  ;;  %v7008_v59 = vpop.f32.mrb[41].mxu0 }
 0x659   :  { %v7010_v60 = vpop.f32.mrb[42].mxu0 }
 0x65a   :  { %2051 = vmax.xlane.f32.xlu0 %v6979_v12  ;;  %v7013_v61 = vpop.f32.mrb[43].mxu0 }
 0x65c   :  { %2053 = vmax.xlane.f32.xlu1 %v6986_v47 }
 0x65d   :  { %v7016_v62 = vpop.f32.mrb[36].mxu1 }
 0x65e   :  { %2087 = vmax.xlane.f32.xlu0 %v6983_v44  ;;  %v7019_v63 = vpop.f32.mrb[37].mxu1 }
 0x65f   :  { %v7021_v0 = vpop.f32.mrb[38].mxu1  ;;  %v7023_v2 = vpop.f32.mrb[44].mxu0 }
 0x660   :  { %2089 = vmax.xlane.f32.xlu1 %v6990_v54  ;;  %v7026_v6 = vpop.f32.mrb[39].mxu1  ;;  %v7028_v8 = vpop.f32.mrb[45].mxu0 }
 0x661   :  { %v7030_v13 = vpop.f32.mrb[46].mxu0 }
 0x662   :  { %2083 = vmax.xlane.f32.xlu0 %v6988_v50  ;;  %v7033_v23 = vpop.f32.mrb[47].mxu0 }
 0x664   :  { %2085 = vmax.xlane.f32.xlu1 %v6993_v55 }
 0x665   :  { %v7036_v26 = vpop.f32.mrb[40].mxu1 }
 0x666   :  { %8955 = vst [vmem:[#allocation30_spill] sm:$0xff] %v7036_v26  ;;  %2063 = vmax.xlane.f32.xlu0 %v6996_v57  ;;  %v7039_v27 = vpop.f32.mrb[41].mxu1 }
 0x667   :  { %v7041_v29 = vpop.f32.mrb[42].mxu1  ;;  %v7043_v32 = vpop.f32.mrb[48].mxu0 }
 0x668   :  { %8956 = vst [vmem:[#allocation31_spill] sm:$0xff] %v7041_v29  ;;  %8957 = vst [vmem:[#allocation32_spill] sm:$0xff] %v7043_v32  ;;  %2065 = vmax.xlane.f32.xlu1 %v7001_v16  ;;  %v7046_v33 = vpop.f32.mrb[43].mxu1  ;;  %v7048_v34 = vpop.f32.mrb[49].mxu0 }
 0x669   :  { %8958 = vst [vmem:[#allocation33_spill] sm:$0xff] %v7046_v33  ;;  %8959 = vst [vmem:[#allocation34_spill] sm:$0xff] %v7048_v34  ;;  %v7050_v21 = vpop.f32.mrb[50].mxu0 }
 0x66a   :  { %8960 = vst [vmem:[#allocation35_spill] sm:$0xff] %v7050_v21  ;;  %2059 = vmax.xlane.f32.xlu0 %v6999_v15  ;;  %v7053_v19 = vpop.f32.mrb[51].mxu0 }
 0x66b   :  { %8961 = vst [vmem:[#allocation36_spill] sm:$0xff] %v7053_v19 }
 0x66c   :  { %2061 = vmax.xlane.f32.xlu1 %v7006_v24 }
 0x66d   :  { %v7058_v25 = vpop.f32.mrb[44].mxu1 }
 0x66e   :  { %8962 = vst [vmem:[#allocation37_spill] sm:$0xff] %v7058_v25  ;;  %2095 = vmax.xlane.f32.xlu0 %v7003_v58  ;;  %v7061_v7 = vpop.f32.mrb[45].mxu1 }
 0x66f   :  { %8963 = vst [vmem:[#allocation38_spill] sm:$0xff] %v7061_v7  ;;  %v7063_v52 = vpop.f32.mrb[46].mxu1  ;;  %v7065_v53 = vpop.f32.mrb[52].mxu0 }
 0x670   :  { %8964 = vst [vmem:[#allocation39_spill] sm:$0xff] %v7063_v52  ;;  %8965 = vst [vmem:[#allocation40_spill] sm:$0xff] %v7065_v53  ;;  %2097 = vmax.xlane.f32.xlu1 %v7010_v60  ;;  %v7068_v49 = vpop.f32.mrb[47].mxu1  ;;  %v7070_v51 = vpop.f32.mrb[53].mxu0 }
 0x671   :  { %8966 = vst [vmem:[#allocation41_spill] sm:$0xff] %v7068_v49  ;;  %8967 = vst [vmem:[#allocation42_spill] sm:$0xff] %v7070_v51  ;;  %v7072_v48 = vpop.f32.mrb[54].mxu0 }
 0x672   :  { %8968 = vst [vmem:[#allocation43_spill] sm:$0xff] %v7072_v48  ;;  %2091 = vmax.xlane.f32.xlu0 %v7008_v59  ;;  %v7075_v1 = vpop.f32.mrb[55].mxu0 }
 0x673   :  { %8969 = vst [vmem:[#allocation44_spill] sm:$0xff] %v7075_v1 }
 0x674   :  { %2093 = vmax.xlane.f32.xlu1 %v7013_v61 }
 0x675   :  { %v7078_v5 = vpop.f32.mrb[48].mxu1 }
 0x676   :  { %8970 = vst [vmem:[#allocation45_spill] sm:$0xff] %v7078_v5  ;;  %2071 = vmax.xlane.f32.xlu0 %v7016_v62  ;;  %v7081_v17 = vpop.f32.mrb[49].mxu1 }
 0x677   :  { %8971 = vst [vmem:[#allocation46_spill] sm:$0xff] %v7081_v17  ;;  %v7083_v14 = vpop.f32.mrb[50].mxu1  ;;  %v7085_v38 = vpop.f32.mrb[56].mxu0 }
 0x678   :  { %8972 = vst [vmem:[#allocation47_spill] sm:$0xff] %v7083_v14  ;;  %8973 = vst [vmem:[#allocation48_spill] sm:$0xff] %v7085_v38  ;;  %2073 = vmax.xlane.f32.xlu1 %v7021_v0  ;;  %v7088_v36 = vpop.f32.mrb[51].mxu1  ;;  %v7090_v31 = vpop.f32.mrb[57].mxu0 }
 0x679   :  { %8974 = vst [vmem:[#allocation49_spill] sm:$0xff] %v7088_v36  ;;  %8975 = vst [vmem:[#allocation50_spill] sm:$0xff] %v7090_v31  ;;  %v7092_v30 = vpop.f32.mrb[58].mxu0 }
 0x67a   :  { %8976 = vst [vmem:[#allocation51_spill] sm:$0xff] %v7092_v30  ;;  %2067 = vmax.xlane.f32.xlu0 %v7019_v63  ;;  %v7095_v22 = vpop.f32.mrb[59].mxu0 }
 0x67b   :  { %8977 = vst [vmem:[#allocation52_spill] sm:$0xff] %v7095_v22 }
 0x67c   :  { %2069 = vmax.xlane.f32.xlu1 %v7026_v6 }
 0x67d   :  { %v7098_v56 = vpop.f32.mrb[52].mxu1 }
 0x67e   :  { %8978 = vst [vmem:[#allocation53_spill] sm:$0xff] %v7098_v56  ;;  %2103 = vmax.xlane.f32.xlu0 %v7023_v2  ;;  %v7101_v46 = vpop.f32.mrb[53].mxu1 }
 0x67f   :  { %8979 = vst [vmem:[#allocation54_spill] sm:$0xff] %v7101_v46  ;;  %v7103_v42 = vpop.f32.mrb[54].mxu1  ;;  %v7105_v35 = vpop.f32.mrb[60].mxu0 }
 0x680   :  { %8980 = vst [vmem:[#allocation55_spill] sm:$0xff] %v7103_v42  ;;  %8981 = vst [vmem:[#allocation56_spill] sm:$0xff] %v7105_v35  ;;  %2105 = vmax.xlane.f32.xlu1 %v7030_v13  ;;  %v7108_v40 = vpop.f32.mrb[55].mxu1  ;;  %v7110_v4 = vpop.f32.mrb[61].mxu0 }
 0x681   :  { %8982 = vst [vmem:[#allocation57_spill] sm:$0xff] %v7108_v40  ;;  %8983 = vst [vmem:[#allocation58_spill] sm:$0xff] %v7110_v4  ;;  %v7112_v28 = vpop.f32.mrb[62].mxu0 }
 0x682   :  { %8984 = vst [vmem:[#allocation59_spill] sm:$0xff] %v7112_v28  ;;  %2099 = vmax.xlane.f32.xlu0 %v7028_v8  ;;  %v7115_v18 = vpop.f32.mrb[63].mxu0 }
 0x683   :  { %8985 = vst [vmem:[#allocation60_spill] sm:$0xff] %v7115_v18 }
 0x684   :  { %2101 = vmax.xlane.f32.xlu1 %v7033_v23 }
 0x686   :  { %2111 = vmax.xlane.f32.xlu0 %v7036_v26 }
 0x688   :  { %2113 = vmax.xlane.f32.xlu1 %v7041_v29 }
 0x68a   :  { %2107 = vmax.xlane.f32.xlu0 %v7039_v27 }
 0x68c   :  { %2109 = vmax.xlane.f32.xlu1 %v7046_v33 }
 0x68e   :  { %2143 = vmax.xlane.f32.xlu0 %v7043_v32 }
 0x690   :  { %2145 = vmax.xlane.f32.xlu1 %v7050_v21 }
 0x692   :  { %2139 = vmax.xlane.f32.xlu0 %v7048_v34 }
 0x694   :  { %2141 = vmax.xlane.f32.xlu1 %v7053_v19 }
 0x696   :  { %2119 = vmax.xlane.f32.xlu0 %v7058_v25  ;;  %v8986_v25 = vmov 0.0  }
 0x697   :  { %5649 = vmatprep.mubr.msk.bf16.mxu1 %vm6552_vm5, %v8986_v25  ;;  %5669 = vmatprep.mubr.msk.bf16.mxu0 %vm6552_vm5, %v8986_v25 }
 0x698   :  { %2121 = vmax.xlane.f32.xlu1 %v7063_v52 }
 0x69a   :  { %2115 = vmax.xlane.f32.xlu0 %v7061_v7 }
 0x69c   :  { %2117 = vmax.xlane.f32.xlu1 %v7068_v49 }
 0x69e   :  { %2151 = vmax.xlane.f32.xlu0 %v7065_v53 }
 0x6a0   :  { %2153 = vmax.xlane.f32.xlu1 %v7072_v48 }
 0x6a2   :  { %2147 = vmax.xlane.f32.xlu0 %v7070_v51 }
 0x6a4   :  { %2149 = vmax.xlane.f32.xlu1 %v7075_v1 }
 0x6a6   :  { %2127 = vmax.xlane.f32.xlu0 %v7078_v5 }
 0x6a8   :  { %2129 = vmax.xlane.f32.xlu1 %v7083_v14 }
 0x6aa   :  { %2123 = vmax.xlane.f32.xlu0 %v7081_v17 }
 0x6ac   :  { %2125 = vmax.xlane.f32.xlu1 %v7088_v36 }
 0x6ae   :  { %2159 = vmax.xlane.f32.xlu0 %v7085_v38 }
 0x6b0   :  { %2161 = vmax.xlane.f32.xlu1 %v7092_v30 }
 0x6b2   :  { %2155 = vmax.xlane.f32.xlu0 %v7090_v31 }
 0x6b4   :  { %2157 = vmax.xlane.f32.xlu1 %v7095_v22 }
 0x6b6   :  { %2135 = vmax.xlane.f32.xlu0 %v7098_v56 }
 0x6b8   :  { %2137 = vmax.xlane.f32.xlu1 %v7103_v42 }
 0x6ba   :  { %2131 = vmax.xlane.f32.xlu0 %v7101_v46 }
 0x6bc   :  { %2133 = vmax.xlane.f32.xlu1 %v7108_v40 }
 0x6be   :  { %2167 = vmax.xlane.f32.xlu0 %v7105_v35 }
 0x6c0   :  { %2169 = vmax.xlane.f32.xlu1 %v7112_v28 }
 0x6c2   :  { %2163 = vmax.xlane.f32.xlu0 %v7110_v4  ;;  %v7153_v38 = vpop.f32.mrb[56].mxu1 }
 0x6c3   :  { %8987 = vst [vmem:[#allocation61_spill] sm:$0xff] %v7153_v38  ;;  %v7155_v30 = vpop.f32.mrb[57].mxu1 }
 0x6c4   :  { %8988 = vst [vmem:[#allocation62_spill] sm:$0xff] %v7155_v30  ;;  %2165 = vmax.xlane.f32.xlu1 %v7115_v18  ;;  %v7158_v22 = vpop.f32.mrb[58].mxu1  ;;  %v7160_v56 = vpop.f32.mrb[64].mxu0 }
 0x6c5   :  { %8989 = vst [vmem:[#allocation63_spill] sm:$0xff] %v7158_v22  ;;  %8990 = vst [vmem:[#allocation64_spill] sm:$0xff] %v7160_v56  ;;  %v7162_v42 = vpop.f32.mrb[59].mxu1  ;;  %v7164_v46 = vpop.f32.mrb[65].mxu0 }
 0x6c6   :  { %8991 = vst [vmem:[#allocation65_spill] sm:$0xff] %v7162_v42  ;;  %8992 = vst [vmem:[#allocation66_spill] sm:$0xff] %v7164_v46  ;;  %2175 = vmax.xlane.f32.xlu0 %v7153_v38  ;;  %v7167_v35 = vpop.f32.mrb[66].mxu0 }
 0x6c7   :  { %8993 = vst [vmem:[#allocation67_spill] sm:$0xff] %v7167_v35  ;;  %v7169_v28 = vpop.f32.mrb[67].mxu0 }
 0x6c8   :  { %8994 = vst [vmem:[#allocation68_spill] sm:$0xff] %v7169_v28  ;;  %2177 = vmax.xlane.f32.xlu1 %v7158_v22 }
 0x6ca   :  { %2171 = vmax.xlane.f32.xlu0 %v7155_v30  ;;  %v7173_v4 = vpop.f32.mrb[60].mxu1 }
 0x6cb   :  { %8995 = vst [vmem:[#allocation69_spill] sm:$0xff] %v7173_v4  ;;  %v7175_v18 = vpop.f32.mrb[61].mxu1 }
 0x6cc   :  { %8996 = vst [vmem:[#allocation70_spill] sm:$0xff] %v7175_v18  ;;  %2173 = vmax.xlane.f32.xlu1 %v7162_v42  ;;  %v7178_v40 = vpop.f32.mrb[62].mxu1  ;;  %v7180_v31 = vpop.f32.mrb[68].mxu0 }
 0x6cd   :  { %8997 = vst [vmem:[#allocation71_spill] sm:$0xff] %v7178_v40  ;;  %8998 = vst [vmem:[#allocation72_spill] sm:$0xff] %v7180_v31  ;;  %v7182_v14 = vpop.f32.mrb[63].mxu1  ;;  %v7184_v38 = vpop.f32.mrb[69].mxu0 }
 0x6ce   :  { %8999 = vst [vmem:[#allocation73_spill] sm:$0xff] %v7182_v14  ;;  %9000 = vst [vmem:[#allocation74_spill] sm:$0xff] %v7184_v38  ;;  %2207 = vmax.xlane.f32.xlu0 %v7160_v56  ;;  %v7187_v5 = vpop.f32.mrb[70].mxu0 }
 0x6cf   :  { %9001 = vst [vmem:[#allocation75_spill] sm:$0xff] %v7187_v5  ;;  %v7189_v22 = vpop.f32.mrb[71].mxu0 }
 0x6d0   :  { %9002 = vst [vmem:[#allocation76_spill] sm:$0xff] %v7189_v22  ;;  %2209 = vmax.xlane.f32.xlu1 %v7167_v35 }
 0x6d2   :  { %2203 = vmax.xlane.f32.xlu0 %v7164_v46  ;;  %v7193_v30 = vpop.f32.mrb[64].mxu1 }
 0x6d3   :  { %9003 = vst [vmem:[#allocation77_spill] sm:$0xff] %v7193_v30  ;;  %v2048_v42 = vpop.xlane.xlu0 %2047  ;;  %v7195_v36 = vpop.f32.mrb[65].mxu1 }
 0x6d4   :  { %9004 = vst [vmem:[#allocation78_spill] sm:$0xff] %v7195_v36  ;;  %2205 = vmax.xlane.f32.xlu1 %v7169_v28  ;;  %v7198_v17 = vpop.f32.mrb[66].mxu1  ;;  %v7200_v48 = vpop.f32.mrb[72].mxu0 }
 0x6d5   :  { %9005 = vst [vmem:[#allocation79_spill] sm:$0xff] %v7198_v17  ;;  %9006 = vst [vmem:[#allocation80_spill] sm:$0xff] %v7200_v48  ;;  %v2050_v56 = vpop.xlane.xlu1 %2049  ;;  %v7202_v53 = vpop.f32.mrb[67].mxu1 }
 0x6d6   :  { %9007 = vst [vmem:[#allocation81_spill] sm:$0xff] %v7202_v53  ;;  %2183 = vmax.xlane.f32.xlu0 %v7173_v4  ;;  %v7205_v1 = vpop.f32.mrb[73].mxu0  ;;  %v2301_v4 = vsub.f32 %v6956_v3, %v2048_v42  ;;  %v2302_v34 = vsub.f32 %v6961_v9, %v2050_v56 }
 0x6d7   :  { %9008 = vst [vmem:[#allocation82_spill] sm:$0xff] %v7205_v1  ;;  %v2044_v35 = vpop.xlane.xlu0 %2043  ;;  %v7207_v46 = vpop.f32.mrb[74].mxu0 }
 0x6d8   :  { %9009 = vst [vmem:[#allocation83_spill] sm:$0xff] %v7207_v46  ;;  %v2299_v51 = vsub.f32 %v6959_v20, %v2044_v35  ;;  %2185 = vmax.xlane.f32.xlu1 %v7178_v40  ;;  %v7211_v52 = vpop.f32.mrb[75].mxu0  ;;  %v2431_v3 = vmul.f32 1.442695, %v2301_v4 }
 0x6d9   :  { %9010 = vst [vmem:[#allocation84_spill] sm:$0xff] %v7211_v52  ;;  %v2046_v28 = vpop.xlane.xlu1 %2045 }
 0x6da   :  { %v2427_v49 = vmul.f32 1.442695, %v2299_v51  ;;  %v2300_v7 = vsub.f32 %v6966_v43, %v2046_v28  ;;  %2179 = vmax.xlane.f32.xlu0 %v7175_v18  ;;  %v7215_v21 = vpop.f32.mrb[68].mxu1 }
 0x6db   :  { %9011 = vst [vmem:[#allocation85_spill] sm:$0xff] %v7215_v21  ;;  %v2080_v32 = vpop.xlane.xlu0 %2079  ;;  %v7218_v19 = vpop.f32.mrb[69].mxu1 }
 0x6dc   :  { %9012 = vst [vmem:[#allocation86_spill] sm:$0xff] %v7218_v19  ;;  %v2429_v35 = vmul.f32 1.442695, %v2300_v7  ;;  %2181 = vmax.xlane.f32.xlu1 %v7182_v14  ;;  %v7222_v20 = vpop.f32.mrb[70].mxu1  ;;  %v7224_v40 = vpop.f32.mrb[76].mxu0  ;;  %5970 = vpow2.f32 %v2427_v49  ;;  %v2317_v4 = vsub.f32 %v6963_v10, %v2080_v32 }
 0x6dd   :  { %9013 = vst [vmem:[#allocation87_spill] sm:$0xff] %v7222_v20  ;;  %9014 = vst [vmem:[#allocation88_spill] sm:$0xff] %v7224_v40  ;;  %v2082_v51 = vpop.xlane.xlu1 %2081  ;;  %v7226_v28 = vpop.f32.mrb[71].mxu1  ;;  %v2433_v7 = vmul.f32 1.442695, %v2302_v34 }
 0x6de   :  { %9015 = vst [vmem:[#allocation89_spill] sm:$0xff] %v7226_v28  ;;  %5972 = vpow2.f32 %v2429_v35  ;;  %2215 = vmax.xlane.f32.xlu0 %v7180_v31  ;;  %v7229_v42 = vpop.f32.mrb[77].mxu0 }
 0x6df   :  { %v2076_v43 = vpop.xlane.xlu0 %2075  ;;  %v7231_v18 = vpop.f32.mrb[78].mxu0  ;;  %5974 = vpow2.f32 %v2431_v3  ;;  %v2463_v3 = vmul.f32 1.442695, %v2317_v4 }
 0x6e0   :  { %9016 = vst [vmem:[#allocation90_spill] sm:$0xff] %v7231_v18  ;;  %v2315_v56 = vsub.f32 %v6968_v45, %v2076_v43  ;;  %2217 = vmax.xlane.f32.xlu1 %v7187_v5  ;;  %v7235_v9 = vpop.f32.mrb[79].mxu0  ;;  %5976 = vpow2.f32 %v2433_v7  ;;  %v2318_v45 = vsub.f32 %v6970_v37, %v2082_v51 }
 0x6e1   :  { %v2078_v49 = vpop.xlane.xlu1 %2077 }
 0x6e2   :  { %v2459_v14 = vmul.f32 1.442695, %v2315_v56  ;;  %v2316_v29 = vsub.f32 %v6973_v39, %v2078_v49  ;;  %2211 = vmax.xlane.f32.xlu0 %v7184_v38  ;;  %v7239_v35 = vpop.f32.mrb[72].mxu1  ;;  %v2465_v7 = vmul.f32 1.442695, %v2318_v45 }
 0x6e3   :  { %v2056_v31 = vpop.xlane.xlu0 %2055  ;;  %v7242_v26 = vpop.f32.mrb[73].mxu1 }
 0x6e4   :  { %v2461_v34 = vmul.f32 1.442695, %v2316_v29  ;;  %2213 = vmax.xlane.f32.xlu1 %v7189_v22  ;;  %v7246_v43 = vpop.f32.mrb[74].mxu1  ;;  %v7248_v56 = vpop.f32.mrb[80].mxu0  ;;  %5978 = vpow2.f32 %v2459_v14  ;;  %v2305_v45 = vsub.f32 %v6976_v11, %v2056_v31 }
 0x6e5   :  { %9017 = vst [vmem:[#allocation91_spill] sm:$0xff] %v7248_v56  ;;  %v2058_v39 = vpop.xlane.xlu1 %2057  ;;  %v7250_v49 = vpop.f32.mrb[75].mxu1 }
 0x6e6   :  { %5980 = vpow2.f32 %v2461_v34  ;;  %2191 = vmax.xlane.f32.xlu0 %v7193_v30  ;;  %v7253_v10 = vpop.f32.mrb[81].mxu0  ;;  %v7255_v32 = vpop.eup %5970 }
 0x6e7   :  { %9018 = vst [vmem:[#allocation92_spill] sm:$0xff] %v7253_v10  ;;  %9019 = vst [vmem:[#allocation93_spill] sm:$0xff] %v7255_v32  ;;  %v2052_v37 = vpop.xlane.xlu0 %2051  ;;  %v7257_v29 = vpop.f32.mrb[82].mxu0  ;;  %5982 = vpow2.f32 %v2463_v3 }
 0x6e8   :  { %9020 = vst [vmem:[#allocation94_spill] sm:$0xff] %v7257_v29  ;;  %v7259_v51 = vpop.eup %5972  ;;  %v2303_v5 = vsub.f32 %v6979_v12, %v2052_v37  ;;  %2193 = vmax.xlane.f32.xlu1 %v7198_v17  ;;  %v7263_v14 = vpop.f32.mrb[83].mxu0  ;;  %5984 = vpow2.f32 %v2465_v7  ;;  %v2306_v17 = vsub.f32 %v6981_v41, %v2058_v39  ;;  %v2439_v39 = vmul.f32 1.442695, %v2305_v45 }
 0x6e9   :  { %9021 = vst [vmem:[#allocation95_spill] sm:$0xff] %v7259_v51  ;;  %9022 = vst [vmem:[#allocation96_spill] sm:$0xff] %v7263_v14  ;;  %v2054_v34 = vpop.xlane.xlu1 %2053  ;;  %v2939_v30 = vpack.c.bf16 %v7259_v51, %v7255_v32 }
 0x6ea   :  { %v2435_v22 = vmul.f32 1.442695, %v2303_v5  ;;  %v2304_v38 = vsub.f32 %v6986_v47, %v2054_v34  ;;  %2187 = vmax.xlane.f32.xlu0 %v7195_v36  ;;  %v7269_v4 = vpop.f32.mrb[76].mxu1  ;;  %v7281_v34 = vpop.eup %5974  ;;  %v2441_v36 = vmul.f32 1.442695, %v2306_v17 }
 0x6eb   :  { %9023 = vst [vmem:[#allocation97_spill] sm:$0xff] %v7269_v4  ;;  %5634 = vmatpush3.bf16.xpose.msra.mxu1 %v2939_v30  ;;  %v2088_v12 = vpop.xlane.xlu0 %2087  ;;  %v7272_v37 = vpop.f32.mrb[77].mxu1  ;;  %9027 = vst [vmem:[#allocation101_spill] sm:$0xff] %v7281_v34 }
 0x6ec   :  { %9024 = vst [vmem:[#allocation98_spill] sm:$0xff] %v7272_v37  ;;  %v2437_v33 = vmul.f32 1.442695, %v2304_v38  ;;  %2189 = vmax.xlane.f32.xlu1 %v7202_v53  ;;  %5635 = vmatprep.subr.bf16.mxu1 %v8986_v25  ;;  %v7277_v5 = vpop.f32.mrb[78].mxu1  ;;  %v7279_v47 = vpop.f32.mrb[84].mxu0  ;;  %5986 = vpow2.f32 %v2435_v22  ;;  %v2321_v17 = vsub.f32 %v6983_v44, %v2088_v12 }
 0x6ed   :  { %9025 = vst [vmem:[#allocation99_spill] sm:$0xff] %v7277_v5  ;;  %9026 = vst [vmem:[#allocation100_spill] sm:$0xff] %v7279_v47  ;;  %v2090_v31 = vpop.xlane.xlu1 %2089  ;;  %v7283_v30 = vpop.f32.mrb[79].mxu1 }
 0x6ee   :  { %9028 = vst [vmem:[#allocation102_spill] sm:$0xff] %v7283_v30  ;;  %v7285_v11 = vpop.eup %5976  ;;  %5988 = vpow2.f32 %v2437_v33  ;;  %2223 = vmax.xlane.f32.xlu0 %v7200_v48  ;;  %v7288_v38 = vpop.f32.mrb[85].mxu0  ;;  %v2471_v12 = vmul.f32 1.442695, %v2321_v17 }
 0x6ef   :  { %9029 = vst [vmem:[#allocation103_spill] sm:$0xff] %v7285_v11  ;;  %9030 = vst [vmem:[#allocation104_spill] sm:$0xff] %v7288_v38  ;;  %v7290_v41 = vpop.eup %5978  ;;  %v2084_v3 = vpop.xlane.xlu0 %2083  ;;  %v2940_v48 = vpack.c.bf16 %v7285_v11, %v7281_v34  ;;  %5990 = vpow2.f32 %v2439_v39 }
 0x6f0   :  { %9031 = vst [vmem:[#allocation105_spill] sm:$0xff] %v7290_v41  ;;  %v7292_v7 = vpop.f32.mrb[86].mxu0  ;;  %v7294_v53 = vpop.eup %5980  ;;  %v2319_v22 = vsub.f32 %v6988_v50, %v2084_v3  ;;  %2225 = vmax.xlane.f32.xlu1 %v7207_v46  ;;  %5992 = vpow2.f32 %v2441_v36  ;;  %v2322_v46 = vsub.f32 %v6990_v54, %v2090_v31 }
 0x6f1   :  { %9032 = vst [vmem:[#allocation106_spill] sm:$0xff] %v7292_v7  ;;  %9033 = vst [vmem:[#allocation107_spill] sm:$0xff] %v7294_v53  ;;  %v7298_v51 = vpop.f32.mrb[87].mxu0  ;;  %v2086_v33 = vpop.xlane.xlu1 %2085  ;;  %v2947_v32 = vpack.c.bf16 %v7294_v53, %v7290_v41 }
 0x6f2   :  { %9034 = vst [vmem:[#allocation108_spill] sm:$0xff] %v7298_v51  ;;  %v2467_v45 = vmul.f32 1.442695, %v2319_v22  ;;  %v2320_v38 = vsub.f32 %v6993_v55, %v2086_v33  ;;  %2219 = vmax.xlane.f32.xlu0 %v7205_v1  ;;  %v7306_v7 = vpop.f32.mrb[80].mxu1  ;;  %v7318_v39 = vpop.eup %5982 }
 0x6f3   :  { %9035 = vst [vmem:[#allocation109_spill] sm:$0xff] %v7306_v7  ;;  %5636 = vmatpush3.bf16.xpose.msra.mxu1 %v2940_v48  ;;  %5654 = vmatpush3.bf16.xpose.msra.mxu0 %v2947_v32  ;;  %v2064_v50 = vpop.xlane.xlu0 %2063  ;;  %v7309_v3 = vpop.f32.mrb[81].mxu1 }
 0x6f4   :  { %9036 = vst [vmem:[#allocation110_spill] sm:$0xff] %v7309_v3  ;;  %v2469_v11 = vmul.f32 1.442695, %v2320_v38  ;;  %2221 = vmax.xlane.f32.xlu1 %v7211_v52  ;;  %5637 = vmatprep.subr.bf16.mxu1 %v8986_v25  ;;  %v7314_v55 = vpop.f32.mrb[82].mxu1  ;;  %v7316_v22 = vpop.f32.mrb[88].mxu0  ;;  %5994 = vpow2.f32 %v2467_v45 }
 0x6f5   :  { %9037 = vst [vmem:[#allocation111_spill] sm:$0xff] %v7314_v55  ;;  %9038 = vst [vmem:[#allocation112_spill] sm:$0xff] %v7316_v22  ;;  %v2066_v48 = vpop.xlane.xlu1 %2065  ;;  %5655 = vmatprep.subr.bf16.mxu0 %v8986_v25  ;;  %v7321_v44 = vpop.f32.mrb[83].mxu1  ;;  %v2473_v45 = vmul.f32 1.442695, %v2322_v46  ;;  %v2309_v46 = vsub.f32 %v6996_v57, %v2064_v50 }
 0x6f6   :  { %9039 = vst [vmem:[#allocation113_spill] sm:$0xff] %v7321_v44  ;;  %v7323_v36 = vpop.eup %5984  ;;  %5996 = vpow2.f32 %v2469_v11  ;;  %2199 = vmax.xlane.f32.xlu0 %v7215_v21  ;;  %v7326_v54 = vpop.f32.mrb[89].mxu0 }
 0x6f7   :  { %9040 = vst [vmem:[#allocation114_spill] sm:$0xff] %v7323_v36  ;;  %9041 = vst [vmem:[#allocation115_spill] sm:$0xff] %v7326_v54  ;;  %v7328_v32 = vpop.eup %5986  ;;  %v2060_v31 = vpop.xlane.xlu0 %2059  ;;  %v2948_v53 = vpack.c.bf16 %v7323_v36, %v7318_v39  ;;  %5998 = vpow2.f32 %v2471_v12  ;;  %v2447_v50 = vmul.f32 1.442695, %v2309_v46 }
 0x6f8   :  { %9042 = vst [vmem:[#allocation116_spill] sm:$0xff] %v7328_v32  ;;  %v7330_v38 = vpop.f32.mrb[90].mxu0  ;;  %v7332_v33 = vpop.eup %5988  ;;  %v2307_v52 = vsub.f32 %v6999_v15, %v2060_v31  ;;  %2201 = vmax.xlane.f32.xlu1 %v7222_v20  ;;  %6000 = vpow2.f32 %v2473_v45  ;;  %v2310_v20 = vsub.f32 %v7001_v16, %v2066_v48 }
 0x6f9   :  { %9043 = vst [vmem:[#allocation117_spill] sm:$0xff] %v7330_v38  ;;  %9044 = vst [vmem:[#allocation118_spill] sm:$0xff] %v7332_v33  ;;  %v7336_v1 = vpop.f32.mrb[91].mxu0  ;;  %v2062_v11 = vpop.xlane.xlu1 %2061  ;;  %v2941_v21 = vpack.c.bf16 %v7332_v33, %v7328_v32 }
 0x6fa   :  { %9045 = vst [vmem:[#allocation119_spill] sm:$0xff] %v7336_v1  ;;  %v2443_v17 = vmul.f32 1.442695, %v2307_v52  ;;  %v2308_v41 = vsub.f32 %v7006_v24, %v2062_v11  ;;  %2195 = vmax.xlane.f32.xlu0 %v7218_v19  ;;  %v7344_v34 = vpop.f32.mrb[84].mxu1  ;;  %v7356_v12 = vpop.eup %5990 }
 0x6fb   :  { %9046 = vst [vmem:[#allocation120_spill] sm:$0xff] %v7344_v34  ;;  %5638 = vmatpush3.bf16.xpose.msra.mxu1 %v2941_v21  ;;  %5656 = vmatpush3.bf16.xpose.msra.mxu0 %v2948_v53  ;;  %v2096_v15 = vpop.xlane.xlu0 %2095  ;;  %v7347_v31 = vpop.f32.mrb[85].mxu1 }
 0x6fc   :  { %9047 = vst [vmem:[#allocation121_spill] sm:$0xff] %v7347_v31  ;;  %v2445_v33 = vmul.f32 1.442695, %v2308_v41  ;;  %2197 = vmax.xlane.f32.xlu1 %v7226_v28  ;;  %5639 = vmatprep.subr.bf16.mxu1 %v8986_v25  ;;  %v7352_v52 = vpop.f32.mrb[86].mxu1  ;;  %v7354_v24 = vpop.f32.mrb[92].mxu0  ;;  %6002 = vpow2.f32 %v2443_v17 }
 0x6fd   :  { %9048 = vst [vmem:[#allocation122_spill] sm:$0xff] %v7352_v52  ;;  %9049 = vst [vmem:[#allocation123_spill] sm:$0xff] %v7354_v24  ;;  %v2098_v21 = vpop.xlane.xlu1 %2097  ;;  %5657 = vmatprep.subr.bf16.mxu0 %v8986_v25  ;;  %v7359_v53 = vpop.f32.mrb[87].mxu1  ;;  %v2449_v17 = vmul.f32 1.442695, %v2310_v20  ;;  %v2325_v20 = vsub.f32 %v7003_v58, %v2096_v15 }
 0x6fe   :  { %9050 = vst [vmem:[#allocation124_spill] sm:$0xff] %v7359_v53  ;;  %v7361_v57 = vpop.eup %5992  ;;  %6004 = vpow2.f32 %v2445_v33  ;;  %2231 = vmax.xlane.f32.xlu0 %v7224_v40  ;;  %v7364_v16 = vpop.f32.mrb[93].mxu0 }
 0x6ff   :  { %9051 = vst [vmem:[#allocation125_spill] sm:$0xff] %v7364_v16  ;;  %v7366_v41 = vpop.eup %5994  ;;  %v2092_v48 = vpop.xlane.xlu0 %2091  ;;  %v2942_v40 = vpack.c.bf16 %v7361_v57, %v7356_v12  ;;  %6006 = vpow2.f32 %v2447_v50  ;;  %v2479_v58 = vmul.f32 1.442695, %v2325_v20 }
 0x700   :  { %v7368_v45 = vpop.f32.mrb[94].mxu0  ;;  %v7370_v11 = vpop.eup %5996  ;;  %v2323_v28 = vsub.f32 %v7008_v59, %v2092_v48  ;;  %2233 = vmax.xlane.f32.xlu1 %v7231_v18  ;;  %6008 = vpow2.f32 %v2449_v17  ;;  %v2326_v48 = vsub.f32 %v7010_v60, %v2098_v21 }
 0x701   :  { %9052 = vst [vmem:[#allocation126_spill] sm:$0xff] %v7368_v45  ;;  %9053 = vst [vmem:[#allocation127_spill] sm:$0xff] %v7370_v11  ;;  %v7374_v19 = vpop.f32.mrb[95].mxu0  ;;  %v2094_v33 = vpop.xlane.xlu1 %2093  ;;  %v2949_v32 = vpack.c.bf16 %v7370_v11, %v7366_v41 }
 0x702   :  { %9054 = vst [vmem:[#allocation128_spill] sm:$0xff] %v7374_v19  ;;  %v2475_v46 = vmul.f32 1.442695, %v2323_v28  ;;  %v2324_v36 = vsub.f32 %v7013_v61, %v2094_v33  ;;  %2227 = vmax.xlane.f32.xlu0 %v7229_v42  ;;  %v7386_v11 = vpop.eup %5998 }
 0x703   :  { %5640 = vmatpush3.bf16.xpose.msra.mxu1 %v2942_v40  ;;  %5658 = vmatpush3.bf16.xpose.msra.mxu0 %v2949_v32  ;;  %v2072_v59 = vpop.xlane.xlu0 %2071  ;;  %v7389_v28 = vpop.eup %6000  ;;  %v2481_v32 = vmul.f32 1.442695, %v2326_v48 }
 0x704   :  { %v2477_v18 = vmul.f32 1.442695, %v2324_v36  ;;  %2229 = vmax.xlane.f32.xlu1 %v7235_v9  ;;  %5641 = vmatprep.subr.bf16.mxu1 %v8986_v25  ;;  %6010 = vpow2.f32 %v2475_v46  ;;  %v2313_v46 = vsub.f32 %v7016_v62, %v2072_v59 }
 0x705   :  { %v2074_v61 = vpop.xlane.xlu1 %2073  ;;  %5659 = vmatprep.subr.bf16.mxu0 %v8986_v25 }
 0x706   :  { %6012 = vpow2.f32 %v2477_v18  ;;  %2239 = vmax.xlane.f32.xlu0 %v7239_v35  ;;  %v7392_v40 = vpop.eup %6002  ;;  %v2950_v18 = vpack.c.bf16 %v7389_v28, %v7386_v11  ;;  %v2314_v20 = vsub.f32 %v7021_v0, %v2074_v61  ;;  %v2455_v59 = vmul.f32 1.442695, %v2313_v46 }
 0x707   :  { %v2068_v60 = vpop.xlane.xlu0 %2067  ;;  %6014 = vpow2.f32 %v2479_v58 }
 0x708   :  { %v7394_v36 = vpop.eup %6004  ;;  %v2311_v15 = vsub.f32 %v7019_v63, %v2068_v60  ;;  %2241 = vmax.xlane.f32.xlu1 %v7246_v43  ;;  %6016 = vpow2.f32 %v2481_v32  ;;  %v2457_v32 = vmul.f32 1.442695, %v2314_v20 }
 0x709   :  { %v2070_v21 = vpop.xlane.xlu1 %2069  ;;  %v2943_v50 = vpack.c.bf16 %v7394_v36, %v7392_v40  ;;  %v7408_v60 = vpop.eup %6006 }
 0x70a   :  { %v2451_v17 = vmul.f32 1.442695, %v2311_v15  ;;  %v2312_v33 = vsub.f32 %v7026_v6, %v2070_v21  ;;  %2235 = vmax.xlane.f32.xlu0 %v7242_v26  ;;  %v7411_v58 = vpop.eup %6008 }
 0x70b   :  { %5642 = vmatpush3.bf16.xpose.msra.mxu1 %v2943_v50  ;;  %5660 = vmatpush3.bf16.xpose.msra.mxu0 %v2950_v18  ;;  %v2104_v63 = vpop.xlane.xlu0 %2103  ;;  %v2944_v50 = vpack.c.bf16 %v7411_v58, %v7408_v60 }
 0x70c   :  { %v2453_v48 = vmul.f32 1.442695, %v2312_v33  ;;  %2237 = vmax.xlane.f32.xlu1 %v7250_v49  ;;  %5643 = vmatprep.subr.bf16.mxu1 %v8986_v25  ;;  %6018 = vpow2.f32 %v2451_v17  ;;  %v2329_v46 = vsub.f32 %v7023_v2, %v2104_v63 }
 0x70d   :  { %v2106_v6 = vpop.xlane.xlu1 %2105  ;;  %5661 = vmatprep.subr.bf16.mxu0 %v8986_v25 }
 0x70e   :  { %6020 = vpow2.f32 %v2453_v48  ;;  %2271 = vmax.xlane.f32.xlu0 %v7248_v56  ;;  %v7414_v62 = vpop.eup %6010  ;;  %v2330_v20 = vsub.f32 %v7030_v13, %v2106_v6  ;;  %v2487_v63 = vmul.f32 1.442695, %v2329_v46  ;;  %v9056_v46 = vld [vmem:[#allocation30_spill] sm:$0xff] }
 0x70f   :  { %v2100_v0 = vpop.xlane.xlu0 %2099  ;;  %6022 = vpow2.f32 %v2455_v59 }
 0x710   :  { %v7416_v61 = vpop.eup %6012  ;;  %v2327_v15 = vsub.f32 %v7028_v8, %v2100_v0  ;;  %2273 = vmax.xlane.f32.xlu1 %v7257_v29  ;;  %6024 = vpow2.f32 %v2457_v32  ;;  %v2489_v32 = vmul.f32 1.442695, %v2330_v20  ;;  %v9057_v20 = vld [vmem:[#allocation31_spill] sm:$0xff] }
 0x711   :  { %v2102_v21 = vpop.xlane.xlu1 %2101  ;;  %v2951_v18 = vpack.c.bf16 %v7416_v61, %v7414_v62  ;;  %v7430_v0 = vpop.eup %6014 }
 0x712   :  { %v2483_v17 = vmul.f32 1.442695, %v2327_v15  ;;  %v2328_v33 = vsub.f32 %v7033_v23, %v2102_v21  ;;  %2267 = vmax.xlane.f32.xlu0 %v7253_v10  ;;  %v7433_v59 = vpop.eup %6016  ;;  %v9102_v10 = vld [vmem:[#allocation107_spill] sm:$0xff] }
 0x713   :  { %5644 = vmatpush3.bf16.xpose.msra.mxu1 %v2944_v50  ;;  %5662 = vmatpush3.bf16.xpose.msra.mxu0 %v2951_v18  ;;  %v2112_v8 = vpop.xlane.xlu0 %2111  ;;  %v2952_v18 = vpack.c.bf16 %v7433_v59, %v7430_v0 }
 0x714   :  { %v2485_v48 = vmul.f32 1.442695, %v2328_v33  ;;  %2269 = vmax.xlane.f32.xlu1 %v7263_v14  ;;  %5645 = vmatprep.subr.bf16.mxu1 %v8986_v25  ;;  %6026 = vpow2.f32 %v2483_v17  ;;  %v9055_v33 = vld [vmem:[#allocation33_spill] sm:$0xff] }
 0x715   :  { %v2114_v23 = vpop.xlane.xlu1 %2113  ;;  %5663 = vmatprep.subr.bf16.mxu0 %v8986_v25 }
 0x716   :  { %6028 = vpow2.f32 %v2485_v48  ;;  %2247 = vmax.xlane.f32.xlu0 %v7269_v4  ;;  %v7436_v2 = vpop.eup %6018  ;;  %v2333_v4 = vsub.f32 %v9056_v46, %v2112_v8 }
 0x717   :  { %v2108_v13 = vpop.xlane.xlu0 %2107  ;;  %6030 = vpow2.f32 %v2487_v63 }
 0x718   :  { %v7438_v6 = vpop.eup %6020  ;;  %v2331_v15 = vsub.f32 %v7039_v27, %v2108_v13  ;;  %2249 = vmax.xlane.f32.xlu1 %v7277_v5  ;;  %6032 = vpow2.f32 %v2489_v32  ;;  %v2334_v13 = vsub.f32 %v9057_v20, %v2114_v23  ;;  %v2495_v32 = vmul.f32 1.442695, %v2333_v4  ;;  %v9062_v4 = vld [vmem:[#allocation32_spill] sm:$0xff] }
 0x719   :  { %v2110_v21 = vpop.xlane.xlu1 %2109  ;;  %v2945_v50 = vpack.c.bf16 %v7438_v6, %v7436_v2  ;;  %v7452_v29 = vpop.eup %6022 }
 0x71a   :  { %v2491_v17 = vmul.f32 1.442695, %v2331_v15  ;;  %v2332_v48 = vsub.f32 %v9055_v33, %v2110_v21  ;;  %2243 = vmax.xlane.f32.xlu0 %v7272_v37  ;;  %v7455_v63 = vpop.eup %6024  ;;  %v9061_v37 = vld [vmem:[#allocation104_spill] sm:$0xff] }
 0x71b   :  { %5646 = vmatpush3.bf16.xpose.msra.mxu1 %v2945_v50  ;;  %5664 = vmatpush3.bf16.xpose.msra.mxu0 %v2952_v18  ;;  %v2144_v27 = vpop.xlane.xlu0 %2143  ;;  %v2497_v50 = vmul.f32 1.442695, %v2334_v13  ;;  %v9058_v18 = vld [vmem:[#allocation34_spill] sm:$0xff]  ;;  %v2946_v46 = vpack.c.bf16 %v7455_v63, %v7452_v29 }
 0x71c   :  { %v2493_v5 = vmul.f32 1.442695, %v2332_v48  ;;  %2245 = vmax.xlane.f32.xlu1 %v7283_v30  ;;  %5647 = vmatprep.subr.bf16.mxu1 %v8986_v25  ;;  %6034 = vpow2.f32 %v2491_v17  ;;  %v9059_v48 = vld [vmem:[#allocation106_spill] sm:$0xff]  ;;  %v2349_v56 = vsub.f32 %v9062_v4, %v2144_v27 }
 0x71d   :  { %v2146_v15 = vpop.xlane.xlu1 %2145  ;;  %5665 = vmatprep.subr.bf16.mxu0 %v8986_v25 }
 0x71e   :  { %6036 = vpow2.f32 %v2493_v5  ;;  %2279 = vmax.xlane.f32.xlu0 %v7279_v47  ;;  %v7458_v8 = vpop.eup %6026  ;;  %v9060_v47 = vld [vmem:[#allocation36_spill] sm:$0xff] }
 0x71f   :  { %v2140_v23 = vpop.xlane.xlu0 %2139  ;;  %6038 = vpow2.f32 %v2495_v32 }
 0x720   :  { %v7460_v21 = vpop.eup %6028  ;;  %v2347_v33 = vsub.f32 %v9058_v18, %v2140_v23  ;;  %2281 = vmax.xlane.f32.xlu1 %v9059_v48  ;;  %6040 = vpow2.f32 %v2497_v50  ;;  %v9063_v23 = vld [vmem:[#allocation35_spill] sm:$0xff]  ;;  %v2527_v50 = vmul.f32 1.442695, %v2349_v56  ;;  %v9066_v56 = vld [vmem:[#allocation41_spill] sm:$0xff] }
 0x721   :  { %v2142_v17 = vpop.xlane.xlu1 %2141  ;;  %v2953_v5 = vpack.c.bf16 %v7460_v21, %v7458_v8  ;;  %v2350_v18 = vsub.f32 %v9063_v23, %v2146_v15  ;;  %v7474_v14 = vpop.eup %6030 }
 0x722   :  { %v2523_v20 = vmul.f32 1.442695, %v2347_v33  ;;  %v2348_v30 = vsub.f32 %v9060_v47, %v2142_v17  ;;  %2275 = vmax.xlane.f32.xlu0 %v9061_v37  ;;  %v7477_v32 = vpop.eup %6032  ;;  %v9064_v33 = vld [vmem:[#allocation22_spill] sm:$0xff] }
 0x723   :  { %5648 = vmatpush3.bf16.xpose.msra.mxu1 %v2946_v46  ;;  %5666 = vmatpush3.bf16.xpose.msra.mxu0 %v2953_v5  ;;  %v2120_v13 = vpop.xlane.xlu0 %2119  ;;  %v913_v17 = vpack.c.bf16 %v9064_v33, %v9064_v33  ;;  %v2529_v46 = vmul.f32 1.442695, %v2350_v18  ;;  %v9065_v5 = vld [vmem:[#allocation38_spill] sm:$0xff]  ;;  %v9067_v33 = vld [vmem:[#allocation37_spill] sm:$0xff] }
 0x724   :  { %v2525_v48 = vmul.f32 1.442695, %v2348_v30  ;;  %2277 = vmax.xlane.f32.xlu1 %v7298_v51  ;;  %5667 = vmatprep.subr.bf16.mxu0 %v8986_v25  ;;  %6042 = vpow2.f32 %v2523_v20  ;;  %v2337_v18 = vsub.f32 %v9067_v33, %v2120_v13 }
 0x725   :  { %v2122_v47 = vpop.xlane.xlu1 %2121  ;;  %5673 = vmatprep.subr.bf16.mxu1 %v8986_v25 }
 0x726   :  { %6044 = vpow2.f32 %v2525_v48  ;;  %2255 = vmax.xlane.f32.xlu0 %v7306_v7  ;;  %v7480_v27 = vpop.eup %6034  ;;  %v2954_v48 = vpack.c.bf16 %v7477_v32, %v7474_v14 }
 0x727   :  { %v2116_v15 = vpop.xlane.xlu0 %2115  ;;  %6046 = vpow2.f32 %v2527_v50 }
 0x728   :  { %v7482_v30 = vpop.eup %6036  ;;  %v2335_v20 = vsub.f32 %v9065_v5, %v2116_v15  ;;  %2257 = vmax.xlane.f32.xlu1 %v7314_v55  ;;  %6048 = vpow2.f32 %v2529_v46  ;;  %v9068_v5 = vld [vmem:[#allocation39_spill] sm:$0xff] }
 0x729   :  { %v2118_v4 = vpop.xlane.xlu1 %2117  ;;  %v2955_v23 = vpack.c.bf16 %v7482_v30, %v7480_v27  ;;  %v2338_v55 = vsub.f32 %v9068_v5, %v2122_v47 }
 0x72a   :  { %v2499_v7 = vmul.f32 1.442695, %v2335_v20  ;;  %v2336_v51 = vsub.f32 %v9066_v56, %v2118_v4  ;;  %5650 = vmatmul.mubr.bf16.vlgmr.msra.gmra.mrb[88].mxu1 %v913_v17  ;;  %2251 = vmax.xlane.f32.xlu0 %v7309_v3  ;;  %v7498_v20 = vpop.eup %6038  ;;  %v9069_v4 = vld [vmem:[#allocation23_spill] sm:$0xff] }
 0x72b   :  { %5668 = vmatpush3.bf16.xpose.msra.mxu0 %v2954_v48  ;;  %5674 = vmatpush3.bf16.xpose.msra.mxu1 %v2955_v23  ;;  %v2152_v15 = vpop.xlane.xlu0 %2151  ;;  %v7503_v13 = vpop.eup %6040  ;;  %v2505_v48 = vmul.f32 1.442695, %v2338_v55  ;;  %v9070_v23 = vld [vmem:[#allocation42_spill] sm:$0xff] }
 0x72c   :  { %v2501_v37 = vmul.f32 1.442695, %v2336_v51  ;;  %2253 = vmax.xlane.f32.xlu1 %v7321_v44  ;;  %5675 = vmatprep.subr.bf16.mxu1 %v8986_v25  ;;  %6050 = vpow2.f32 %v2499_v7  ;;  %v2503_v51 = vmul.f32 1.442695, %v2337_v18  ;;  %v914_v7 = vpack.c.bf16 %v9069_v4, %v9069_v4  ;;  %v9071_v18 = vld [vmem:[#allocation44_spill] sm:$0xff] }
 0x72d   :  { %v2154_v17 = vpop.xlane.xlu1 %2153  ;;  %5693 = vmatprep.subr.bf16.mxu0 %v8986_v25  ;;  %5689 = vmatprep.mubr.msk.bf16.mxu1 %vm6552_vm5, %v8986_v25  ;;  %v9072_v4 = vld [vmem:[#allocation40_spill] sm:$0xff] }
 0x72e   :  { %6052 = vpow2.f32 %v2501_v37  ;;  %2287 = vmax.xlane.f32.xlu0 %v7316_v22  ;;  %v7506_v47 = vpop.eup %6042  ;;  %v2956_v37 = vpack.c.bf16 %v7503_v13, %v7498_v20  ;;  %v2353_v55 = vsub.f32 %v9072_v4, %v2152_v15 }
 0x72f   :  { %v2148_v50 = vpop.xlane.xlu0 %2147  ;;  %6054 = vpow2.f32 %v2503_v51 }
 0x730   :  { %v7508_v46 = vpop.eup %6044  ;;  %v2351_v56 = vsub.f32 %v9070_v23, %v2148_v50  ;;  %2289 = vmax.xlane.f32.xlu1 %v7330_v38  ;;  %6056 = vpow2.f32 %v2505_v48  ;;  %v9073_v23 = vld [vmem:[#allocation43_spill] sm:$0xff] }
 0x731   :  { %v2150_v33 = vpop.xlane.xlu1 %2149  ;;  %v2963_v5 = vpack.c.bf16 %v7508_v46, %v7506_v47  ;;  %v2354_v38 = vsub.f32 %v9073_v23, %v2154_v17  ;;  %v9076_v23 = vld [vmem:[#allocation49_spill] sm:$0xff] }
 0x732   :  { %v2531_v22 = vmul.f32 1.442695, %v2351_v56  ;;  %v2352_v44 = vsub.f32 %v9071_v18, %v2150_v33  ;;  %5670 = vmatmul.mubr.bf16.vlgmr.msra.gmra.mrb[96].mxu0 %v914_v7  ;;  %2283 = vmax.xlane.f32.xlu0 %v7326_v54  ;;  %v7524_v56 = vpop.eup %6046 }
 0x733   :  { %5676 = vmatpush3.bf16.xpose.msra.mxu1 %v2956_v37  ;;  %5694 = vmatpush3.bf16.xpose.msra.mxu0 %v2963_v5  ;;  %v2128_v50 = vpop.xlane.xlu0 %2127  ;;  %v7529_v15 = vpop.eup %6048  ;;  %v2537_v33 = vmul.f32 1.442695, %v2354_v38  ;;  %v9075_v37 = vld [vmem:[#allocation46_spill] sm:$0xff] }
 0x734   :  { %v2533_v3 = vmul.f32 1.442695, %v2352_v44  ;;  %2285 = vmax.xlane.f32.xlu1 %v7336_v1  ;;  %5677 = vmatprep.subr.bf16.mxu1 %v8986_v25  ;;  %6058 = vpow2.f32 %v2531_v22  ;;  %v2535_v44 = vmul.f32 1.442695, %v2353_v55  ;;  %v9077_v55 = vld [vmem:[#allocation45_spill] sm:$0xff] }
 0x735   :  { %v2130_v7 = vpop.xlane.xlu1 %2129  ;;  %5695 = vmatprep.subr.bf16.mxu0 %v8986_v25  ;;  %5709 = vmatprep.mubr.msk.bf16.mxu0 %vm6552_vm5, %v8986_v25  ;;  %v2341_v1 = vsub.f32 %v9077_v55, %v2128_v50 }
 0x736   :  { %6060 = vpow2.f32 %v2533_v3  ;;  %2263 = vmax.xlane.f32.xlu0 %v7344_v34  ;;  %v7532_v17 = vpop.eup %6050  ;;  %v2964_v3 = vpack.c.bf16 %v7529_v15, %v7524_v56 }
 0x737   :  { %v2124_v51 = vpop.xlane.xlu0 %2123  ;;  %6062 = vpow2.f32 %v2535_v44 }
 0x738   :  { %v7534_v48 = vpop.eup %6052  ;;  %v2339_v22 = vsub.f32 %v9075_v37, %v2124_v51  ;;  %2265 = vmax.xlane.f32.xlu1 %v7352_v52  ;;  %6064 = vpow2.f32 %v2537_v33  ;;  %v9078_v51 = vld [vmem:[#allocation47_spill] sm:$0xff]  ;;  %v2511_v33 = vmul.f32 1.442695, %v2341_v1  ;;  %v9082_v1 = vld [vmem:[#allocation48_spill] sm:$0xff] }
 0x739   :  { %9074 = vst [vmem:[#allocation33_spill] sm:$0xff] %v7534_v48  ;;  %v2126_v5 = vpop.xlane.xlu1 %2125  ;;  %v2957_v18 = vpack.c.bf16 %v7534_v48, %v7532_v17  ;;  %v2342_v37 = vsub.f32 %v9078_v51, %v2130_v7  ;;  %v7548_v54 = vpop.eup %6054  ;;  %v9081_v51 = vld [vmem:[#allocation52_spill] sm:$0xff]  ;;  %v9093_v48 = vld [vmem:[#allocation95_spill] sm:$0xff] }
 0x73a   :  { %v2507_v4 = vmul.f32 1.442695, %v2339_v22  ;;  %v2340_v34 = vsub.f32 %v9076_v23, %v2126_v5  ;;  %2259 = vmax.xlane.f32.xlu0 %v7347_v31  ;;  %v7551_v44 = vpop.eup %6056 }
 0x73b   :  { %5678 = vmatpush3.bf16.xpose.msra.mxu1 %v2957_v18  ;;  %5696 = vmatpush3.bf16.xpose.msra.mxu0 %v2964_v3  ;;  %v2160_v38 = vpop.xlane.xlu0 %2159  ;;  %v2513_v5 = vmul.f32 1.442695, %v2342_v37  ;;  %v9080_v18 = vld [vmem:[#allocation50_spill] sm:$0xff]  ;;  %v2958_v23 = vpack.c.bf16 %v7551_v44, %v7548_v54 }
 0x73c   :  { %v2509_v52 = vmul.f32 1.442695, %v2340_v34  ;;  %2261 = vmax.xlane.f32.xlu1 %v7359_v53  ;;  %5679 = vmatprep.subr.bf16.mxu1 %v8986_v25  ;;  %6066 = vpow2.f32 %v2507_v4  ;;  %v2357_v53 = vsub.f32 %v9082_v1, %v2160_v38  ;;  %v9085_v38 = vld [vmem:[#allocation101_spill] sm:$0xff] }
 0x73d   :  { %v2162_v22 = vpop.xlane.xlu1 %2161  ;;  %5697 = vmatprep.subr.bf16.mxu0 %v8986_v25 }
 0x73e   :  { %6068 = vpow2.f32 %v2509_v52  ;;  %2295 = vmax.xlane.f32.xlu0 %v7354_v24  ;;  %v7554_v50 = vpop.eup %6058 }
 0x73f   :  { %v2156_v7 = vpop.xlane.xlu0 %2155  ;;  %6070 = vpow2.f32 %v2511_v33 }
 0x740   :  { %v7556_v34 = vpop.eup %6060  ;;  %v2355_v3 = vsub.f32 %v9080_v18, %v2156_v7  ;;  %2297 = vmax.xlane.f32.xlu1 %v7368_v45  ;;  %6072 = vpow2.f32 %v2513_v5  ;;  %v9083_v7 = vld [vmem:[#allocation51_spill] sm:$0xff]  ;;  %v2543_v5 = vmul.f32 1.442695, %v2357_v53  ;;  %v9091_v53 = vld [vmem:[#allocation53_spill] sm:$0xff] }
 0x741   :  { %9079 = vst [vmem:[#allocation30_spill] sm:$0xff] %v7556_v34  ;;  %v2158_v4 = vpop.xlane.xlu1 %2157  ;;  %v2965_v52 = vpack.c.bf16 %v7556_v34, %v7554_v50  ;;  %v2358_v18 = vsub.f32 %v9083_v7, %v2162_v22  ;;  %v7570_v31 = vpop.eup %6062 }
 0x742   :  { %v2539_v55 = vmul.f32 1.442695, %v2355_v3  ;;  %v2356_v24 = vsub.f32 %v9081_v51, %v2158_v4  ;;  %2291 = vmax.xlane.f32.xlu0 %v7364_v16  ;;  %v7573_v33 = vpop.eup %6064  ;;  %v9090_v16 = vld [vmem:[#allocation93_spill] sm:$0xff] }
 0x743   :  { %5680 = vmatpush3.bf16.xpose.msra.mxu1 %v2958_v23  ;;  %5698 = vmatpush3.bf16.xpose.msra.mxu0 %v2965_v52  ;;  %v2136_v37 = vpop.xlane.xlu0 %2135  ;;  %9084 = vst [vmem:[#allocation31_spill] sm:$0xff] %v7573_v33  ;;  %v2545_v23 = vmul.f32 1.442695, %v2358_v18  ;;  %v9088_v52 = vld [vmem:[#allocation54_spill] sm:$0xff] }
 0x744   :  { %v2541_v45 = vmul.f32 1.442695, %v2356_v24  ;;  %2293 = vmax.xlane.f32.xlu1 %v7374_v19  ;;  %5681 = vmatprep.subr.bf16.mxu1 %v8986_v25  ;;  %6074 = vpow2.f32 %v2539_v55  ;;  %v2345_v34 = vsub.f32 %v9091_v53, %v2136_v37  ;;  %v9094_v37 = vld [vmem:[#allocation103_spill] sm:$0xff] }
 0x745   :  { %v2138_v3 = vpop.xlane.xlu1 %2137  ;;  %5699 = vmatprep.subr.bf16.mxu0 %v8986_v25 }
 0x746   :  { %6076 = vpow2.f32 %v2541_v45  ;;  %2687 = vadd.xlane.f32.xlu0 %v9085_v38  ;;  %v7576_v4 = vpop.eup %6066  ;;  %v2966_v45 = vpack.c.bf16 %v7573_v33, %v7570_v31  ;;  %v9089_v38 = vld [vmem:[#allocation57_spill] sm:$0xff] }
 0x747   :  { %9086 = vst [vmem:[#allocation34_spill] sm:$0xff] %v7576_v4  ;;  %v2132_v22 = vpop.xlane.xlu0 %2131  ;;  %6078 = vpow2.f32 %v2543_v5 }
 0x748   :  { %v7578_v24 = vpop.eup %6068  ;;  %v2343_v51 = vsub.f32 %v9088_v52, %v2132_v22  ;;  %2719 = vadd.xlane.f32.xlu1 %v7318_v39  ;;  %6080 = vpow2.f32 %v2545_v23  ;;  %v9092_v39 = vld [vmem:[#allocation55_spill] sm:$0xff]  ;;  %v2519_v23 = vmul.f32 1.442695, %v2345_v34  ;;  %v9100_v34 = vld [vmem:[#allocation56_spill] sm:$0xff] }
 0x749   :  { %9087 = vst [vmem:[#allocation36_spill] sm:$0xff] %v7578_v24  ;;  %v2134_v55 = vpop.xlane.xlu1 %2133  ;;  %v2959_v1 = vpack.c.bf16 %v7578_v24, %v7576_v4  ;;  %v2346_v22 = vsub.f32 %v9092_v39, %v2138_v3  ;;  %v7592_v24 = vpop.eup %6070  ;;  %v9099_v4 = vld [vmem:[#allocation105_spill] sm:$0xff] }
 0x74a   :  { %v2515_v7 = vmul.f32 1.442695, %v2343_v51  ;;  %v2344_v19 = vsub.f32 %v9089_v38, %v2134_v55  ;;  %2683 = vadd.xlane.f32.xlu0 %v9090_v16  ;;  %v7595_v16 = vpop.eup %6072  ;;  %v9096_v55 = vld [vmem:[#allocation58_spill] sm:$0xff] }
 0x74b   :  { %5682 = vmatpush3.bf16.xpose.msra.mxu1 %v2959_v1  ;;  %5700 = vmatpush3.bf16.xpose.msra.mxu0 %v2966_v45  ;;  %v2168_v18 = vpop.xlane.xlu0 %2167  ;;  %v9097_v45 = vld [vmem:[#allocation114_spill] sm:$0xff]  ;;  %v2960_v38 = vpack.c.bf16 %v7595_v16, %v7592_v24 }
 0x74c   :  { %v2517_v52 = vmul.f32 1.442695, %v2344_v19  ;;  %2685 = vadd.xlane.f32.xlu1 %v9093_v48  ;;  %5683 = vmatprep.subr.bf16.mxu1 %v8986_v25  ;;  %6082 = vpow2.f32 %v2515_v7  ;;  %v2521_v48 = vmul.f32 1.442695, %v2346_v22  ;;  %v2361_v33 = vsub.f32 %v9100_v34, %v2168_v18 }
 0x74d   :  { %v2170_v51 = vpop.xlane.xlu1 %2169  ;;  %5701 = vmatprep.subr.bf16.mxu0 %v8986_v25 }
 0x74e   :  { %6084 = vpow2.f32 %v2517_v52  ;;  %2689 = vadd.xlane.f32.xlu0 %v9094_v37  ;;  %v7598_v5 = vpop.eup %6074  ;;  %v9098_v52 = vld [vmem:[#allocation60_spill] sm:$0xff] }
 0x74f   :  { %v2164_v3 = vpop.xlane.xlu0 %2163  ;;  %6086 = vpow2.f32 %v2519_v23  ;;  %v2551_v23 = vmul.f32 1.442695, %v2361_v33  ;;  %v9108_v33 = vld [vmem:[#allocation61_spill] sm:$0xff] }
 0x750   :  { %v7600_v19 = vpop.eup %6076  ;;  %v2359_v1 = vsub.f32 %v9096_v55, %v2164_v3  ;;  %2721 = vadd.xlane.f32.xlu1 %v9097_v45  ;;  %6088 = vpow2.f32 %v2521_v48  ;;  %v9101_v3 = vld [vmem:[#allocation59_spill] sm:$0xff] }
 0x751   :  { %9095 = vst [vmem:[#allocation32_spill] sm:$0xff] %v7600_v19  ;;  %v2166_v7 = vpop.xlane.xlu1 %2165  ;;  %v2967_v53 = vpack.c.bf16 %v7600_v19, %v7598_v5  ;;  %v2362_v55 = vsub.f32 %v9101_v3, %v2170_v51  ;;  %v7614_v19 = vpop.eup %6078  ;;  %v9107_v3 = vld [vmem:[#allocation116_spill] sm:$0xff] }
 0x752   :  { %v2547_v39 = vmul.f32 1.442695, %v2359_v1  ;;  %v2360_v37 = vsub.f32 %v9098_v52, %v2166_v7  ;;  %2715 = vadd.xlane.f32.xlu0 %v9099_v4  ;;  %v7617_v4 = vpop.eup %6080  ;;  %v9105_v7 = vld [vmem:[#allocation62_spill] sm:$0xff] }
 0x753   :  { %5684 = vmatpush3.bf16.xpose.msra.mxu1 %v2960_v38  ;;  %5702 = vmatpush3.bf16.xpose.msra.mxu0 %v2967_v53  ;;  %v2176_v22 = vpop.xlane.xlu0 %2175  ;;  %v2968_v52 = vpack.c.bf16 %v7617_v4, %v7614_v19 }
 0x754   :  { %v2549_v45 = vmul.f32 1.442695, %v2360_v37  ;;  %2717 = vadd.xlane.f32.xlu1 %v9102_v10  ;;  %5685 = vmatprep.subr.bf16.mxu1 %v8986_v25  ;;  %6090 = vpow2.f32 %v2547_v39  ;;  %v2553_v10 = vmul.f32 1.442695, %v2362_v55 }
 0x755   :  { %v2178_v1 = vpop.xlane.xlu1 %2177  ;;  %5703 = vmatprep.subr.bf16.mxu0 %v8986_v25 }
 0x756   :  { %6092 = vpow2.f32 %v2549_v45  ;;  %2695 = vadd.xlane.f32.xlu0 %v7356_v12  ;;  %v7620_v18 = vpop.eup %6082  ;;  %v9106_v12 = vld [vmem:[#allocation65_spill] sm:$0xff]  ;;  %v2365_v45 = vsub.f32 %v9108_v33, %v2176_v22 }
 0x757   :  { %9103 = vst [vmem:[#allocation35_spill] sm:$0xff] %v7620_v18  ;;  %v2172_v51 = vpop.xlane.xlu0 %2171  ;;  %6094 = vpow2.f32 %v2551_v23 }
 0x758   :  { %v7622_v48 = vpop.eup %6084  ;;  %v2363_v38 = vsub.f32 %v9105_v7, %v2172_v51  ;;  %2727 = vadd.xlane.f32.xlu1 %v7386_v11  ;;  %6096 = vpow2.f32 %v2553_v10  ;;  %v9109_v11 = vld [vmem:[#allocation63_spill] sm:$0xff]  ;;  %v2559_v10 = vmul.f32 1.442695, %v2365_v45  ;;  %v9114_v45 = vld [vmem:[#allocation64_spill] sm:$0xff] }
 0x759   :  { %9104 = vst [vmem:[#allocation22_spill] sm:$0xff] %v7622_v48  ;;  %v2174_v53 = vpop.xlane.xlu1 %2173  ;;  %v2961_v39 = vpack.c.bf16 %v7622_v48, %v7620_v18  ;;  %v2366_v51 = vsub.f32 %v9109_v11, %v2178_v1  ;;  %v7636_v48 = vpop.eup %6086  ;;  %v9113_v11 = vld [vmem:[#allocation118_spill] sm:$0xff]  ;;  %v9116_v18 = vld [vmem:[#allocation127_spill] sm:$0xff] }
 0x75a   :  { %v2555_v37 = vmul.f32 1.442695, %v2363_v38  ;;  %v2364_v34 = vsub.f32 %v9106_v12, %v2174_v53  ;;  %2691 = vadd.xlane.f32.xlu0 %v9107_v3  ;;  %v7639_v23 = vpop.eup %6088 }
 0x75b   :  { %5686 = vmatpush3.bf16.xpose.msra.mxu1 %v2961_v39  ;;  %5704 = vmatpush3.bf16.xpose.msra.mxu0 %v2968_v52  ;;  %v2208_v55 = vpop.xlane.xlu0 %2207  ;;  %v9111_v39 = vld [vmem:[#allocation66_spill] sm:$0xff]  ;;  %v2962_v12 = vpack.c.bf16 %v7639_v23, %v7636_v48 }
 0x75c   :  { %v2557_v7 = vmul.f32 1.442695, %v2364_v34  ;;  %2723 = vadd.xlane.f32.xlu1 %v7366_v41  ;;  %5687 = vmatprep.subr.bf16.mxu1 %v8986_v25  ;;  %6098 = vpow2.f32 %v2555_v37  ;;  %v2561_v41 = vmul.f32 1.442695, %v2366_v51 }
 0x75d   :  { %v2210_v38 = vpop.xlane.xlu1 %2209  ;;  %5705 = vmatprep.subr.bf16.mxu0 %v8986_v25 }
 0x75e   :  { %6100 = vpow2.f32 %v2557_v7  ;;  %2697 = vadd.xlane.f32.xlu0 %v7361_v57  ;;  %v7642_v22 = vpop.eup %6090  ;;  %v9112_v57 = vld [vmem:[#allocation68_spill] sm:$0xff]  ;;  %v2381_v7 = vsub.f32 %v9114_v45, %v2208_v55 }
 0x75f   :  { %v2204_v1 = vpop.xlane.xlu0 %2203  ;;  %6102 = vpow2.f32 %v2559_v10 }
 0x760   :  { %v7644_v53 = vpop.eup %6092  ;;  %v2379_v52 = vsub.f32 %v9111_v39, %v2204_v1  ;;  %2729 = vadd.xlane.f32.xlu1 %v7389_v28  ;;  %6104 = vpow2.f32 %v2561_v41  ;;  %v9115_v28 = vld [vmem:[#allocation67_spill] sm:$0xff]  ;;  %v2591_v41 = vmul.f32 1.442695, %v2381_v7  ;;  %v9119_v7 = vld [vmem:[#allocation73_spill] sm:$0xff] }
 0x761   :  { %9110 = vst [vmem:[#allocation38_spill] sm:$0xff] %v7644_v53  ;;  %v2206_v37 = vpop.xlane.xlu1 %2205  ;;  %v2969_v34 = vpack.c.bf16 %v7644_v53, %v7642_v22  ;;  %v2382_v1 = vsub.f32 %v9115_v28, %v2210_v38  ;;  %v7658_v53 = vpop.eup %6094 }
 0x762   :  { %v2587_v3 = vmul.f32 1.442695, %v2379_v52  ;;  %v2380_v33 = vsub.f32 %v9112_v57, %v2206_v37  ;;  %2693 = vadd.xlane.f32.xlu0 %v9113_v11  ;;  %v7661_v10 = vpop.eup %6096  ;;  %v9118_v57 = vld [vmem:[#allocation70_spill] sm:$0xff] }
 0x763   :  { %5688 = vmatpush3.bf16.xpose.msra.mxu1 %v2962_v12  ;;  %5706 = vmatpush3.bf16.xpose.msra.mxu0 %v2969_v34  ;;  %v2184_v51 = vpop.xlane.xlu0 %2183  ;;  %v2593_v34 = vmul.f32 1.442695, %v2382_v1  ;;  %v2970_v11 = vpack.c.bf16 %v7661_v10, %v7658_v53 }
 0x764   :  { %v2589_v39 = vmul.f32 1.442695, %v2380_v33  ;;  %2725 = vadd.xlane.f32.xlu1 %v9116_v18  ;;  %5707 = vmatprep.subr.bf16.mxu0 %v8986_v25  ;;  %6106 = vpow2.f32 %v2587_v3  ;;  %v9117_v18 = vld [vmem:[#allocation24_spill] sm:$0xff] }
 0x765   :  { %v2186_v52 = vpop.xlane.xlu1 %2185  ;;  %5713 = vmatprep.subr.bf16.mxu1 %v8986_v25  ;;  %v915_v12 = vpack.c.bf16 %v9117_v18, %v9117_v18 }
 0x766   :  { %6108 = vpow2.f32 %v2589_v39  ;;  %2703 = vadd.xlane.f32.xlu0 %v7408_v60  ;;  %v7664_v55 = vpop.eup %6098  ;;  %v9120_v39 = vld [vmem:[#allocation69_spill] sm:$0xff] }
 0x767   :  { %v2180_v38 = vpop.xlane.xlu0 %2179  ;;  %6110 = vpow2.f32 %v2591_v41  ;;  %v2369_v1 = vsub.f32 %v9120_v39, %v2184_v51 }
 0x768   :  { %v7666_v37 = vpop.eup %6100  ;;  %v2367_v3 = vsub.f32 %v9118_v57, %v2180_v38  ;;  %2735 = vadd.xlane.f32.xlu1 %v7430_v0  ;;  %6112 = vpow2.f32 %v2593_v34  ;;  %v9121_v0 = vld [vmem:[#allocation71_spill] sm:$0xff]  ;;  %v9122_v34 = vld [vmem:[#allocation25_spill] sm:$0xff] }
 0x769   :  { %v2182_v33 = vpop.xlane.xlu1 %2181  ;;  %v2971_v60 = vpack.c.bf16 %v7666_v37, %v7664_v55  ;;  %v2370_v18 = vsub.f32 %v9121_v0, %v2186_v52  ;;  %v2567_v52 = vmul.f32 1.442695, %v2369_v1  ;;  %v9124_v1 = vld [vmem:[#allocation76_spill] sm:$0xff] }
 0x76a   :  { %v2563_v45 = vmul.f32 1.442695, %v2367_v3  ;;  %v2368_v28 = vsub.f32 %v9119_v7, %v2182_v33  ;;  %5690 = vmatmul.mubr.bf16.vlgmr.msra.gmra.mrb[92].mxu1 %v915_v12  ;;  %2699 = vadd.xlane.f32.xlu0 %v7392_v40  ;;  %v7682_v3 = vpop.eup %6102  ;;  %v916_v33 = vpack.c.bf16 %v9122_v34, %v9122_v34 }
 0x76b   :  { %5708 = vmatpush3.bf16.xpose.msra.mxu0 %v2970_v11  ;;  %5714 = vmatpush3.bf16.xpose.msra.mxu1 %v2971_v60  ;;  %v2216_v38 = vpop.xlane.xlu0 %2215  ;;  %v7687_v40 = vpop.eup %6104  ;;  %v2569_v11 = vmul.f32 1.442695, %v2370_v18  ;;  %v9123_v60 = vld [vmem:[#allocation74_spill] sm:$0xff] }
 0x76c   :  { %v2565_v57 = vmul.f32 1.442695, %v2368_v28  ;;  %2731 = vadd.xlane.f32.xlu1 %v7414_v62  ;;  %5715 = vmatprep.subr.bf16.mxu1 %v8986_v25  ;;  %6114 = vpow2.f32 %v2563_v45  ;;  %v2972_v28 = vpack.c.bf16 %v7687_v40, %v7682_v3 }
 0x76d   :  { %v2218_v12 = vpop.xlane.xlu1 %2217  ;;  %5733 = vmatprep.subr.bf16.mxu0 %v8986_v25  ;;  %5729 = vmatprep.mubr.msk.bf16.mxu1 %vm6552_vm5, %v8986_v25 }
 0x76e   :  { %6116 = vpow2.f32 %v2565_v57  ;;  %2705 = vadd.xlane.f32.xlu0 %v7411_v58  ;;  %v7690_v51 = vpop.eup %6106  ;;  %v9125_v57 = vld [vmem:[#allocation72_spill] sm:$0xff] }
 0x76f   :  { %v2212_v62 = vpop.xlane.xlu0 %2211  ;;  %6118 = vpow2.f32 %v2567_v52  ;;  %v2385_v18 = vsub.f32 %v9125_v57, %v2216_v38 }
 0x770   :  { %v7692_v41 = vpop.eup %6108  ;;  %v2383_v45 = vsub.f32 %v9123_v60, %v2212_v62  ;;  %2737 = vadd.xlane.f32.xlu1 %v7433_v59  ;;  %6120 = vpow2.f32 %v2569_v11  ;;  %v9126_v59 = vld [vmem:[#allocation75_spill] sm:$0xff] }
 0x771   :  { %v2214_v7 = vpop.xlane.xlu1 %2213  ;;  %v2979_v58 = vpack.c.bf16 %v7692_v41, %v7690_v51  ;;  %v2386_v34 = vsub.f32 %v9126_v59, %v2218_v12  ;;  %v2599_v12 = vmul.f32 1.442695, %v2385_v18  ;;  %v9129_v18 = vld [vmem:[#allocation77_spill] sm:$0xff] }
 0x772   :  { %v2595_v39 = vmul.f32 1.442695, %v2383_v45  ;;  %v2384_v0 = vsub.f32 %v9124_v1, %v2214_v7  ;;  %5710 = vmatmul.mubr.bf16.vlgmr.msra.gmra.mrb[100].mxu0 %v916_v33  ;;  %2701 = vadd.xlane.f32.xlu0 %v7394_v36  ;;  %v7708_v45 = vpop.eup %6110  ;;  %v9127_v7 = vld [vmem:[#allocation78_spill] sm:$0xff] }
 0x773   :  { %5716 = vmatpush3.bf16.xpose.msra.mxu1 %v2972_v28  ;;  %5734 = vmatpush3.bf16.xpose.msra.mxu0 %v2979_v58  ;;  %v2192_v62 = vpop.xlane.xlu0 %2191  ;;  %v7713_v36 = vpop.eup %6112  ;;  %v2601_v11 = vmul.f32 1.442695, %v2386_v34 }
 0x774   :  { %v2597_v60 = vmul.f32 1.442695, %v2384_v0  ;;  %2733 = vadd.xlane.f32.xlu1 %v7416_v61  ;;  %5717 = vmatprep.subr.bf16.mxu1 %v8986_v25  ;;  %6122 = vpow2.f32 %v2595_v39  ;;  %v2980_v1 = vpack.c.bf16 %v7713_v36, %v7708_v45  ;;  %v2373_v59 = vsub.f32 %v9129_v18, %v2192_v62 }
 0x775   :  { %v2194_v33 = vpop.xlane.xlu1 %2193  ;;  %5735 = vmatprep.subr.bf16.mxu0 %v8986_v25  ;;  %5749 = vmatprep.mubr.msk.bf16.mxu0 %vm6552_vm5, %v8986_v25 }
 0x776   :  { %6124 = vpow2.f32 %v2597_v60  ;;  %2711 = vadd.xlane.f32.xlu0 %v7452_v29  ;;  %v7716_v38 = vpop.eup %6114  ;;  %v9128_v29 = vld [vmem:[#allocation81_spill] sm:$0xff] }
 0x777   :  { %v2188_v61 = vpop.xlane.xlu0 %2187  ;;  %6126 = vpow2.f32 %v2599_v12  ;;  %v2575_v12 = vmul.f32 1.442695, %v2373_v59  ;;  %v9133_v59 = vld [vmem:[#allocation80_spill] sm:$0xff] }
 0x778   :  { %v7718_v52 = vpop.eup %6116  ;;  %v2371_v28 = vsub.f32 %v9127_v7, %v2188_v61  ;;  %2743 = vadd.xlane.f32.xlu1 %v7474_v14  ;;  %6128 = vpow2.f32 %v2601_v11  ;;  %v9130_v14 = vld [vmem:[#allocation79_spill] sm:$0xff] }
 0x779   :  { %v2190_v58 = vpop.xlane.xlu1 %2189  ;;  %v2973_v39 = vpack.c.bf16 %v7718_v52, %v7716_v38  ;;  %v2374_v60 = vsub.f32 %v9130_v14, %v2194_v33  ;;  %v7732_v7 = vpop.eup %6118 }
 0x77a   :  { %v2571_v0 = vmul.f32 1.442695, %v2371_v28  ;;  %v2372_v57 = vsub.f32 %v9128_v29, %v2190_v58  ;;  %2707 = vadd.xlane.f32.xlu0 %v7436_v2  ;;  %v7735_v2 = vpop.eup %6120  ;;  %v9131_v58 = vld [vmem:[#allocation82_spill] sm:$0xff] }
 0x77b   :  { %5718 = vmatpush3.bf16.xpose.msra.mxu1 %v2973_v39  ;;  %5736 = vmatpush3.bf16.xpose.msra.mxu0 %v2980_v1  ;;  %v2224_v34 = vpop.xlane.xlu0 %2223 }
 0x77c   :  { %v2573_v61 = vmul.f32 1.442695, %v2372_v57  ;;  %2739 = vadd.xlane.f32.xlu1 %v7458_v8  ;;  %5719 = vmatprep.subr.bf16.mxu1 %v8986_v25  ;;  %6130 = vpow2.f32 %v2571_v0  ;;  %v2577_v8 = vmul.f32 1.442695, %v2374_v60  ;;  %v2974_v0 = vpack.c.bf16 %v7735_v2, %v7732_v7 }
 0x77d   :  { %v2226_v28 = vpop.xlane.xlu1 %2225  ;;  %5737 = vmatprep.subr.bf16.mxu0 %v8986_v25  ;;  %v2389_v14 = vsub.f32 %v9133_v59, %v2224_v34 }
 0x77e   :  { %6132 = vpow2.f32 %v2573_v61  ;;  %2713 = vadd.xlane.f32.xlu0 %v7455_v63  ;;  %v7738_v62 = vpop.eup %6122  ;;  %v9132_v63 = vld [vmem:[#allocation84_spill] sm:$0xff] }
 0x77f   :  { %v2220_v33 = vpop.xlane.xlu0 %2219  ;;  %6134 = vpow2.f32 %v2575_v12  ;;  %v2607_v12 = vmul.f32 1.442695, %v2389_v14  ;;  %v9137_v14 = vld [vmem:[#allocation85_spill] sm:$0xff] }
 0x780   :  { %v7740_v11 = vpop.eup %6124  ;;  %v2387_v39 = vsub.f32 %v9131_v58, %v2220_v33  ;;  %2745 = vadd.xlane.f32.xlu1 %v7477_v32  ;;  %6136 = vpow2.f32 %v2577_v8  ;;  %v9134_v32 = vld [vmem:[#allocation83_spill] sm:$0xff] }
 0x781   :  { %v2222_v1 = vpop.xlane.xlu1 %2221  ;;  %v2981_v29 = vpack.c.bf16 %v7740_v11, %v7738_v62  ;;  %v2390_v61 = vsub.f32 %v9134_v32, %v2226_v28  ;;  %v7754_v58 = vpop.eup %6126 }
 0x782   :  { %v2603_v57 = vmul.f32 1.442695, %v2387_v39  ;;  %v2388_v18 = vsub.f32 %v9132_v63, %v2222_v1  ;;  %2709 = vadd.xlane.f32.xlu0 %v7438_v6  ;;  %v7757_v6 = vpop.eup %6128  ;;  %v9135_v1 = vld [vmem:[#allocation86_spill] sm:$0xff] }
 0x783   :  { %5720 = vmatpush3.bf16.xpose.msra.mxu1 %v2974_v0  ;;  %5738 = vmatpush3.bf16.xpose.msra.mxu0 %v2981_v29  ;;  %v2200_v60 = vpop.xlane.xlu0 %2199  ;;  %v2982_v63 = vpack.c.bf16 %v7757_v6, %v7754_v58 }
 0x784   :  { %v2605_v33 = vmul.f32 1.442695, %v2388_v18  ;;  %2741 = vadd.xlane.f32.xlu1 %v7460_v21  ;;  %5721 = vmatprep.subr.bf16.mxu1 %v8986_v25  ;;  %6138 = vpow2.f32 %v2603_v57  ;;  %v2609_v21 = vmul.f32 1.442695, %v2390_v61  ;;  %v2377_v32 = vsub.f32 %v9137_v14, %v2200_v60 }
 0x785   :  { %v2202_v39 = vpop.xlane.xlu1 %2201  ;;  %5739 = vmatprep.subr.bf16.mxu0 %v8986_v25 }
 0x786   :  { %6140 = vpow2.f32 %v2605_v33  ;;  %2751 = vadd.xlane.f32.xlu0 %v7498_v20  ;;  %v7760_v34 = vpop.eup %6130  ;;  %v9136_v20 = vld [vmem:[#allocation89_spill] sm:$0xff] }
 0x787   :  { %v2196_v28 = vpop.xlane.xlu0 %2195  ;;  %6142 = vpow2.f32 %v2607_v12  ;;  %v2583_v12 = vmul.f32 1.442695, %v2377_v32 }
 0x788   :  { %v7762_v8 = vpop.eup %6132  ;;  %v2375_v0 = vsub.f32 %v9135_v1, %v2196_v28  ;;  %2783 = vadd.xlane.f32.xlu1 %v7524_v56  ;;  %6144 = vpow2.f32 %v2609_v21  ;;  %v9138_v56 = vld [vmem:[#allocation87_spill] sm:$0xff] }
 0x789   :  { %v2198_v29 = vpop.xlane.xlu1 %2197  ;;  %v2975_v57 = vpack.c.bf16 %v7762_v8, %v7760_v34  ;;  %v2378_v33 = vsub.f32 %v9138_v56, %v2202_v39  ;;  %v7776_v1 = vpop.eup %6134 }
 0x78a   :  { %v2579_v18 = vmul.f32 1.442695, %v2375_v0  ;;  %v2376_v59 = vsub.f32 %v9136_v20, %v2198_v29  ;;  %2747 = vadd.xlane.f32.xlu0 %v7480_v27  ;;  %v7779_v27 = vpop.eup %6136 }
 0x78b   :  { %5722 = vmatpush3.bf16.xpose.msra.mxu1 %v2975_v57  ;;  %5740 = vmatpush3.bf16.xpose.msra.mxu0 %v2982_v63  ;;  %v2232_v61 = vpop.xlane.xlu0 %2231  ;;  %v2976_v63 = vpack.c.bf16 %v7779_v27, %v7776_v1 }
 0x78c   :  { %v2581_v28 = vmul.f32 1.442695, %v2376_v59  ;;  %2749 = vadd.xlane.f32.xlu1 %v7482_v30  ;;  %5723 = vmatprep.subr.bf16.mxu1 %v8986_v25  ;;  %6146 = vpow2.f32 %v2579_v18  ;;  %v2585_v30 = vmul.f32 1.442695, %v2378_v33  ;;  %v9139_v59 = vld [vmem:[#allocation88_spill] sm:$0xff] }
 0x78d   :  { %v2234_v0 = vpop.xlane.xlu1 %2233  ;;  %5741 = vmatprep.subr.bf16.mxu0 %v8986_v25  ;;  %v2393_v14 = vsub.f32 %v9139_v59, %v2232_v61 }
 0x78e   :  { %6148 = vpow2.f32 %v2581_v28  ;;  %2753 = vadd.xlane.f32.xlu0 %v7503_v13  ;;  %v7782_v60 = vpop.eup %6138 }
 0x78f   :  { %v2228_v39 = vpop.xlane.xlu0 %2227  ;;  %6150 = vpow2.f32 %v2583_v12  ;;  %v2615_v28 = vmul.f32 1.442695, %v2393_v14 }
 0x790   :  { %v7784_v21 = vpop.eup %6140  ;;  %v2391_v29 = vsub.f32 %v7229_v42, %v2228_v39  ;;  %2785 = vadd.xlane.f32.xlu1 %v7529_v15  ;;  %6152 = vpow2.f32 %v2585_v30  ;;  %v9140_v15 = vld [vmem:[#allocation90_spill] sm:$0xff] }
 0x791   :  { %v2230_v57 = vpop.xlane.xlu1 %2229  ;;  %v2983_v18 = vpack.c.bf16 %v7784_v21, %v7782_v60  ;;  %v2394_v32 = vsub.f32 %v9140_v15, %v2234_v0  ;;  %v7798_v33 = vpop.eup %6142 }
 0x792   :  { %v2611_v20 = vmul.f32 1.442695, %v2391_v29  ;;  %v2392_v13 = vsub.f32 %v7235_v9, %v2230_v57  ;;  %2779 = vadd.xlane.f32.xlu0 %v7506_v47  ;;  %v7801_v47 = vpop.eup %6144 }
 0x793   :  { %5724 = vmatpush3.bf16.xpose.msra.mxu1 %v2976_v63  ;;  %5742 = vmatpush3.bf16.xpose.msra.mxu0 %v2983_v18  ;;  %v2240_v42 = vpop.xlane.xlu0 %2239  ;;  %v2984_v57 = vpack.c.bf16 %v7801_v47, %v7798_v33 }
 0x794   :  { %v2613_v56 = vmul.f32 1.442695, %v2392_v13  ;;  %2781 = vadd.xlane.f32.xlu1 %v7508_v46  ;;  %5725 = vmatprep.subr.bf16.mxu1 %v8986_v25  ;;  %6154 = vpow2.f32 %v2611_v20  ;;  %v2617_v46 = vmul.f32 1.442695, %v2394_v32  ;;  %v2397_v18 = vsub.f32 %v7239_v35, %v2240_v42  ;;  %v9141_v42 = vld [vmem:[#allocation92_spill] sm:$0xff]  ;;  %v9142_v32 = vld [vmem:[#allocation31_spill] sm:$0xff] }
 0x795   :  { %v2242_v9 = vpop.xlane.xlu1 %2241  ;;  %5743 = vmatprep.subr.bf16.mxu0 %v8986_v25 }
 0x796   :  { %6156 = vpow2.f32 %v2613_v56  ;;  %2759 = vadd.xlane.f32.xlu0 %v7548_v54  ;;  %v7804_v61 = vpop.eup %6146  ;;  %v2623_v59 = vmul.f32 1.442695, %v2397_v18 }
 0x797   :  { %v2236_v0 = vpop.xlane.xlu0 %2235  ;;  %6158 = vpow2.f32 %v2615_v28 }
 0x798   :  { %v7806_v12 = vpop.eup %6148  ;;  %v2395_v39 = vsub.f32 %v7242_v26, %v2236_v0  ;;  %2791 = vadd.xlane.f32.xlu1 %v7570_v31  ;;  %6160 = vpow2.f32 %v2617_v46  ;;  %v2398_v31 = vsub.f32 %v7246_v43, %v2242_v9 }
 0x799   :  { %v2238_v30 = vpop.xlane.xlu1 %2237  ;;  %v2977_v29 = vpack.c.bf16 %v7806_v12, %v7804_v61  ;;  %v7820_v13 = vpop.eup %6150 }
 0x79a   :  { %v2619_v63 = vmul.f32 1.442695, %v2395_v39  ;;  %v2396_v54 = vsub.f32 %v7250_v49, %v2238_v30  ;;  %2755 = vadd.xlane.f32.xlu0 %v7532_v17  ;;  %v7823_v17 = vpop.eup %6152  ;;  %v9144_v39 = vld [vmem:[#allocation33_spill] sm:$0xff]  ;;  %v9145_v30 = vld [vmem:[#allocation91_spill] sm:$0xff] }
 0x79b   :  { %5726 = vmatpush3.bf16.xpose.msra.mxu1 %v2977_v29  ;;  %5744 = vmatpush3.bf16.xpose.msra.mxu0 %v2984_v57  ;;  %v2272_v26 = vpop.xlane.xlu0 %2271  ;;  %v2978_v9 = vpack.c.bf16 %v7823_v17, %v7820_v13 }
 0x79c   :  { %v2621_v20 = vmul.f32 1.442695, %v2396_v54  ;;  %2787 = vadd.xlane.f32.xlu1 %v7554_v50  ;;  %5727 = vmatprep.subr.bf16.mxu1 %v8986_v25  ;;  %6162 = vpow2.f32 %v2619_v63  ;;  %v2625_v50 = vmul.f32 1.442695, %v2398_v31  ;;  %v2413_v29 = vsub.f32 %v9145_v30, %v2272_v26  ;;  %v9146_v63 = vld [vmem:[#allocation94_spill] sm:$0xff] }
 0x79d   :  { %v2274_v49 = vpop.xlane.xlu1 %2273  ;;  %5745 = vmatprep.subr.bf16.mxu0 %v8986_v25  ;;  %v9147_v31 = vld [vmem:[#allocation30_spill] sm:$0xff] }
 0x79e   :  { %6164 = vpow2.f32 %v2621_v20  ;;  %2761 = vadd.xlane.f32.xlu0 %v7551_v44  ;;  %v7826_v35 = vpop.eup %6154  ;;  %v9143_v44 = vld [vmem:[#allocation96_spill] sm:$0xff]  ;;  %v2414_v54 = vsub.f32 %v9146_v63, %v2274_v49  ;;  %v9152_v63 = vld [vmem:[#allocation97_spill] sm:$0xff] }
 0x79f   :  { %v2268_v43 = vpop.xlane.xlu0 %2267  ;;  %6166 = vpow2.f32 %v2623_v59 }
 0x7a0   :  { %v7828_v14 = vpop.eup %6156  ;;  %v2411_v15 = vsub.f32 %v9141_v42, %v2268_v43  ;;  %2793 = vadd.xlane.f32.xlu1 %v9142_v32  ;;  %6168 = vpow2.f32 %v2625_v50  ;;  %v2655_v50 = vmul.f32 1.442695, %v2413_v29  ;;  %v9151_v29 = vld [vmem:[#allocation34_spill] sm:$0xff] }
 0x7a1   :  { %v2270_v56 = vpop.xlane.xlu1 %2269  ;;  %v2985_v28 = vpack.c.bf16 %v7828_v14, %v7826_v35  ;;  %v7842_v20 = vpop.eup %6158 }
 0x7a2   :  { %v2651_v0 = vmul.f32 1.442695, %v2411_v15  ;;  %v2412_v46 = vsub.f32 %v9143_v44, %v2270_v56  ;;  %2757 = vadd.xlane.f32.xlu0 %v9144_v39  ;;  %v7845_v59 = vpop.eup %6160  ;;  %v9148_v15 = vld [vmem:[#allocation26_spill] sm:$0xff]  ;;  %v2657_v56 = vmul.f32 1.442695, %v2414_v54 }
 0x7a3   :  { %5728 = vmatpush3.bf16.xpose.msra.mxu1 %v2978_v9  ;;  %5746 = vmatpush3.bf16.xpose.msra.mxu0 %v2985_v28  ;;  %v2248_v57 = vpop.xlane.xlu0 %2247  ;;  %v917_v32 = vpack.c.bf16 %v9148_v15, %v9148_v15  ;;  %v9149_v9 = vld [vmem:[#allocation98_spill] sm:$0xff]  ;;  %v2986_v44 = vpack.c.bf16 %v7845_v59, %v7842_v20 }
 0x7a4   :  { %v2653_v18 = vmul.f32 1.442695, %v2412_v46  ;;  %2789 = vadd.xlane.f32.xlu1 %v9147_v31  ;;  %5747 = vmatprep.subr.bf16.mxu0 %v8986_v25  ;;  %6170 = vpow2.f32 %v2651_v0  ;;  %v9150_v39 = vld [vmem:[#allocation102_spill] sm:$0xff]  ;;  %v2401_v54 = vsub.f32 %v9152_v63, %v2248_v57 }
 0x7a5   :  { %v2250_v43 = vpop.xlane.xlu1 %2249  ;;  %5753 = vmatprep.subr.bf16.mxu1 %v8986_v25 }
 0x7a6   :  { %6172 = vpow2.f32 %v2653_v18  ;;  %2767 = vadd.xlane.f32.xlu0 %v7592_v24  ;;  %v7848_v26 = vpop.eup %6162 }
 0x7a7   :  { %v2244_v49 = vpop.xlane.xlu0 %2243  ;;  %6174 = vpow2.f32 %v2655_v50  ;;  %v2631_v50 = vmul.f32 1.442695, %v2401_v54  ;;  %v9157_v54 = vld [vmem:[#allocation36_spill] sm:$0xff] }
 0x7a8   :  { %v7850_v42 = vpop.eup %6164  ;;  %v2399_v28 = vsub.f32 %v9149_v9, %v2244_v49  ;;  %2799 = vadd.xlane.f32.xlu1 %v7614_v19  ;;  %6176 = vpow2.f32 %v2657_v56  ;;  %v9153_v19 = vld [vmem:[#allocation99_spill] sm:$0xff] }
 0x7a9   :  { %v2246_v0 = vpop.xlane.xlu1 %2245  ;;  %v2987_v24 = vpack.c.bf16 %v7850_v42, %v7848_v26  ;;  %v2402_v31 = vsub.f32 %v9153_v19, %v2250_v43  ;;  %v7866_v15 = vpop.eup %6166  ;;  %v9154_v9 = vld [vmem:[#allocation27_spill] sm:$0xff]  ;;  %v9158_v19 = vld [vmem:[#allocation100_spill] sm:$0xff] }
 0x7aa   :  { %v2627_v46 = vmul.f32 1.442695, %v2399_v28  ;;  %v2400_v30 = vsub.f32 %v9150_v39, %v2246_v0  ;;  %5730 = vmatmul.mubr.bf16.vlgmr.msra.gmra.mrb[96].mxu1 %v917_v32  ;;  %2763 = vadd.xlane.f32.xlu0 %v9151_v29  ;;  %v7871_v57 = vpop.eup %6168  ;;  %v918_v28 = vpack.c.bf16 %v9154_v9, %v9154_v9  ;;  %v9156_v29 = vld [vmem:[#allocation108_spill] sm:$0xff] }
 0x7ab   :  { %5748 = vmatpush3.bf16.xpose.msra.mxu0 %v2986_v44  ;;  %5754 = vmatpush3.bf16.xpose.msra.mxu1 %v2987_v24  ;;  %v2280_v18 = vpop.xlane.xlu0 %2279  ;;  %v2633_v0 = vmul.f32 1.442695, %v2402_v31  ;;  %v9155_v44 = vld [vmem:[#allocation104_spill] sm:$0xff]  ;;  %v2988_v39 = vpack.c.bf16 %v7871_v57, %v7866_v15 }
 0x7ac   :  { %v2629_v49 = vmul.f32 1.442695, %v2400_v30  ;;  %2795 = vadd.xlane.f32.xlu1 %v7598_v5  ;;  %5755 = vmatprep.subr.bf16.mxu1 %v8986_v25  ;;  %6178 = vpow2.f32 %v2627_v46  ;;  %v2417_v31 = vsub.f32 %v9158_v19, %v2280_v18 }
 0x7ad   :  { %v2282_v32 = vpop.xlane.xlu1 %2281  ;;  %5773 = vmatprep.subr.bf16.mxu0 %v8986_v25  ;;  %5769 = vmatprep.mubr.msk.bf16.mxu1 %vm6552_vm5, %v8986_v25 }
 0x7ae   :  { %6180 = vpow2.f32 %v2629_v49  ;;  %2769 = vadd.xlane.f32.xlu0 %v7595_v16  ;;  %v7874_v43 = vpop.eup %6170 }
 0x7af   :  { %v2276_v5 = vpop.xlane.xlu0 %2275  ;;  %6182 = vpow2.f32 %v2631_v50  ;;  %v2663_v50 = vmul.f32 1.442695, %v2417_v31  ;;  %v9166_v31 = vld [vmem:[#allocation109_spill] sm:$0xff] }
 0x7b0   :  { %v7876_v56 = vpop.eup %6172  ;;  %v2415_v24 = vsub.f32 %v9155_v44, %v2276_v5  ;;  %2801 = vadd.xlane.f32.xlu1 %v7617_v4  ;;  %6184 = vpow2.f32 %v2633_v0  ;;  %v9159_v4 = vld [vmem:[#allocation106_spill] sm:$0xff]  ;;  %v9160_v44 = vld [vmem:[#allocation32_spill] sm:$0xff] }
 0x7b1   :  { %v2278_v46 = vpop.xlane.xlu1 %2277  ;;  %v2995_v16 = vpack.c.bf16 %v7876_v56, %v7874_v43  ;;  %v2418_v5 = vsub.f32 %v9159_v4, %v2282_v32 }
 0x7b2   :  { %v2659_v30 = vmul.f32 1.442695, %v2415_v24  ;;  %v2416_v63 = vsub.f32 %v9156_v29, %v2278_v46  ;;  %5750 = vmatmul.mubr.bf16.vlgmr.msra.gmra.mrb[104].mxu0 %v918_v28  ;;  %2765 = vadd.xlane.f32.xlu0 %v9157_v54  ;;  %v7892_v24 = vpop.eup %6174 }
 0x7b3   :  { %5756 = vmatpush3.bf16.xpose.msra.mxu1 %v2988_v39  ;;  %5774 = vmatpush3.bf16.xpose.msra.mxu0 %v2995_v16  ;;  %v2256_v49 = vpop.xlane.xlu0 %2255  ;;  %v7897_v18 = vpop.eup %6176  ;;  %v2665_v39 = vmul.f32 1.442695, %v2418_v5  ;;  %v9163_v16 = vld [vmem:[#allocation110_spill] sm:$0xff] }
 0x7b4   :  { %v2661_v9 = vmul.f32 1.442695, %v2416_v63  ;;  %2797 = vadd.xlane.f32.xlu1 %v9160_v44  ;;  %5757 = vmatprep.subr.bf16.mxu1 %v8986_v25  ;;  %6186 = vpow2.f32 %v2659_v30  ;;  %v2996_v54 = vpack.c.bf16 %v7897_v18, %v7892_v24  ;;  %v2405_v44 = vsub.f32 %v9166_v31, %v2256_v49 }
 0x7b5   :  { %v2258_v28 = vpop.xlane.xlu1 %2257  ;;  %5775 = vmatprep.subr.bf16.mxu0 %v8986_v25  ;;  %5789 = vmatprep.mubr.msk.bf16.mxu0 %vm6552_vm5, %v8986_v25  ;;  %vm3674_vm5 = vcmask 917312  }
 0x7b6   :  { %6188 = vpow2.f32 %v2661_v9  ;;  %2775 = vadd.xlane.f32.xlu0 %v7636_v48  ;;  %v7900_v32 = vpop.eup %6178  ;;  %v9164_v48 = vld [vmem:[#allocation113_spill] sm:$0xff]  ;;  %v9165_v9 = vld [vmem:[#allocation35_spill] sm:$0xff] }
 0x7b7   :  { %9161 = vst [vmem:[#allocation41_spill] sm:$0xff] %v7900_v32  ;;  %v2252_v0 = vpop.xlane.xlu0 %2251  ;;  %6190 = vpow2.f32 %v2663_v50 }
 0x7b8   :  { %v7902_v46 = vpop.eup %6180  ;;  %v2403_v30 = vsub.f32 %v9163_v16, %v2252_v0  ;;  %2807 = vadd.xlane.f32.xlu1 %v7658_v53  ;;  %6192 = vpow2.f32 %v2665_v39  ;;  %v9167_v53 = vld [vmem:[#allocation111_spill] sm:$0xff]  ;;  %v2639_v39 = vmul.f32 1.442695, %v2405_v44  ;;  %v9172_v44 = vld [vmem:[#allocation112_spill] sm:$0xff] }
 0x7b9   :  { %9162 = vst [vmem:[#allocation37_spill] sm:$0xff] %v7902_v46  ;;  %v2254_v29 = vpop.xlane.xlu1 %2253  ;;  %v2989_v63 = vpack.c.bf16 %v7902_v46, %v7900_v32  ;;  %v2406_v0 = vsub.f32 %v9167_v53, %v2258_v28  ;;  %v7916_v46 = vpop.eup %6182  ;;  %v9171_v53 = vld [vmem:[#allocation22_spill] sm:$0xff] }
 0x7ba   :  { %v2635_v19 = vmul.f32 1.442695, %v2403_v30  ;;  %v2404_v4 = vsub.f32 %v9164_v48, %v2254_v29  ;;  %2771 = vadd.xlane.f32.xlu0 %v9165_v9  ;;  %v7919_v50 = vpop.eup %6184  ;;  %v9174_v32 = vld [vmem:[#allocation38_spill] sm:$0xff] }
 0x7bb   :  { %5758 = vmatpush3.bf16.xpose.msra.mxu1 %v2989_v63  ;;  %5776 = vmatpush3.bf16.xpose.msra.mxu0 %v2996_v54  ;;  %v2288_v5 = vpop.xlane.xlu0 %2287  ;;  %v9169_v63 = vld [vmem:[#allocation115_spill] sm:$0xff]  ;;  %v2990_v48 = vpack.c.bf16 %v7919_v50, %v7916_v46 }
 0x7bc   :  { %v2637_v16 = vmul.f32 1.442695, %v2404_v4  ;;  %2803 = vadd.xlane.f32.xlu1 %v7642_v22  ;;  %5759 = vmatprep.subr.bf16.mxu1 %v8986_v25  ;;  %6194 = vpow2.f32 %v2635_v19  ;;  %v2641_v22 = vmul.f32 1.442695, %v2406_v0 }
 0x7bd   :  { %v2290_v30 = vpop.xlane.xlu1 %2289  ;;  %5777 = vmatprep.subr.bf16.mxu0 %v8986_v25 }
 0x7be   :  { %6196 = vpow2.f32 %v2637_v16  ;;  %2777 = vadd.xlane.f32.xlu0 %v7639_v23  ;;  %v7922_v49 = vpop.eup %6186  ;;  %v9170_v23 = vld [vmem:[#allocation119_spill] sm:$0xff]  ;;  %v2421_v16 = vsub.f32 %v9172_v44, %v2288_v5 }
 0x7bf   :  { %v2284_v28 = vpop.xlane.xlu0 %2283  ;;  %6198 = vpow2.f32 %v2639_v39 }
 0x7c0   :  { %v7924_v29 = vpop.eup %6188  ;;  %v2419_v54 = vsub.f32 %v9169_v63, %v2284_v28  ;;  %2809 = vadd.xlane.f32.xlu1 %v7661_v10  ;;  %6200 = vpow2.f32 %v2641_v22  ;;  %v9173_v10 = vld [vmem:[#allocation117_spill] sm:$0xff]  ;;  %v2671_v22 = vmul.f32 1.442695, %v2421_v16  ;;  %v9177_v16 = vld [vmem:[#allocation120_spill] sm:$0xff] }
 0x7c1   :  { %9168 = vst [vmem:[#allocation39_spill] sm:$0xff] %v7924_v29  ;;  %v2286_v19 = vpop.xlane.xlu1 %2285  ;;  %v2997_v4 = vpack.c.bf16 %v7924_v29, %v7922_v49  ;;  %v2422_v28 = vsub.f32 %v9173_v10, %v2290_v30  ;;  %v7938_v29 = vpop.eup %6190 }
 0x7c2   :  { %v2667_v9 = vmul.f32 1.442695, %v2419_v54  ;;  %v2420_v31 = vsub.f32 %v9170_v23, %v2286_v19  ;;  %2773 = vadd.xlane.f32.xlu0 %v9171_v53  ;;  %v7941_v39 = vpop.eup %6192 }
 0x7c3   :  { %5760 = vmatpush3.bf16.xpose.msra.mxu1 %v2990_v48  ;;  %5778 = vmatpush3.bf16.xpose.msra.mxu0 %v2997_v4  ;;  %v2264_v0 = vpop.xlane.xlu0 %2263  ;;  %v9175_v48 = vld [vmem:[#allocation121_spill] sm:$0xff] }
 0x7c4   :  { %v2669_v63 = vmul.f32 1.442695, %v2420_v31  ;;  %2805 = vadd.xlane.f32.xlu1 %v9174_v32  ;;  %5761 = vmatprep.subr.bf16.mxu1 %v8986_v25  ;;  %6202 = vpow2.f32 %v2667_v9  ;;  %v2673_v32 = vmul.f32 1.442695, %v2422_v28  ;;  %v2998_v31 = vpack.c.bf16 %v7941_v39, %v7938_v29 }
 0x7c5   :  { %v2266_v54 = vpop.xlane.xlu1 %2265  ;;  %5779 = vmatprep.subr.bf16.mxu0 %v8986_v25  ;;  %v2409_v10 = vsub.f32 %v9177_v16, %v2264_v0 }
 0x7c6   :  { %6204 = vpow2.f32 %v2669_v63  ;;  %2815 = vadd.xlane.f32.xlu0 %v7682_v3  ;;  %v7944_v5 = vpop.eup %6194  ;;  %v9176_v3 = vld [vmem:[#allocation124_spill] sm:$0xff] }
 0x7c7   :  { %v2260_v30 = vpop.xlane.xlu0 %2259  ;;  %6206 = vpow2.f32 %v2671_v22  ;;  %v2647_v22 = vmul.f32 1.442695, %v2409_v10 }
 0x7c8   :  { %v7946_v19 = vpop.eup %6196  ;;  %v2407_v4 = vsub.f32 %v9175_v48, %v2260_v30  ;;  %2847 = vadd.xlane.f32.xlu1 %v7708_v45  ;;  %6208 = vpow2.f32 %v2673_v32  ;;  %v9178_v45 = vld [vmem:[#allocation122_spill] sm:$0xff] }
 0x7c9   :  { %v2262_v9 = vpop.xlane.xlu1 %2261  ;;  %v2991_v23 = vpack.c.bf16 %v7946_v19, %v7944_v5  ;;  %v2410_v63 = vsub.f32 %v9178_v45, %v2266_v54  ;;  %v7960_v48 = vpop.eup %6198  ;;  %v9181_v45 = vld [vmem:[#allocation126_spill] sm:$0xff] }
 0x7ca   :  { %v2643_v53 = vmul.f32 1.442695, %v2407_v4  ;;  %v2408_v44 = vsub.f32 %v9176_v3, %v2262_v9  ;;  %2811 = vadd.xlane.f32.xlu0 %v7664_v55  ;;  %v7963_v55 = vpop.eup %6200  ;;  %v9179_v9 = vld [vmem:[#allocation125_spill] sm:$0xff] }
 0x7cb   :  { %5762 = vmatpush3.bf16.xpose.msra.mxu1 %v2991_v23  ;;  %5780 = vmatpush3.bf16.xpose.msra.mxu0 %v2998_v31  ;;  %v2296_v28 = vpop.xlane.xlu0 %2295 }
 0x7cc   :  { %v2645_v30 = vmul.f32 1.442695, %v2408_v44  ;;  %2813 = vadd.xlane.f32.xlu1 %v7666_v37  ;;  %5763 = vmatprep.subr.bf16.mxu1 %v8986_v25  ;;  %6210 = vpow2.f32 %v2643_v53  ;;  %v2649_v37 = vmul.f32 1.442695, %v2410_v63  ;;  %v2992_v53 = vpack.c.bf16 %v7963_v55, %v7960_v48 }
 0x7cd   :  { %v2298_v4 = vpop.xlane.xlu1 %2297  ;;  %5781 = vmatprep.subr.bf16.mxu0 %v8986_v25 }
 0x7ce   :  { %6212 = vpow2.f32 %v2645_v30  ;;  %2817 = vadd.xlane.f32.xlu0 %v7687_v40  ;;  %v7966_v0 = vpop.eup %6202  ;;  %v9180_v40 = vld [vmem:[#allocation128_spill] sm:$0xff] }
 0x7cf   :  { %v2292_v54 = vpop.xlane.xlu0 %2291  ;;  %6214 = vpow2.f32 %v2647_v22  ;;  %v9182_v22 = vld [vmem:[#allocation123_spill] sm:$0xff] }
 0x7d0   :  { %v7968_v32 = vpop.eup %6204  ;;  %v2423_v23 = vsub.f32 %v9179_v9, %v2292_v54  ;;  %2849 = vadd.xlane.f32.xlu1 %v7713_v36  ;;  %6216 = vpow2.f32 %v2649_v37  ;;  %v2426_v36 = vsub.f32 %v9181_v45, %v2298_v4  ;;  %v2425_v9 = vsub.f32 %v9182_v22, %v2296_v28  ;;  %v5924_v22 = vld [vmem:[%s8778_s1 + $0x70] sm:$0xff]  }
 0x7d1   :  { %v2294_v31 = vpop.xlane.xlu1 %2293  ;;  %v2999_v3 = vpack.c.bf16 %v7968_v32, %v7966_v0  ;;  %v7983_v30 = vpop.eup %6206 }
 0x7d2   :  { %v2675_v44 = vmul.f32 1.442695, %v2423_v23  ;;  %v2424_v16 = vsub.f32 %v9180_v40, %v2294_v31  ;;  %2843 = vadd.xlane.f32.xlu0 %v7690_v51  ;;  %v7988_v51 = vpop.eup %6208  ;;  %v2681_v23 = vmul.f32 1.442695, %v2426_v36 }
 0x7d3   :  { %5764 = vmatpush3.bf16.xpose.msra.mxu1 %v2992_v53  ;;  %5782 = vmatpush3.bf16.xpose.msra.mxu0 %v2999_v3  ;;  %v7978_v10 = vpop.xlane.xlu0 %2687  ;;  %v3000_v28 = vpack.c.bf16 %v7988_v51, %v7983_v30  ;;  %v2679_v3 = vmul.f32 1.442695, %v2425_v9 }
 0x7d4   :  { %v2677_v63 = vmul.f32 1.442695, %v2424_v16  ;;  %2845 = vadd.xlane.f32.xlu1 %v7692_v41  ;;  %5765 = vmatprep.subr.bf16.mxu1 %v8986_v25  ;;  %6218 = vpow2.f32 %v2675_v44 }
 0x7d5   :  { %v7985_v54 = vpop.xlane.xlu1 %2719  ;;  %5783 = vmatprep.subr.bf16.mxu0 %v8986_v25 }
 0x7d6   :  { %6220 = vpow2.f32 %v2677_v63  ;;  %2823 = vadd.xlane.f32.xlu0 %v7732_v7  ;;  %v7992_v4 = vpop.eup %6210 }
 0x7d7   :  { %v7994_v37 = vpop.xlane.xlu0 %2683  ;;  %6222 = vpow2.f32 %v2681_v23 }
 0x7d8   :  { %v7996_v41 = vpop.eup %6212  ;;  %2855 = vadd.xlane.f32.xlu1 %v7754_v58  ;;  %6224 = vpow2.f32 %v2679_v3 }
 0x7d9   :  { %v7999_v31 = vpop.xlane.xlu1 %2685  ;;  %v2993_v53 = vpack.c.bf16 %v7996_v41, %v7992_v4  ;;  %v8010_v58 = vpop.eup %6214  ;;  %6226 = vrcp.f32 %v7978_v10 }
 0x7da   :  { %2819 = vadd.xlane.f32.xlu0 %v7716_v38  ;;  %v8015_v40 = vpop.eup %6216  ;;  %6228 = vrcp.f32 %v7999_v31 }
 0x7db   :  { %5766 = vmatpush3.bf16.xpose.msra.mxu1 %v2993_v53  ;;  %5784 = vmatpush3.bf16.xpose.msra.mxu0 %v3000_v28  ;;  %v8006_v7 = vpop.xlane.xlu0 %2689  ;;  %9183 = vst [vmem:[#allocation23_spill] sm:$0xff] %v8015_v40  ;;  %v2994_v36 = vpack.c.bf16 %v8015_v40, %v8010_v58  ;;  %v9185_v28 = vld [vmem:[#allocation28_spill] sm:$0xff]  ;;  %6230 = vrcp.f32 %v7994_v37 }
 0x7dc   :  { %2851 = vadd.xlane.f32.xlu1 %v7738_v62  ;;  %5767 = vmatprep.subr.bf16.mxu1 %v8986_v25 }
 0x7dd   :  { %v8012_v44 = vpop.xlane.xlu1 %2721  ;;  %5785 = vmatprep.subr.bf16.mxu0 %v8986_v25 }
 0x7de   :  { %2825 = vadd.xlane.f32.xlu0 %v7735_v2  ;;  %v8018_v38 = vpop.eup %6218 }
 0x7df   :  { %v2716_v16 = vpop.xlane.xlu0 %2715 }
 0x7e0   :  { %v8020_v45 = vpop.eup %6220  ;;  %2857 = vadd.xlane.f32.xlu1 %v7757_v6 }
 0x7e1   :  { %v2718_v62 = vpop.xlane.xlu1 %2717  ;;  %v3001_v63 = vpack.c.bf16 %v8020_v45, %v8018_v38  ;;  %v8037_v9 = vpop.eup %6222 }
 0x7e2   :  { %2821 = vadd.xlane.f32.xlu0 %v7718_v52  ;;  %9184 = vst [vmem:[#allocation42_spill] sm:$0xff] %v8037_v9  ;;  %v8040_v53 = vpop.eup %6224  ;;  %v919_v52 = vpack.c.bf16 %v9185_v28, %v9185_v28  ;;  %v9186_v28 = vld [vmem:[#allocation29_spill] sm:$0xff]  ;;  %6232 = vrcp.f32 %v2718_v62 }
 0x7e3   :  { %5768 = vmatpush3.bf16.xpose.msra.mxu1 %v2994_v36  ;;  %v8031_v2 = vpop.xlane.xlu0 %2695  ;;  %5786 = vmatpush3.bf16.xpose.msra.mxu0 %v3001_v63  ;;  %v3002_v3 = vpack.c.bf16 %v8037_v9, %v8040_v53  ;;  %6234 = vrcp.f32 %v7985_v54  ;;  %v9188_v62 = vld [vmem:[#allocation5_spill] sm:$0xff] }
 0x7e4   :  { %2853 = vadd.xlane.f32.xlu1 %v7740_v11  ;;  %5787 = vmatprep.subr.bf16.mxu0 %v8986_v25  ;;  %v5925_v11 = vld [vmem:[%s8778_s1 + $0x78] sm:$0xff]   ;;  %6236 = vrcp.f32 %v2716_v16  ;;  %v8100_v16 = vpop.eup %6226 }
 0x7e5   :  { %v8035_v6 = vpop.xlane.xlu1 %2727  ;;  %5793 = vmatprep.subr.bf16.mxu1 %v5924_v22  ;;  %6238 = vrcp.f32 %v8006_v7  ;;  %v5930_v7 = vld [vmem:[%s8778_s1 + $0xa0] sm:$0xff]  }
 0x7e6   :  { %2831 = vadd.xlane.f32.xlu0 %v7776_v1  ;;  %6240 = vrcp.f32 %v8012_v44 }
 0x7e7   :  { %v2692_v23 = vpop.xlane.xlu0 %2691 }
 0x7e8   :  { %2863 = vadd.xlane.f32.xlu1 %v7798_v33  ;;  %v5926_v33 = vld [vmem:[%s8778_s1 + $0x80] sm:$0xff]   ;;  %6242 = vrcp.f32 %v2692_v23 }
 0x7e9   :  { %v2724_v25 = vpop.xlane.xlu1 %2723 }
 0x7ea   :  { %5770 = vmatmul.mubr.bf16.vlgmr.msra.gmra.mrb[100].mxu1 %v919_v52  ;;  %2827 = vadd.xlane.f32.xlu0 %v7760_v34  ;;  %v920_v34 = vpack.c.bf16 %v9186_v28, %v9186_v28 }
 0x7eb   :  { %v8051_v1 = vpop.xlane.xlu0 %2697  ;;  %5788 = vmatpush3.bf16.xpose.msra.mxu0 %v3002_v3  ;;  %5794 = vmatpush3.bf16.msra.mxu1 %v5924_v22 }
 0x7ec   :  { %2859 = vadd.xlane.f32.xlu1 %v7782_v60  ;;  %5795 = vmatprep.subr.bf16.mxu1 %v5925_v11  ;;  %v5927_v60 = vld [vmem:[%s8778_s1 + $0x88] sm:$0xff]  }
 0x7ed   :  { %v8057_v36 = vpop.xlane.xlu1 %2729 }
 0x7ee   :  { %2833 = vadd.xlane.f32.xlu0 %v7779_v27  ;;  %v5928_v27 = vld [vmem:[%s8778_s1 + $0x90] sm:$0xff]  }
 0x7ef   :  { %v2694_v63 = vpop.xlane.xlu0 %2693  ;;  %5796 = vmatpush3.bf16.msra.mxu1 %v5925_v11  ;;  %v6229_v11 = vpop.eup %6228 }
 0x7f0   :  { %2865 = vadd.xlane.f32.xlu1 %v7801_v47  ;;  %5797 = vmatprep.subr.bf16.mxu1 %v5926_v33  ;;  %6244 = vrcp.f32 %v2694_v63 }
 0x7f1   :  { %v2726_v22 = vpop.xlane.xlu1 %2725  ;;  %6246 = vrcp.f32 %v2724_v25 }
 0x7f2   :  { %2829 = vadd.xlane.f32.xlu0 %v7762_v8  ;;  %5790 = vmatmul.mubr.bf16.vlgmr.msra.gmra.mrb[108].mxu0 %v920_v34  ;;  %v9187_v8 = vlaneseq  ;;  %6248 = vrcp.f32 %v2726_v22 }
 0x7f3   :  { %v8068_v52 = vpop.xlane.xlu0 %2703  ;;  %5798 = vmatpush3.bf16.msra.mxu1 %v5926_v33  ;;  %v6231_v33 = vpop.eup %6230  ;;  %6250 = vrcp.f32 %v8031_v2  ;;  %v5931_v2 = vld [vmem:[%s8778_s1 + $0xa8] sm:$0xff]  }
 0x7f4   :  { %2861 = vadd.xlane.f32.xlu1 %v7784_v21  ;;  %5799 = vmatprep.subr.bf16.mxu1 %v5927_v60  ;;  %v8080_v10 = vand.u32 127, %v9187_v8  ;;  %v5929_v21 = vld [vmem:[%s8778_s1 + $0x98] sm:$0xff]   ;;  %6252 = vrcp.f32 %v8035_v6 }
 0x7f5   :  { %v8076_v47 = vpop.xlane.xlu1 %2735  ;;  %6254 = vrcp.f32 %v8051_v1 }
 0x7f6   :  { %2839 = vadd.xlane.f32.xlu0 %v7820_v13  ;;  %v3585_v37 = vadd.s32 4294967288, %v8080_v10  ;;  %v3599_v3 = vadd.s32 4294967272, %v8080_v10  ;;  %v8113_v63 = vsub.s32 %v8080_v10, %v9188_v62  ;;  %v3620_v28 = vadd.s32 4294967248, %v8080_v10 }
 0x7f7   :  { %v2700_v31 = vpop.xlane.xlu0 %2699  ;;  %5800 = vmatpush3.bf16.msra.mxu1 %v5927_v60  ;;  %v6233_v60 = vpop.eup %6232  ;;  %v3627_v22 = vadd.s32 4294967240, %v8080_v10  ;;  %v3613_v6 = vadd.s32 4294967256, %v8080_v10  ;;  %6256 = vrcp.f32 %v8057_v36 }
 0x7f8   :  { %2871 = vadd.xlane.f32.xlu1 %v7842_v20  ;;  %5801 = vmatprep.subr.bf16.mxu1 %v5928_v27  ;;  %v3592_v20 = vadd.s32 4294967280, %v8080_v10  ;;  %v8103_v44 = vsub.s32 %v3585_v37, %v9188_v62  ;;  %9190 = vst [vmem:[#allocation40_spill] sm:$0xff] %v8113_v63  ;;  %v8127_v37 = vpop.eup %6234  ;;  %v8140_v1 = vsub.s32 %v3620_v28, %v9188_v62  ;;  %6258 = vrcp.f32 %v2700_v31 }
 0x7f9   :  { %v8089_v13 = vpop.xlane.xlu1 %2731  ;;  %v8148_v36 = vsub.s32 %v3627_v22, %v9188_v62 }
 0x7fa   :  { %2835 = vadd.xlane.f32.xlu0 %v7804_v61  ;;  %9189 = vst [vmem:[#allocation44_spill] sm:$0xff] %v8103_v44 }
 0x7fb   :  { %v8093_v54 = vpop.xlane.xlu0 %2705  ;;  %5802 = vmatpush3.bf16.msra.mxu1 %v5928_v27  ;;  %v8118_v27 = vsub.s32 %v3592_v20, %v9188_v62 }
 0x7fc   :  { %2867 = vadd.xlane.f32.xlu1 %v7826_v35  ;;  %5803 = vmatprep.subr.bf16.mxu1 %v5929_v21 }
 0x7fd   :  { %v8105_v61 = vpop.f32.mrb[88].mxu1  ;;  %v8107_v23 = vpop.xlane.xlu1 %2737 }
 0x7fe   :  { %v5651_v35 = vpop.f32.mrb[89].mxu1  ;;  %2841 = vadd.xlane.f32.xlu0 %v7823_v17  ;;  %v3606_v17 = vadd.s32 4294967264, %v8080_v10 }
 0x7ff   :  { %v3040_v25 = vpop.f32.mrb[90].mxu1  ;;  %v2702_v34 = vpop.xlane.xlu0 %2701  ;;  %5804 = vmatpush3.bf16.msra.mxu1 %v5929_v21  ;;  %v3589_v21 = vrot.slane %v6229_v11, %v8103_v44  ;;  %v3697_v11 = vrot.slane %v6233_v60, %v8103_v44  ;;  %v3702_v44 = vrot.slane %v8127_v37, %v8118_v27 }
 0x800   :  { %v5652_v8 = vpop.f32.mrb[91].mxu1  ;;  %2873 = vadd.xlane.f32.xlu1 %v7845_v59  ;;  %5805 = vmatprep.subr.bf16.mxu1 %v5930_v7  ;;  %v6237_v35 = vpop.eup %6236  ;;  %v8133_v25 = vsub.s32 %v3599_v3, %v9188_v62  ;;  %v8145_v3 = vsub.s32 %v3606_v17, %v9188_v62  ;;  %6260 = vrcp.f32 %v2702_v34  ;;  %v3596_v34 = vrot.slane %v8100_v16, %v8118_v27 }
 0x801   :  { %v2734_v20 = vpop.xlane.xlu1 %2733  ;;  %v6239_v59 = vpop.eup %6238  ;;  %v3584_v8 = vrot.slane %v6231_v33, %v8113_v63  ;;  %v3693_v31 = vrot.slane %v6237_v35, %v8113_v63  ;;  %6262 = vrcp.f32 %v8089_v13  ;;  %v3634_v13 = vadd.s32 4294967232, %v8080_v10 }
 0x802   :  { %2837 = vadd.xlane.f32.xlu0 %v7806_v12  ;;  %v8142_v40 = vpop.eup %6240  ;;  %6264 = vrcp.f32 %v2734_v20 }
 0x803   :  { %v2712_v9 = vpop.xlane.xlu0 %2711  ;;  %5806 = vmatpush3.bf16.msra.mxu1 %v5930_v7  ;;  %v6243_v12 = vpop.eup %6242  ;;  %v3591_v33 = vsel %vm3590_vm6, %v3589_v21, %v3584_v8  ;;  %v8154_v7 = vsub.s32 %v3613_v6, %v9188_v62  ;;  %v3603_v6 = vrot.slane %v6239_v59, %v8133_v25  ;;  %v3698_v35 = vsel %vm3590_vm6, %v3697_v11, %v3693_v31 }
 0x804   :  { %2869 = vadd.xlane.f32.xlu1 %v7828_v14  ;;  %5807 = vmatprep.subr.bf16.mxu1 %v5931_v2  ;;  %v6245_v17 = vpop.eup %6244  ;;  %v3648_v14 = vadd.s32 4294967216, %v8080_v10  ;;  %6266 = vrcp.f32 %v8068_v52  ;;  %v3598_v20 = vsel %vm3597_vm7, %v3596_v34, %v3591_v33  ;;  %v3703_v37 = vsel %vm3597_vm7, %v3702_v44, %v3698_v35 }
 0x805   :  { %v2744_v28 = vpop.xlane.xlu1 %2743  ;;  %v8157_v60 = vpop.f32.mrb[96].mxu0  ;;  %6268 = vrcp.f32 %v8076_v47  ;;  %v3617_v52 = vrot.slane %v6245_v17, %v8154_v7  ;;  %v3605_v47 = vsel %vm3604_vm8, %v3603_v6, %v3598_v20  ;;  %v3662_v20 = vadd.s32 4294967200, %v8080_v10 }
 0x806   :  { %2879 = vadd.xlane.f32.xlu0 %v7866_v15  ;;  %v5671_v22 = vpop.f32.mrb[97].mxu0  ;;  %v6247_v21 = vpop.eup %6246  ;;  %v3610_v15 = vrot.slane %v6243_v12, %v8145_v3  ;;  %6270 = vrcp.f32 %v8093_v54  ;;  %v8179_v12 = vsub.s32 %v3648_v14, %v9188_v62  ;;  %v3707_v54 = vrot.slane %v8142_v40, %v8133_v25 }
 0x807   :  { %v2708_v8 = vpop.xlane.xlu0 %2707  ;;  %v3080_v63 = vpop.f32.mrb[98].mxu0  ;;  %5808 = vmatpush3.bf16.msra.mxu1 %v5931_v2  ;;  %v3712_v33 = vrot.slane %v6247_v21, %v8145_v3  ;;  %6272 = vrcp.f32 %v8107_v23  ;;  %v8189_v14 = vsub.s32 %v3634_v13, %v9188_v62  ;;  %v3655_v13 = vadd.s32 4294967208, %v8080_v10 }
 0x808   :  { %v6249_v16 = vpop.eup %6248  ;;  %2911 = vadd.xlane.f32.xlu1 %v7892_v24  ;;  %v5672_v59 = vpop.f32.mrb[99].mxu0  ;;  %v3641_v63 = vadd.s32 4294967224, %v8080_v10  ;;  %6274 = vrcp.f32 %v2708_v8  ;;  %v3612_v22 = vsel %vm3611_vm9, %v3610_v15, %v3605_v47  ;;  %v3708_v23 = vsel %vm3604_vm8, %v3707_v54, %v3703_v37 }
 0x809   :  { %v6251_v11 = vpop.eup %6250  ;;  %v2740_v2 = vpop.xlane.xlu1 %2739  ;;  %v3717_v17 = vrot.slane %v6249_v16, %v8154_v7  ;;  %6276 = vrcp.f32 %v2712_v9  ;;  %v3619_v21 = vsel %vm3618_vm10, %v3617_v52, %v3612_v22  ;;  %v3713_v16 = vsel %vm3611_vm9, %v3712_v33, %v3708_v23 }
 0x80a   :  { %v6253_v31 = vpop.eup %6252  ;;  %2875 = vadd.xlane.f32.xlu0 %v7848_v26  ;;  %v8195_v40 = vsub.s32 %v3641_v63, %v9188_v62  ;;  %6278 = vrcp.f32 %v2740_v2  ;;  %v3624_v8 = vrot.slane %v6251_v11, %v8140_v1  ;;  %v3676_v54 = vadd.s32 4294967184, %v8080_v10 }
 0x80b   :  { %v6255_v24 = vpop.eup %6254  ;;  %v2714_v34 = vpop.xlane.xlu0 %2713  ;;  %6280 = vrcp.f32 %v2744_v28  ;;  %v3718_v9 = vsel %vm3618_vm10, %v3717_v17, %v3713_v16  ;;  %v3722_v52 = vrot.slane %v6253_v31, %v8140_v1  ;;  %v3669_v22 = vadd.s32 4294967192, %v8080_v10 }
 0x80c   :  { %v6257_v44 = vpop.eup %6256  ;;  %2877 = vadd.xlane.f32.xlu1 %v7850_v42  ;;  %6282 = vrcp.f32 %v2714_v34  ;;  %v3626_v11 = vsel %vm3625_vm11, %v3624_v8, %v3619_v21  ;;  %v3631_v28 = vrot.slane %v6255_v24, %v8148_v36 }
 0x80d   :  { %v6259_v26 = vpop.eup %6258  ;;  %v2746_v6 = vpop.xlane.xlu1 %2745  ;;  %v3723_v47 = vsel %vm3625_vm11, %v3722_v52, %v3718_v9  ;;  %v8240_v52 = vsub.s32 %v3669_v22, %v9188_v62 }
 0x80e   :  { %v6261_v35 = vpop.eup %6260  ;;  %2881 = vadd.xlane.f32.xlu0 %v7871_v57  ;;  %v3638_v63 = vrot.slane %v6259_v26, %v8189_v14  ;;  %v3633_v24 = vsel %vm3632_vm12, %v3631_v28, %v3626_v11 }
 0x80f   :  { %v6263_v42 = vpop.eup %6262  ;;  %v2710_v15 = vpop.xlane.xlu0 %2709  ;;  %v3645_v2 = vrot.slane %v6261_v35, %v8195_v40  ;;  %v8224_v35 = vsub.s32 %v3662_v20, %v9188_v62 }
 0x810   :  { %v6265_v59 = vpop.eup %6264  ;;  %6284 = vrcp.f32 %v2710_v15  ;;  %2913 = vadd.xlane.f32.xlu1 %v7897_v18  ;;  %v3732_v31 = vrot.slane %v6263_v42, %v8189_v14  ;;  %v3727_v18 = vrot.slane %v6257_v44, %v8148_v36  ;;  %v3640_v21 = vsel %vm3639_vm13, %v3638_v63, %v3633_v24 }
 0x811   :  { %v6267_v57 = vpop.eup %6266  ;;  %6286 = vrcp.f32 %v2746_v6  ;;  %v2742_v37 = vpop.xlane.xlu1 %2741  ;;  %v3737_v34 = vrot.slane %v6265_v59, %v8195_v40  ;;  %v8221_v6 = vsub.s32 %v3655_v13, %v9188_v62  ;;  %v3647_v8 = vsel %vm3646_vm14, %v3645_v2, %v3640_v21 }
 0x812   :  { %v6269_v33 = vpop.eup %6268  ;;  %6288 = vrcp.f32 %v2742_v37  ;;  %2907 = vadd.xlane.f32.xlu0 %v7874_v43  ;;  %v3728_v44 = vsel %vm3632_vm12, %v3727_v18, %v3723_v47  ;;  %v3683_v42 = vadd.s32 4294967176, %v8080_v10  ;;  %v3652_v15 = vrot.slane %v6267_v57, %v8179_v12  ;;  %v9191_v18 = vld [vmem:[#allocation41_spill] sm:$0xff] }
 0x813   :  { %v6271_v17 = vpop.eup %6270  ;;  %v8217_v26 = vpop.xlane.xlu0 %2751  ;;  %v3733_v13 = vsel %vm3639_vm13, %v3732_v31, %v3728_v44  ;;  %v8237_v59 = vsub.s32 %v3676_v54, %v9188_v62  ;;  %v3742_v10 = vrot.slane %v6269_v33, %v8179_v12 }
 0x814   :  { %v6273_v23 = vpop.eup %6272  ;;  %2909 = vadd.xlane.f32.xlu1 %v7876_v56  ;;  %v3738_v56 = vsel %vm3646_vm14, %v3737_v34, %v3733_v13  ;;  %v3659_v2 = vrot.slane %v6271_v17, %v8221_v6  ;;  %v8250_v47 = vsub.s32 %v3683_v42, %v9188_v62  ;;  %6290 = vrcp.f32 %v8217_v26 }
 0x815   :  { %v6275_v43 = vpop.eup %6274  ;;  %v8229_v16 = vpop.xlane.xlu1 %2783  ;;  %v3743_v33 = vsel %vm3653_vm15, %v3742_v10, %v3738_v56  ;;  %v3747_v24 = vrot.slane %v6273_v23, %v8221_v6 }
 0x816   :  { %v6277_v9 = vpop.eup %6276  ;;  %2887 = vadd.xlane.f32.xlu0 %v7916_v46  ;;  %v3666_v57 = vrot.slane %v6275_v43, %v8224_v35  ;;  %v3654_v46 = vsel %vm3653_vm15, %v3652_v15, %v3647_v8 }
 0x817   :  { %v6279_v20 = vpop.eup %6278  ;;  %v8242_v11 = vpop.xlane.xlu0 %2747  ;;  %v3661_v17 = vsel %vm3660_vm3, %v3659_v2, %v3654_v46  ;;  %v3680_v43 = vrot.slane %v6277_v9, %v8237_v59  ;;  %v3748_v13 = vsel %vm3660_vm3, %v3747_v24, %v3743_v33  ;;  %v9193_v33 = vld [vmem:[#allocation39_spill] sm:$0xff] }
 0x818   :  { %v6281_v63 = vpop.eup %6280  ;;  %2919 = vadd.xlane.f32.xlu1 %v7938_v29  ;;  %v3752_v54 = vrot.slane %v6279_v20, %v8224_v35  ;;  %v3668_v44 = vsel %vm3667_vm4, %v3666_v57, %v3661_v17 }
 0x819   :  { %v6283_v28 = vpop.eup %6282  ;;  %v2750_v37 = vpop.xlane.xlu1 %2749  ;;  %v3762_v20 = vrot.slane %v6281_v63, %v8237_v59 }
 0x81a   :  { %v6285_v31 = vpop.eup %6284  ;;  %2883 = vadd.xlane.f32.xlu0 %v9191_v18  ;;  %v3687_v23 = vrot.slane %v6283_v28, %v8250_v47  ;;  %6292 = vrcp.f32 %v2750_v37 }
 0x81b   :  { %v6287_v29 = vpop.eup %6286  ;;  %v3673_v34 = vrot.slane %v6285_v31, %v8240_v52  ;;  %v2754_v22 = vpop.xlane.xlu0 %2753  ;;  %v9192_v31 = vld [vmem:[#allocation37_spill] sm:$0xff]  ;;  %6294 = vrcp.f32 %v8242_v11 }
 0x81c   :  { %v6289_v21 = vpop.eup %6288  ;;  %2915 = vadd.xlane.f32.xlu1 %v7922_v49  ;;  %v3753_v49 = vsel %vm3667_vm4, %v3752_v54, %v3748_v13  ;;  %v3767_v46 = vrot.slane %v6287_v29, %v8250_v47 }
 0x81d   :  { %v3757_v8 = vrot.slane %v6289_v21, %v8240_v52  ;;  %v2786_v42 = vpop.xlane.xlu1 %2785  ;;  %v3675_v15 = vsel %vm3674_vm5, %v3673_v34, %v3668_v44 }
 0x81e   :  { %2889 = vadd.xlane.f32.xlu0 %v7919_v50  ;;  %v3682_v9 = vsel %vm3681_vm0, %v3680_v43, %v3675_v15 }
 0x81f   :  { %v2780_v56 = vpop.xlane.xlu0 %2779  ;;  %v3689_v10 = vsel %vm3688_vm2, %v3687_v23, %v3682_v9  ;;  %v3758_v57 = vsel %vm3674_vm5, %v3757_v8, %v3753_v49  ;;  %v9197_v49 = vld [vmem:[#allocation42_spill] sm:$0xff] }
 0x820   :  { %2921 = vadd.xlane.f32.xlu1 %v7941_v39  ;;  %v3763_v28 = vsel %vm3681_vm0, %v3762_v20, %v3758_v57  ;;  %v4305_v50 = vmul.f32 %v3689_v10, %v8105_v61 }
 0x821   :  { %v2782_v2 = vpop.xlane.xlu1 %2781  ;;  %v3768_v63 = vsel %vm3688_vm2, %v3767_v46, %v3763_v28 }
 0x822   :  { %2885 = vadd.xlane.f32.xlu0 %v9192_v31  ;;  %v4306_v54 = vmul.f32 %v3768_v63, %v8157_v60  ;;  %6296 = vrcp.f32 %v2782_v2 }
 0x823   :  { %v2760_v18 = vpop.xlane.xlu0 %2759  ;;  %6298 = vrcp.f32 %v8229_v16 }
 0x824   :  { %2917 = vadd.xlane.f32.xlu1 %v9193_v33  ;;  %v4313_v24 = vpack.c.bf16 %v4306_v54, %v4305_v50  ;;  %6300 = vrcp.f32 %v2780_v56 }
 0x825   :  { %v2792_v34 = vpop.xlane.xlu1 %2791  ;;  %6302 = vrcp.f32 %v2754_v22  ;;  %v9194_v22 = vld [vmem:[#allocation44_spill] sm:$0xff] }
 0x826   :  { %2895 = vadd.xlane.f32.xlu0 %v7960_v48  ;;  %5809 = vmatprep.mubr.bf16.mxu1 %v4313_v24  ;;  %6304 = vrcp.f32 %v2786_v42  ;;  %v9195_v42 = vld [vmem:[#allocation23_spill] sm:$0xff] }
 0x827   :  { %v2756_v39 = vpop.xlane.xlu0 %2755 }
 0x828   :  { %2927 = vadd.xlane.f32.xlu1 %v7983_v30  ;;  %6306 = vrcp.f32 %v2756_v39 }
 0x829   :  { %v2788_v29 = vpop.xlane.xlu1 %2787 }
 0x82a   :  { %2891 = vadd.xlane.f32.xlu0 %v7944_v5 }
 0x82b   :  { %v2762_v17 = vpop.xlane.xlu0 %2761 }
 0x82c   :  { %2923 = vadd.xlane.f32.xlu1 %v7966_v0 }
 0x82d   :  { %v2794_v61 = vpop.xlane.xlu1 %2793 }
 0x82e   :  { %2897 = vadd.xlane.f32.xlu0 %v7963_v55 }
 0x82f   :  { %v2758_v60 = vpop.xlane.xlu0 %2757 }
 0x830   :  { %2929 = vadd.xlane.f32.xlu1 %v7988_v51  ;;  %6308 = vrcp.f32 %v2758_v60 }
 0x831   :  { %v2790_v21 = vpop.xlane.xlu1 %2789  ;;  %6310 = vrcp.f32 %v2788_v29 }
 0x832   :  { %2893 = vadd.xlane.f32.xlu0 %v7946_v19  ;;  %6312 = vrcp.f32 %v2790_v21 }
 0x833   :  { %v8287_v48 = vpop.xlane.xlu0 %2767  ;;  %6314 = vrcp.f32 %v2760_v18 }
 0x834   :  { %2925 = vadd.xlane.f32.xlu1 %v7968_v32  ;;  %v6291_v32 = vpop.eup %6290  ;;  %6316 = vrcp.f32 %v2792_v34 }
 0x835   :  { %v8291_v5 = vpop.xlane.xlu1 %2799  ;;  %6318 = vrcp.f32 %v2762_v17  ;;  %v3781_v2 = vrot.slane %v6291_v32, %v8118_v27 }
 0x836   :  { %2903 = vadd.xlane.f32.xlu0 %v8010_v58  ;;  %v6293_v58 = vpop.eup %6292  ;;  %6320 = vrcp.f32 %v2794_v61 }
 0x837   :  { %v2764_v55 = vpop.xlane.xlu0 %2763  ;;  %v3776_v43 = vrot.slane %v6293_v58, %v9194_v22 }
 0x838   :  { %2935 = vadd.xlane.f32.xlu1 %v8040_v53  ;;  %v6295_v53 = vpop.eup %6294  ;;  %6322 = vrcp.f32 %v2764_v55 }
 0x839   :  { %v2796_v19 = vpop.xlane.xlu1 %2795 }
 0x83a   :  { %2899 = vadd.xlane.f32.xlu0 %v7992_v4  ;;  %v6297_v4 = vpop.eup %6296 }
 0x83b   :  { %v2770_v0 = vpop.xlane.xlu0 %2769  ;;  %v3855_v13 = vrot.slane %v6297_v4, %v9194_v22 }
 0x83c   :  { %2931 = vadd.xlane.f32.xlu1 %v8018_v38  ;;  %v6299_v38 = vpop.eup %6298 }
 0x83d   :  { %v8298_v30 = vpop.f32.mrb[92].mxu1  ;;  %v2802_v51 = vpop.xlane.xlu1 %2801  ;;  %v3860_v34 = vrot.slane %v6299_v38, %v8118_v27 }
 0x83e   :  { %v5691_v26 = vpop.f32.mrb[93].mxu1  ;;  %2901 = vadd.xlane.f32.xlu0 %v7996_v41  ;;  %v6301_v8 = vpop.eup %6300  ;;  %v9196_v41 = vld [vmem:[#allocation40_spill] sm:$0xff] }
 0x83f   :  { %v3120_v16 = vpop.f32.mrb[94].mxu1  ;;  %v2766_v11 = vpop.xlane.xlu0 %2765  ;;  %v3772_v23 = vrot.slane %v6295_v53, %v9196_v41  ;;  %v3851_v10 = vrot.slane %v6301_v8, %v9196_v41 }
 0x840   :  { %v5692_v37 = vpop.f32.mrb[95].mxu1  ;;  %2933 = vadd.xlane.f32.xlu1 %v8020_v45  ;;  %v6303_v15 = vpop.eup %6302  ;;  %6324 = vrcp.f32 %v2766_v11 }
 0x841   :  { %v2798_v44 = vpop.xlane.xlu1 %2797  ;;  %v6305_v9 = vpop.eup %6304  ;;  %v3777_v56 = vsel %vm3590_vm6, %v3776_v43, %v3772_v23  ;;  %6326 = vrcp.f32 %v2796_v19  ;;  %v3786_v50 = vrot.slane %v6303_v15, %v8133_v25  ;;  %v3856_v54 = vsel %vm3590_vm6, %v3855_v13, %v3851_v10 }
 0x842   :  { %2905 = vadd.xlane.f32.xlu0 %v9195_v42  ;;  %v6307_v45 = vpop.eup %6306  ;;  %6328 = vrcp.f32 %v2798_v44  ;;  %v3782_v39 = vsel %vm3597_vm7, %v3781_v2, %v3777_v56  ;;  %v3865_v26 = vrot.slane %v6305_v9, %v8133_v25 }
 0x843   :  { %v2776_v20 = vpop.xlane.xlu0 %2775  ;;  %v6309_v28 = vpop.eup %6308  ;;  %6330 = vrcp.f32 %v8287_v48  ;;  %v3791_v29 = vrot.slane %v6307_v45, %v8145_v3  ;;  %v3861_v48 = vsel %vm3597_vm7, %v3860_v34, %v3856_v54  ;;  %v3787_v58 = vsel %vm3604_vm8, %v3786_v50, %v3782_v39 }
 0x844   :  { %2937 = vadd.xlane.f32.xlu1 %v9197_v49  ;;  %v6311_v31 = vpop.eup %6310  ;;  %6332 = vrcp.f32 %v8291_v5  ;;  %v3796_v60 = vrot.slane %v6309_v28, %v8154_v7  ;;  %v3866_v4 = vsel %vm3604_vm8, %v3865_v26, %v3861_v48 }
 0x845   :  { %v2808_v57 = vpop.xlane.xlu1 %2807  ;;  %v8309_v46 = vpop.f32.mrb[100].mxu0  ;;  %6334 = vrcp.f32 %v2770_v0  ;;  %v3870_v19 = vrot.slane %v6311_v31, %v8145_v3  ;;  %v3792_v11 = vsel %vm3611_vm9, %v3791_v29, %v3787_v58 }
 0x846   :  { %v5711_v63 = vpop.f32.mrb[101].mxu0  ;;  %v6313_v24 = vpop.eup %6312  ;;  %6336 = vrcp.f32 %v2802_v51  ;;  %v3797_v37 = vsel %vm3618_vm10, %v3796_v60, %v3792_v11 }
 0x847   :  { %v2772_v18 = vpop.xlane.xlu0 %2771  ;;  %v3160_v33 = vpop.f32.mrb[102].mxu0  ;;  %v3875_v53 = vrot.slane %v6313_v24, %v8154_v7  ;;  %v3871_v44 = vsel %vm3611_vm9, %v3870_v19, %v3866_v4 }
 0x848   :  { %v5712_v17 = vpop.f32.mrb[103].mxu0  ;;  %v6315_v61 = vpop.eup %6314  ;;  %6338 = vrcp.f32 %v2772_v18 }
 0x849   :  { %v2804_v21 = vpop.xlane.xlu1 %2803  ;;  %v6317_v55 = vpop.eup %6316  ;;  %6340 = vrcp.f32 %v2776_v20  ;;  %v3801_v43 = vrot.slane %v6315_v61, %v8140_v1  ;;  %v3876_v42 = vsel %vm3618_vm10, %v3875_v53, %v3871_v44 }
 0x84a   :  { %v6319_v32 = vpop.eup %6318  ;;  %6342 = vrcp.f32 %v2804_v21  ;;  %v3880_v13 = vrot.slane %v6317_v55, %v8140_v1 }
 0x84b   :  { %v2778_v5 = vpop.xlane.xlu0 %2777  ;;  %v6321_v16 = vpop.eup %6320  ;;  %6344 = vrcp.f32 %v2808_v57  ;;  %v3802_v20 = vsel %vm3625_vm11, %v3801_v43, %v3797_v37  ;;  %v3806_v45 = vrot.slane %v6319_v32, %v8148_v36 }
 0x84c   :  { %v6323_v0 = vpop.eup %6322  ;;  %6346 = vrcp.f32 %v2778_v5  ;;  %v3881_v28 = vsel %vm3625_vm11, %v3880_v13, %v3876_v42  ;;  %v3885_v31 = vrot.slane %v6321_v16, %v8148_v36 }
 0x84d   :  { %v2810_v51 = vpop.xlane.xlu1 %2809  ;;  %v6325_v38 = vpop.eup %6324  ;;  %v3811_v9 = vrot.slane %v6323_v0, %v8189_v14  ;;  %v3807_v50 = vsel %vm3632_vm12, %v3806_v45, %v3802_v20 }
 0x84e   :  { %v6327_v8 = vpop.eup %6326  ;;  %v3816_v56 = vrot.slane %v6325_v38, %v8195_v40  ;;  %v3886_v39 = vsel %vm3632_vm12, %v3885_v31, %v3881_v28 }
 0x84f   :  { %v2774_v15 = vpop.xlane.xlu0 %2773  ;;  %v6329_v23 = vpop.eup %6328  ;;  %v3890_v2 = vrot.slane %v6327_v8, %v8189_v14  ;;  %v3812_v24 = vsel %vm3639_vm13, %v3811_v9, %v3807_v50 }
 0x850   :  { %6348 = vrcp.f32 %v2774_v15  ;;  %v6331_v49 = vpop.eup %6330  ;;  %v3895_v54 = vrot.slane %v6329_v23, %v8195_v40  ;;  %v3817_v29 = vsel %vm3646_vm14, %v3816_v56, %v3812_v24 }
 0x851   :  { %6350 = vrcp.f32 %v2810_v51  ;;  %v2806_v10 = vpop.xlane.xlu1 %2805  ;;  %v6333_v57 = vpop.eup %6332  ;;  %v3821_v60 = vrot.slane %v6331_v49, %v8179_v12  ;;  %v3891_v21 = vsel %vm3639_vm13, %v3890_v2, %v3886_v39 }
 0x852   :  { %6352 = vrcp.f32 %v2806_v10  ;;  %v6335_v63 = vpop.eup %6334  ;;  %v3896_v48 = vsel %vm3646_vm14, %v3895_v54, %v3891_v21  ;;  %v3900_v58 = vrot.slane %v6333_v57, %v8179_v12 }
 0x853   :  { %v2816_v18 = vpop.xlane.xlu0 %2815  ;;  %v6337_v33 = vpop.eup %6336  ;;  %v3822_v26 = vsel %vm3653_vm15, %v3821_v60, %v3817_v29  ;;  %v3826_v16 = vrot.slane %v6335_v63, %v8221_v6 }
 0x854   :  { %v6339_v34 = vpop.eup %6338  ;;  %v3901_v4 = vsel %vm3653_vm15, %v3900_v58, %v3896_v48  ;;  %v3905_v38 = vrot.slane %v6337_v33, %v8221_v6  ;;  %6354 = vrcp.f32 %v2816_v18 }
 0x855   :  { %v2848_v17 = vpop.xlane.xlu1 %2847  ;;  %v6341_v61 = vpop.eup %6340  ;;  %v3831_v53 = vrot.slane %v6339_v34, %v8224_v35  ;;  %v3827_v8 = vsel %vm3660_vm3, %v3826_v16, %v3822_v26 }
 0x856   :  { %v6343_v55 = vpop.eup %6342  ;;  %v3841_v15 = vrot.slane %v6341_v61, %v8237_v59  ;;  %v3906_v45 = vsel %vm3660_vm3, %v3905_v38, %v3901_v4 }
 0x857   :  { %v2812_v19 = vpop.xlane.xlu0 %2811  ;;  %v6345_v32 = vpop.eup %6344  ;;  %v3910_v37 = vrot.slane %v6343_v55, %v8224_v35  ;;  %v3832_v23 = vsel %vm3667_vm4, %v3831_v53, %v3827_v8 }
 0x858   :  { %v6347_v5 = vpop.eup %6346  ;;  %v3920_v56 = vrot.slane %v6345_v32, %v8237_v59 }
 0x859   :  { %v2814_v11 = vpop.xlane.xlu1 %2813  ;;  %v3846_v13 = vrot.slane %v6347_v5, %v8250_v47  ;;  %v3911_v57 = vsel %vm3667_vm4, %v3910_v37, %v3906_v45 }
 0x85a   :  { %v6349_v0 = vpop.eup %6348  ;;  %6356 = vrcp.f32 %v2814_v11 }
 0x85b   :  { %v6351_v51 = vpop.eup %6350  ;;  %v3836_v43 = vrot.slane %v6349_v0, %v8240_v52  ;;  %v2818_v44 = vpop.xlane.xlu0 %2817  ;;  %6358 = vrcp.f32 %v2812_v19 }
 0x85c   :  { %v6353_v42 = vpop.eup %6352  ;;  %v3925_v28 = vrot.slane %v6351_v51, %v8250_v47 }
 0x85d   :  { %v3915_v20 = vrot.slane %v6353_v42, %v8240_v52  ;;  %v2850_v9 = vpop.xlane.xlu1 %2849  ;;  %v3837_v49 = vsel %vm3674_vm5, %v3836_v43, %v3832_v23 }
 0x85e   :  { %v3842_v10 = vsel %vm3681_vm0, %v3841_v15, %v3837_v49  ;;  %v6355_v16 = vpop.eup %6354 }
 0x85f   :  { %v2844_v2 = vpop.xlane.xlu0 %2843  ;;  %v3847_v63 = vsel %vm3688_vm2, %v3846_v13, %v3842_v10  ;;  %v3916_v31 = vsel %vm3674_vm5, %v3915_v20, %v3911_v57 }
 0x860   :  { %v3921_v50 = vsel %vm3681_vm0, %v3920_v56, %v3916_v31  ;;  %v4307_v24 = vmul.f32 %v3847_v63, %v8298_v30 }
 0x861   :  { %v2846_v54 = vpop.xlane.xlu1 %2845  ;;  %v3926_v33 = vsel %vm3688_vm2, %v3925_v28, %v3921_v50 }
 0x862   :  { %v4308_v34 = vmul.f32 %v3926_v33, %v8309_v46  ;;  %6360 = vrcp.f32 %v2846_v54 }
 0x863   :  { %v2824_v39 = vpop.xlane.xlu0 %2823  ;;  %6362 = vrcp.f32 %v2848_v17 }
 0x864   :  { %v4314_v29 = vpack.c.bf16 %v4308_v34, %v4307_v24  ;;  %6364 = vrcp.f32 %v2844_v2  ;;  %v6357_v18 = vpop.eup %6356  ;;  %v3939_v2 = vrot.slane %v6355_v16, %v8118_v27 }
 0x865   :  { %v2856_v61 = vpop.xlane.xlu1 %2855  ;;  %6366 = vrcp.f32 %v2818_v44  ;;  %v6359_v19 = vpop.eup %6358  ;;  %v3934_v44 = vrot.slane %v6357_v18, %v9194_v22 }
 0x866   :  { %5810 = vmatmul.mubr.bf16.vlgmr.msra.gmra.mrb[104].mxu1 %v4314_v29  ;;  %6368 = vrcp.f32 %v2850_v9  ;;  %v3930_v23 = vrot.slane %v6359_v19, %v9196_v41 }
 0x867   :  { %v2820_v60 = vpop.xlane.xlu0 %2819 }
 0x868   :  { %6370 = vrcp.f32 %v2820_v60  ;;  %v3935_v45 = vsel %vm3590_vm6, %v3934_v44, %v3930_v23 }
 0x869   :  { %v2852_v21 = vpop.xlane.xlu1 %2851  ;;  %v3940_v29 = vsel %vm3597_vm7, %v3939_v2, %v3935_v45 }
 0x86b   :  { %v2826_v55 = vpop.xlane.xlu0 %2825 }
 0x86c   :  { %v6361_v51 = vpop.eup %6360 }
 0x86d   :  { %v2858_v48 = vpop.xlane.xlu1 %2857  ;;  %v6363_v43 = vpop.eup %6362  ;;  %v4013_v13 = vrot.slane %v6361_v51, %v9194_v22 }
 0x86e   :  { %v6365_v42 = vpop.eup %6364 }
 0x86f   :  { %v2822_v32 = vpop.xlane.xlu0 %2821  ;;  %v6367_v15 = vpop.eup %6366  ;;  %v4009_v56 = vrot.slane %v6365_v42, %v9196_v41 }
 0x870   :  { %6372 = vrcp.f32 %v2822_v32  ;;  %v6369_v9 = vpop.eup %6368  ;;  %v3944_v50 = vrot.slane %v6367_v15, %v8133_v25 }
 0x871   :  { %v2854_v58 = vpop.xlane.xlu1 %2853  ;;  %6374 = vrcp.f32 %v2852_v21  ;;  %v4014_v54 = vsel %vm3590_vm6, %v4013_v13, %v4009_v56  ;;  %v4023_v16 = vrot.slane %v6369_v9, %v8133_v25 }
 0x872   :  { %6376 = vrcp.f32 %v2854_v58  ;;  %v6371_v49 = vpop.eup %6370 }
 0x873   :  { %v2832_v26 = vpop.xlane.xlu0 %2831  ;;  %6378 = vrcp.f32 %v2824_v39  ;;  %v4018_v39 = vrot.slane %v6363_v43, %v8118_v27 }
 0x874   :  { %6380 = vrcp.f32 %v2856_v61  ;;  %v3949_v61 = vrot.slane %v6371_v49, %v8145_v3 }
 0x875   :  { %v2864_v53 = vpop.xlane.xlu1 %2863  ;;  %6382 = vrcp.f32 %v2826_v55  ;;  %v4019_v58 = vsel %vm3597_vm7, %v4018_v39, %v4014_v54 }
 0x876   :  { %6384 = vrcp.f32 %v2858_v48 }
 0x877   :  { %v2828_v30 = vpop.xlane.xlu0 %2827 }
 0x878   :  { %6386 = vrcp.f32 %v2828_v30 }
 0x879   :  { %v2860_v46 = vpop.xlane.xlu1 %2859 }
 0x87a   :  { %v6373_v28 = vpop.eup %6372 }
 0x87b   :  { %v2834_v5 = vpop.xlane.xlu0 %2833  ;;  %v6375_v31 = vpop.eup %6374  ;;  %v3954_v55 = vrot.slane %v6373_v28, %v8154_v7 }
 0x87c   :  { %v6377_v34 = vpop.eup %6376 }
 0x87d   :  { %v8372_v0 = vpop.f32.mrb[96].mxu1  ;;  %v2866_v4 = vpop.xlane.xlu1 %2865  ;;  %v4033_v18 = vrot.slane %v6377_v34, %v8154_v7 }
 0x87e   :  { %v5731_v11 = vpop.f32.mrb[97].mxu1  ;;  %v6379_v21 = vpop.eup %6378 }
 0x87f   :  { %v3200_v37 = vpop.f32.mrb[98].mxu1  ;;  %v2830_v17 = vpop.xlane.xlu0 %2829 }
 0x880   :  { %v5732_v38 = vpop.f32.mrb[99].mxu1  ;;  %6388 = vrcp.f32 %v2830_v17  ;;  %v6381_v32 = vpop.eup %6380  ;;  %v4024_v37 = vsel %vm3604_vm8, %v4023_v16, %v4019_v58 }
 0x881   :  { %v2862_v8 = vpop.xlane.xlu1 %2861  ;;  %6390 = vrcp.f32 %v2860_v46  ;;  %v6383_v30 = vpop.eup %6382  ;;  %v3945_v46 = vsel %vm3604_vm8, %v3944_v50, %v3940_v29  ;;  %v3959_v38 = vrot.slane %v6379_v21, %v8140_v1  ;;  %v4038_v23 = vrot.slane %v6381_v32, %v8140_v1 }
 0x882   :  { %6392 = vrcp.f32 %v2862_v8  ;;  %v6385_v11 = vpop.eup %6384  ;;  %v3950_v19 = vsel %vm3611_vm9, %v3949_v61, %v3945_v46  ;;  %v3964_v49 = vrot.slane %v6383_v30, %v8148_v36 }
 0x883   :  { %v2840_v20 = vpop.xlane.xlu0 %2839  ;;  %6394 = vrcp.f32 %v2832_v26  ;;  %v4028_v26 = vrot.slane %v6375_v31, %v8145_v3  ;;  %v3955_v17 = vsel %vm3618_vm10, %v3954_v55, %v3950_v19  ;;  %v4043_v31 = vrot.slane %v6385_v11, %v8148_v36 }
 0x884   :  { %6396 = vrcp.f32 %v2864_v53  ;;  %v3960_v13 = vsel %vm3625_vm11, %v3959_v38, %v3955_v17 }
 0x885   :  { %v2872_v10 = vpop.xlane.xlu1 %2871  ;;  %v8379_v57 = vpop.f32.mrb[104].mxu0  ;;  %6398 = vrcp.f32 %v2834_v5  ;;  %v4029_v43 = vsel %vm3611_vm9, %v4028_v26, %v4024_v37  ;;  %v3965_v50 = vsel %vm3632_vm12, %v3964_v49, %v3960_v13 }
 0x886   :  { %v5751_v63 = vpop.f32.mrb[105].mxu0  ;;  %6400 = vrcp.f32 %v2866_v4  ;;  %v6387_v5 = vpop.eup %6386  ;;  %v4034_v8 = vsel %vm3618_vm10, %v4033_v18, %v4029_v43 }
 0x887   :  { %v2836_v33 = vpop.xlane.xlu0 %2835  ;;  %v3240_v24 = vpop.f32.mrb[106].mxu0  ;;  %v4039_v28 = vsel %vm3625_vm11, %v4038_v23, %v4034_v8 }
 0x888   :  { %v5752_v60 = vpop.f32.mrb[107].mxu0  ;;  %6402 = vrcp.f32 %v2836_v33  ;;  %v4044_v29 = vsel %vm3632_vm12, %v4043_v31, %v4039_v28 }
 0x889   :  { %v2868_v48 = vpop.xlane.xlu1 %2867  ;;  %6404 = vrcp.f32 %v2840_v20  ;;  %v3969_v20 = vrot.slane %v6387_v5, %v8189_v14 }
 0x88a   :  { %6406 = vrcp.f32 %v2868_v48  ;;  %v6389_v51 = vpop.eup %6388 }
 0x88b   :  { %v2842_v53 = vpop.xlane.xlu0 %2841  ;;  %6408 = vrcp.f32 %v2872_v10  ;;  %v6391_v44 = vpop.eup %6390  ;;  %v3974_v45 = vrot.slane %v6389_v51, %v8195_v40  ;;  %v3970_v34 = vsel %vm3639_vm13, %v3969_v20, %v3965_v50 }
 0x88c   :  { %6410 = vrcp.f32 %v2842_v53  ;;  %v6393_v15 = vpop.eup %6392  ;;  %v4048_v2 = vrot.slane %v6391_v44, %v8189_v14 }
 0x88d   :  { %v2874_v4 = vpop.xlane.xlu1 %2873  ;;  %v6395_v9 = vpop.eup %6394  ;;  %v4053_v54 = vrot.slane %v6393_v15, %v8195_v40  ;;  %v3975_v61 = vsel %vm3646_vm14, %v3974_v45, %v3970_v34 }
 0x88e   :  { %v6397_v10 = vpop.eup %6396  ;;  %v3979_v55 = vrot.slane %v6395_v9, %v8179_v12  ;;  %v4049_v48 = vsel %vm3639_vm13, %v4048_v2, %v4044_v29 }
 0x88f   :  { %v2838_v42 = vpop.xlane.xlu0 %2837  ;;  %v6399_v63 = vpop.eup %6398  ;;  %v4054_v58 = vsel %vm3646_vm14, %v4053_v54, %v4049_v48  ;;  %v4058_v46 = vrot.slane %v6397_v10, %v8179_v12 }
 0x890   :  { %6412 = vrcp.f32 %v2838_v42  ;;  %v6401_v24 = vpop.eup %6400  ;;  %v3980_v18 = vsel %vm3653_vm15, %v3979_v55, %v3975_v61  ;;  %v3984_v11 = vrot.slane %v6399_v63, %v8221_v6 }
 0x891   :  { %6414 = vrcp.f32 %v2874_v4  ;;  %v2870_v56 = vpop.xlane.xlu1 %2869  ;;  %v4059_v17 = vsel %vm3653_vm15, %v4058_v46, %v4054_v58  ;;  %v4063_v51 = vrot.slane %v6401_v24, %v8221_v6 }
 0x892   :  { %6416 = vrcp.f32 %v2870_v56  ;;  %v6403_v39 = vpop.eup %6402  ;;  %v3985_v44 = vsel %vm3660_vm3, %v3984_v11, %v3980_v18 }
 0x893   :  { %v2880_v33 = vpop.xlane.xlu0 %2879  ;;  %v6405_v21 = vpop.eup %6404  ;;  %v3989_v16 = vrot.slane %v6403_v39, %v8224_v35  ;;  %v4064_v49 = vsel %vm3660_vm3, %v4063_v51, %v4059_v17 }
 0x894   :  { %v6407_v32 = vpop.eup %6406  ;;  %v3999_v42 = vrot.slane %v6405_v21, %v8237_v59  ;;  %6418 = vrcp.f32 %v2880_v33 }
 0x895   :  { %v2912_v60 = vpop.xlane.xlu1 %2911  ;;  %v6409_v30 = vpop.eup %6408  ;;  %v4068_v37 = vrot.slane %v6407_v32, %v8224_v35  ;;  %v3990_v15 = vsel %vm3667_vm4, %v3989_v16, %v3985_v44 }
 0x896   :  { %v6411_v53 = vpop.eup %6410  ;;  %v4078_v45 = vrot.slane %v6409_v30, %v8237_v59 }
 0x897   :  { %v2876_v26 = vpop.xlane.xlu0 %2875  ;;  %v4004_v9 = vrot.slane %v6411_v53, %v8250_v47  ;;  %v4069_v10 = vsel %vm3667_vm4, %v4068_v37, %v4064_v49 }
 0x899   :  { %v2878_v19 = vpop.xlane.xlu1 %2877 }
 0x89a   :  { %v6413_v5 = vpop.eup %6412  ;;  %6420 = vrcp.f32 %v2878_v19 }
 0x89b   :  { %v6415_v4 = vpop.eup %6414  ;;  %v3994_v38 = vrot.slane %v6413_v5, %v8240_v52  ;;  %v2882_v43 = vpop.xlane.xlu0 %2881  ;;  %6422 = vrcp.f32 %v2876_v26 }
 0x89c   :  { %v6417_v8 = vpop.eup %6416  ;;  %v4083_v31 = vrot.slane %v6415_v4, %v8250_v47 }
 0x89d   :  { %v4073_v23 = vrot.slane %v6417_v8, %v8240_v52  ;;  %v2914_v13 = vpop.xlane.xlu1 %2913  ;;  %v3995_v20 = vsel %vm3674_vm5, %v3994_v38, %v3990_v15 }
 0x89e   :  { %v4000_v56 = vsel %vm3681_vm0, %v3999_v42, %v3995_v20  ;;  %v6419_v18 = vpop.eup %6418 }
 0x89f   :  { %v2908_v28 = vpop.xlane.xlu0 %2907  ;;  %v4005_v2 = vsel %vm3688_vm2, %v4004_v9, %v4000_v56  ;;  %v4074_v63 = vsel %vm3674_vm5, %v4073_v23, %v4069_v10  ;;  %v4097_v56 = vrot.slane %v6419_v18, %v8118_v27 }
 0x8a0   :  { %v4079_v50 = vsel %vm3681_vm0, %v4078_v45, %v4074_v63  ;;  %v4309_v34 = vmul.f32 %v4005_v2, %v8372_v0 }
 0x8a1   :  { %v2910_v54 = vpop.xlane.xlu1 %2909  ;;  %v4084_v24 = vsel %vm3688_vm2, %v4083_v31, %v4079_v50 }
 0x8a2   :  { %v4310_v39 = vmul.f32 %v4084_v24, %v8379_v57  ;;  %6424 = vrcp.f32 %v2910_v54 }
 0x8a3   :  { %v2888_v29 = vpop.xlane.xlu0 %2887  ;;  %6426 = vrcp.f32 %v2912_v60 }
 0x8a4   :  { %v4315_v61 = vpack.c.bf16 %v4310_v39, %v4309_v34  ;;  %6428 = vrcp.f32 %v2908_v28  ;;  %v6421_v11 = vpop.eup %6420 }
 0x8a5   :  { %v2920_v21 = vpop.xlane.xlu1 %2919  ;;  %6430 = vrcp.f32 %v2882_v43  ;;  %v6423_v33 = vpop.eup %6422  ;;  %v4092_v60 = vrot.slane %v6421_v11, %v9194_v22 }
 0x8a6   :  { %5813 = vmatprep.mubr.bf16.mxu1 %v4315_v61  ;;  %6432 = vrcp.f32 %v2914_v13  ;;  %v4088_v43 = vrot.slane %v6423_v33, %v9196_v41 }
 0x8a7   :  { %v2884_v55 = vpop.xlane.xlu0 %2883 }
 0x8a8   :  { %6434 = vrcp.f32 %v2884_v55  ;;  %v4093_v20 = vsel %vm3590_vm6, %v4092_v60, %v4088_v43 }
 0x8a9   :  { %v2916_v48 = vpop.xlane.xlu1 %2915  ;;  %v4098_v50 = vsel %vm3597_vm7, %v4097_v56, %v4093_v20 }
 0x8ab   :  { %v2890_v32 = vpop.xlane.xlu0 %2889 }
 0x8ac   :  { %v6425_v26 = vpop.eup %6424 }
 0x8ad   :  { %v2922_v58 = vpop.xlane.xlu1 %2921  ;;  %v6427_v5 = vpop.eup %6426  ;;  %v4171_v44 = vrot.slane %v6425_v26, %v9194_v22 }
 0x8ae   :  { %v6429_v4 = vpop.eup %6428  ;;  %v4176_v31 = vrot.slane %v6427_v5, %v8118_v27 }
 0x8af   :  { %v2886_v30 = vpop.xlane.xlu0 %2885  ;;  %v6431_v38 = vpop.eup %6430  ;;  %v4167_v9 = vrot.slane %v6429_v4, %v9196_v41 }
 0x8b0   :  { %6436 = vrcp.f32 %v2886_v30  ;;  %v6433_v15 = vpop.eup %6432  ;;  %v4102_v22 = vrot.slane %v6431_v38, %v8133_v25 }
 0x8b1   :  { %v2918_v46 = vpop.xlane.xlu1 %2917  ;;  %6438 = vrcp.f32 %v2916_v48  ;;  %v4172_v28 = vsel %vm3590_vm6, %v4171_v44, %v4167_v9 }
 0x8b2   :  { %6440 = vrcp.f32 %v2918_v46  ;;  %v6435_v13 = vpop.eup %6434  ;;  %v4177_v61 = vsel %vm3597_vm7, %v4176_v31, %v4172_v28  ;;  %v4103_v27 = vsel %vm3604_vm8, %v4102_v22, %v4098_v50 }
 0x8b3   :  { %v2896_v16 = vpop.xlane.xlu0 %2895  ;;  %6442 = vrcp.f32 %v2888_v29  ;;  %v4107_v54 = vrot.slane %v6435_v13, %v8145_v3 }
 0x8b4   :  { %6444 = vrcp.f32 %v2920_v21 }
 0x8b5   :  { %v2928_v0 = vpop.xlane.xlu1 %2927  ;;  %6446 = vrcp.f32 %v2890_v32  ;;  %v4181_v32 = vrot.slane %v6433_v15, %v8133_v25 }
 0x8b6   :  { %6448 = vrcp.f32 %v2922_v58 }
 0x8b7   :  { %v2892_v57 = vpop.xlane.xlu0 %2891 }
 0x8b8   :  { %6450 = vrcp.f32 %v2892_v57  ;;  %v4108_v57 = vsel %vm3611_vm9, %v4107_v54, %v4103_v27 }
 0x8b9   :  { %v2924_v53 = vpop.xlane.xlu1 %2923 }
 0x8ba   :  { %v6437_v45 = vpop.eup %6436 }
 0x8bb   :  { %v2898_v19 = vpop.xlane.xlu0 %2897  ;;  %v6439_v10 = vpop.eup %6438  ;;  %v4112_v24 = vrot.slane %v6437_v45, %v8154_v7 }
 0x8bc   :  { %v6441_v63 = vpop.eup %6440  ;;  %v4186_v21 = vrot.slane %v6439_v10, %v8145_v3  ;;  %v4182_v3 = vsel %vm3604_vm8, %v4181_v32, %v4177_v61 }
 0x8bd   :  { %v8441_v37 = vpop.f32.mrb[100].mxu1  ;;  %v2930_v17 = vpop.xlane.xlu1 %2929  ;;  %v4191_v58 = vrot.slane %v6441_v63, %v8154_v7 }
 0x8be   :  { %v5771_v51 = vpop.f32.mrb[101].mxu1  ;;  %v6443_v41 = vpop.eup %6442  ;;  %v4187_v7 = vsel %vm3611_vm9, %v4186_v21, %v4182_v3 }
 0x8bf   :  { %v3280_v8 = vpop.f32.mrb[102].mxu1  ;;  %v2894_v42 = vpop.xlane.xlu0 %2893  ;;  %v4117_v25 = vrot.slane %v6443_v41, %v8140_v1  ;;  %v4192_v26 = vsel %vm3618_vm10, %v4191_v58, %v4187_v7 }
 0x8c0   :  { %6452 = vrcp.f32 %v2894_v42  ;;  %v5772_v23 = vpop.f32.mrb[103].mxu1  ;;  %v6445_v29 = vpop.eup %6444 }
 0x8c1   :  { %6454 = vrcp.f32 %v2924_v53  ;;  %v2926_v49 = vpop.xlane.xlu1 %2925  ;;  %v6447_v48 = vpop.eup %6446  ;;  %v4196_v4 = vrot.slane %v6445_v29, %v8140_v1 }
 0x8c2   :  { %6456 = vrcp.f32 %v2926_v49 }
 0x8c3   :  { %v2904_v2 = vpop.xlane.xlu0 %2903  ;;  %6458 = vrcp.f32 %v2896_v16  ;;  %v6449_v16 = vpop.eup %6448  ;;  %v4197_v8 = vsel %vm3625_vm11, %v4196_v4, %v4192_v26 }
 0x8c4   :  { %6460 = vrcp.f32 %v2928_v0  ;;  %v6451_v53 = vpop.eup %6450  ;;  %v4113_v0 = vsel %vm3618_vm10, %v4112_v24, %v4108_v57  ;;  %v4201_v23 = vrot.slane %v6449_v16, %v8148_v36 }
 0x8c5   :  { %v2936_v34 = vpop.xlane.xlu1 %2935  ;;  %v8454_v39 = vpop.f32.mrb[108].mxu0  ;;  %6462 = vrcp.f32 %v2898_v19  ;;  %v4118_v51 = vsel %vm3625_vm11, %v4117_v25, %v4113_v0  ;;  %v4127_v38 = vrot.slane %v6451_v53, %v8189_v14 }
 0x8c6   :  { %v5791_v55 = vpop.f32.mrb[109].mxu0  ;;  %v4202_v56 = vsel %vm3632_vm12, %v4201_v23, %v4197_v8 }
 0x8c7   :  { %v2900_v30 = vpop.xlane.xlu0 %2899  ;;  %v3320_v46 = vpop.f32.mrb[110].mxu0 }
 0x8c8   :  { %6464 = vrcp.f32 %v2900_v30  ;;  %v5792_v18 = vpop.f32.mrb[111].mxu0 }
 0x8c9   :  { %6466 = vrcp.f32 %v2930_v17  ;;  %v2932_v11 = vpop.xlane.xlu1 %2931  ;;  %v4122_v17 = vrot.slane %v6447_v48, %v8148_v36 }
 0x8ca   :  { %v6453_v33 = vpop.eup %6452  ;;  %6468 = vrcp.f32 %v2932_v11 }
 0x8cb   :  { %v6455_v19 = vpop.eup %6454  ;;  %v2902_v5 = vpop.xlane.xlu0 %2901  ;;  %v4132_v43 = vrot.slane %v6453_v33, %v8195_v40  ;;  %v4123_v1 = vsel %vm3632_vm12, %v4122_v17, %v4118_v51 }
 0x8cc   :  { %v6457_v60 = vpop.eup %6456  ;;  %6470 = vrcp.f32 %v2902_v5  ;;  %v4206_v42 = vrot.slane %v6455_v19, %v8189_v14  ;;  %v4128_v49 = vsel %vm3639_vm13, %v4127_v38, %v4123_v1  ;;  %v9200_v1 = vld [vmem:[#allocation16_spill] sm:$0xff] }
 0x8cd   :  { %6472 = vrcp.f32 %v2904_v2  ;;  %v2934_v44 = vpop.xlane.xlu1 %2933  ;;  %v6459_v15 = vpop.eup %6458  ;;  %v4211_v13 = vrot.slane %v6457_v60, %v8195_v40  ;;  %v4133_v10 = vsel %vm3646_vm14, %v4132_v43, %v4128_v49  ;;  %v9198_v43 = vld [vmem:[#allocation14_spill] sm:$0xff] }
 0x8ce   :  { %6474 = vrcp.f32 %v2934_v44  ;;  %v6461_v9 = vpop.eup %6460  ;;  %v4137_v28 = vrot.slane %v6459_v15, %v8179_v12  ;;  %v4207_v36 = vsel %vm3639_vm13, %v4206_v42, %v4202_v56  ;;  %v9199_v42 = vld [vmem:[#allocation15_spill] sm:$0xff] }
 0x8cf   :  { %6476 = vrcp.f32 %v2936_v34  ;;  %v2906_v20 = vpop.xlane.xlu0 %2905  ;;  %v6463_v45 = vpop.eup %6462  ;;  %v4212_v40 = vsel %vm3646_vm14, %v4211_v13, %v4207_v36  ;;  %v4216_v31 = vrot.slane %v6461_v9, %v8179_v12  ;;  %v9204_v36 = vld [vmem:[#allocation20_spill] sm:$0xff] }
 0x8d0   :  { %6478 = vrcp.f32 %v2906_v20  ;;  %v4138_v54 = vsel %vm3653_vm15, %v4137_v28, %v4133_v10  ;;  %v4142_v41 = vrot.slane %v6463_v45, %v8221_v6  ;;  %v9201_v20 = vld [vmem:[#allocation17_spill] sm:$0xff]  ;;  %v9202_v45 = vld [vmem:[#allocation18_spill] sm:$0xff] }
 0x8d1   :  { %v2938_v14 = vpop.xlane.xlu1 %2937  ;;  %v4217_v29 = vsel %vm3653_vm15, %v4216_v31, %v4212_v40  ;;  %vm9226_vm15 = vcmask 785408  }
 0x8d2   :  { %v6465_v22 = vpop.eup %6464  ;;  %6480 = vrcp.f32 %v2938_v14  ;;  %v4143_v48 = vsel %vm3660_vm3, %v4142_v41, %v4138_v54  ;;  %v9203_v14 = vld [vmem:[#allocation19_spill] sm:$0xff] }
 0x8d3   :  { %v6467_v2 = vpop.eup %6466  ;;  %v4147_v50 = vrot.slane %v6465_v22, %v8224_v35 }
 0x8d4   :  { %v6469_v63 = vpop.eup %6468  ;;  %v4221_v21 = vrot.slane %v6467_v2, %v8221_v6 }
 0x8d5   :  { %v4226_v34 = vrot.slane %v6469_v63, %v8224_v35  ;;  %v4148_v12 = vsel %vm3667_vm4, %v4147_v50, %v4143_v48  ;;  %v9205_v63 = vld [vmem:[#allocation21_spill] sm:$0xff] }
 0x8d6   :  { %v6471_v24 = vpop.eup %6470  ;;  %v4222_v46 = vsel %vm3660_vm3, %v4221_v21, %v4217_v29  ;;  %vm9227_vm3 = vmmov %vm9226_vm15 }
 0x8d7   :  { %v6473_v61 = vpop.eup %6472  ;;  %v4152_v55 = vrot.slane %v6471_v24, %v8240_v52  ;;  %v4227_v57 = vsel %vm3667_vm4, %v4226_v34, %v4222_v46  ;;  %vm9228_vm4 = vmmov %vm9227_vm3 }
 0x8d8   :  { %v6475_v27 = vpop.eup %6474  ;;  %v4157_v16 = vrot.slane %v6473_v61, %v8237_v59 }
 0x8d9   :  { %v6477_v32 = vpop.eup %6476  ;;  %v4231_v58 = vrot.slane %v6475_v27, %v8240_v52  ;;  %v4153_v30 = vsel %vm3674_vm5, %v4152_v55, %v4148_v12 }
 0x8da   :  { %v6479_v35 = vpop.eup %6478  ;;  %v4236_v3 = vrot.slane %v6477_v32, %v8237_v59  ;;  %v4158_v0 = vsel %vm3681_vm0, %v4157_v16, %v4153_v30 }
 0x8db   :  { %v4162_v6 = vrot.slane %v6479_v35, %v8250_v47  ;;  %v4232_v18 = vsel %vm3674_vm5, %v4231_v58, %v4227_v57  ;;  %vm9229_vm5 = vmmov %vm9227_vm3 }
 0x8dc   :  { %v6481_v53 = vpop.eup %6480  ;;  %v4237_v33 = vsel %vm3681_vm0, %v4236_v3, %v4232_v18  ;;  %vm9206_vm0 = vcmask 523264  }
 0x8dd   :  { %v4163_v52 = vsel %vm3688_vm2, %v4162_v6, %v4158_v0  ;;  %v4241_v11 = vrot.slane %v6481_v53, %v8250_v47  ;;  %vm9208_vm6 = vmmov %vm9206_vm0 }
 0x8de   :  { %v4311_v7 = vmul.f32 %v4163_v52, %v8441_v37  ;;  %vm9209_vm7 = vmmov %vm9206_vm0 }
 0x8df   :  { %v4242_v25 = vsel %vm3688_vm2, %v4241_v11, %v4237_v33  ;;  %vm9207_vm2 = vmmov %vm9206_vm0 }
 0x8e0   :  { %v4312_v19 = vmul.f32 %v4242_v25, %v8454_v39  ;;  %vm9219_vm8 = vmmov %vm9206_vm0 }
 0x8e1   :  { %vm9220_vm9 = vmmov %vm9206_vm0 }
 0x8e2   :  { %v4316_v26 = vpack.c.bf16 %v4312_v19, %v4311_v7  ;;  %vm9221_vm10 = vmmov %vm9206_vm0 }
 0x8e3   :  { %vm9222_vm11 = vmmov %vm9206_vm0 }
 0x8e4   :  { %5814 = vmatmul.mubr.bf16.gmra.mrb[108].mxu1 %v4316_v26  ;;  %vm9223_vm12 = vmmov %vm9206_vm0 }
 0x8e5   :  { %vm9224_vm13 = vmmov %vm9206_vm0 }
 0x8e6   :  { %vm9225_vm14 = vmmov %vm9206_vm0 }
 0x939   :  { %v5811_v5 = vpop.f32.mrb[104].mxu1 }
 0x93a   :  { %v4399_v60 = vpop.f32.mrb[105].mxu1 }
 0x93b   :  { %4438 = vrot.lane.b32.xlu0 %v4399_v60, %s6547_s9  ;;  %v5812_v59 = vpop.f32.mrb[106].mxu1 }
 0x93c   :  { %v4402_v4 = vpop.f32.mrb[107].mxu1 }
 0x93d   :  { %4440 = vrot.lane.b32.xlu1 %v4402_v4, %s6547_s9 }
 0x93f   :  { %4444 = vrot.lane.b32.xlu0 %v5812_v59, %s6547_s9 }
 0x941   :  { %4442 = vrot.lane.b32.xlu1 %v5811_v5, %s6547_s9 }
 0x9ad   :  { %v4439_v17 = vpop.permute.xlu0 %4438 }
 0x9ae   :  { %v4462_v44 = vadd.f32 %v4439_v17, %v9198_v43 }
 0x9af   :  { %v4441_v39 = vpop.permute.xlu1 %4440 }
 0x9b0   :  { %v4463_v15 = vadd.f32 %v4441_v39, %v9199_v42 }
 0x9b1   :  { %v4445_v23 = vpop.permute.xlu0 %4444 }
 0x9b2   :  { %v4465_v9 = vadd.f32 %v4445_v23, %v9201_v20 }
 0x9b3   :  { %v4443_v8 = vpop.permute.xlu1 %4442 }
 0x9b4   :  { %v4464_v13 = vadd.f32 %v4443_v8, %v9200_v1 }
 0x9b7   :  { %v5815_v47 = vpop.f32.mrb[108].mxu1 }
 0x9b8   :  { %v4415_v51 = vpop.f32.mrb[109].mxu1 }
 0x9b9   :  { %4446 = vrot.lane.b32.xlu1 %v4415_v51, %s6547_s9  ;;  %v5816_v37 = vpop.f32.mrb[110].mxu1 }
 0x9ba   :  { %v4418_v38 = vpop.f32.mrb[111].mxu1 }
 0x9bb   :  { %4448 = vrot.lane.b32.xlu0 %v4418_v38, %s6547_s9 }
 0x9bd   :  { %4450 = vrot.lane.b32.xlu1 %v5815_v47, %s6547_s9 }
 0x9bf   :  { %4452 = vrot.lane.b32.xlu0 %v5816_v37, %s6547_s9 }
 0x9c1   :  { %4478 = vrot.lane.b32.xlu1 %v4462_v44, %s6550_s2 }
 0x9c3   :  { %4480 = vrot.lane.b32.xlu0 %v4463_v15, %s6550_s2 }
 0x9c5   :  { %4482 = vrot.lane.b32.xlu1 %v4464_v13, %s6550_s2 }
 0x9c7   :  { %4484 = vrot.lane.b32.xlu0 %v4465_v9, %s6550_s2 }
 0xa2b   :  { %v4447_v49 = vpop.permute.xlu1 %4446 }
 0xa2c   :  { %v4466_v56 = vadd.f32 %v4447_v49, %v9202_v45 }
 0xa2d   :  { %v4449_v10 = vpop.permute.xlu0 %4448 }
 0xa2e   :  { %v4467_v22 = vadd.f32 %v4449_v10, %v9203_v14  ;;  %4486 = vrot.lane.b32.xlu1 %v4466_v56, %s6550_s2 }
 0xa2f   :  { %v4451_v28 = vpop.permute.xlu1 %4450 }
 0xa30   :  { %v4468_v2 = vadd.f32 %v4451_v28, %v9204_v36  ;;  %4488 = vrot.lane.b32.xlu0 %v4467_v22, %s6550_s2 }
 0xa31   :  { %v4453_v40 = vpop.permute.xlu0 %4452 }
 0xa32   :  { %v4469_v31 = vadd.f32 %v4453_v40, %v9205_v63  ;;  %4490 = vrot.lane.b32.xlu1 %v4468_v2, %s6550_s2 }
 0xa33   :  { %v4479_v50 = vpop.permute.xlu1 %4478 }
 0xa34   :  { %4492 = vrot.lane.b32.xlu0 %v4469_v31, %s6550_s2  ;;  %v4502_v34 = vsel %vm270_vm1, %v4479_v50, 0.0 }
 0xa35   :  { %v4481_v54 = vpop.permute.xlu0 %4480 }
 0xa36   :  { %v4505_v41 = vsel %vm270_vm1, %v4481_v54, 0.0 }
 0xa37   :  { %v4483_v24 = vpop.permute.xlu1 %4482 }
 0xa38   :  { %v4508_v29 = vsel %vm270_vm1, %v4483_v24, 0.0 }
 0xa39   :  { %v4485_v61 = vpop.permute.xlu0 %4484 }
 0xa3a   :  { %v4511_v21 = vsel %vm270_vm1, %v4485_v61, 0.0 }
 0xa53   :  { %4506 = vadd.xlane.f32.xlu0 %v4505_v41 }
 0xa56   :  { %4503 = vadd.xlane.f32.xlu1 %v4502_v34 }
 0xa57   :  { %4509 = vadd.xlane.f32.xlu0 %v4508_v29 }
 0xa5a   :  { %4512 = vadd.xlane.f32.xlu1 %v4511_v21 }
 0xaa0   :  { %v4487_v55 = vpop.permute.xlu1 %4486 }
 0xaa1   :  { %v4514_v48 = vsel %vm270_vm1, %v4487_v55, 0.0 }
 0xaa2   :  { %4515 = vadd.xlane.f32.xlu0 %v4514_v48  ;;  %v4489_v27 = vpop.permute.xlu0 %4488  ;;  %v4657_v48 = vsub.s32 5, %v9188_v62 }
 0xaa3   :  { %v4517_v12 = vsel %vm270_vm1, %v4489_v27, 0.0  ;;  %v4641_v27 = vsub.s32 4, %v9188_v62 }
 0xaa4   :  { %v4491_v32 = vpop.permute.xlu1 %4490  ;;  %4518 = vadd.xlane.f32.xlu1 %v4517_v12  ;;  %v8593_v12 = vld [vmem:[%s8780_s3] sm:$0xff] }
 0xaa5   :  { %v4520_v58 = vsel %vm270_vm1, %v4491_v32, 0.0  ;;  %v4658_v32 = vrot.slane %v8593_v12, %v4657_v48 }
 0xaa6   :  { %4521 = vadd.xlane.f32.xlu0 %v4520_v58  ;;  %v4493_v30 = vpop.permute.xlu0 %4492  ;;  %v4642_v58 = vrot.slane %v8593_v12, %v4641_v27 }
 0xaa7   :  { %v4523_v46 = vsel %vm270_vm1, %v4493_v30, 0.0  ;;  %v8602_v30 = vld [vmem:[%s8777_s0] sm:$0xff] }
 0xaa8   :  { %4524 = vadd.xlane.f32.xlu1 %v4523_v46  ;;  %v8607_v46 = vld [vmem:[%s8777_s0 + $0x8] sm:$0xff] }
 0xae0   :  { %v4507_v35 = vpop.xlane.xlu0 %4506 }
 0xae1   :  { %v4528_v16 = vmul.f32 0.03125, %v4507_v35  ;;  %v5862_v35 = vpack.i.bf16 %v8607_v46, %v8602_v30 }
 0xae3   :  { %v8540_v57 = vsub.f32 %v4463_v15, %v4528_v16  ;;  %v4504_v6 = vpop.xlane.xlu1 %4503  ;;  %v8615_v16 = vld [vmem:[%s8777_s0 + $0x10] sm:$0xff] }
 0xae4   :  { %v4527_v18 = vmul.f32 0.03125, %v4504_v6  ;;  %v4510_v53 = vpop.xlane.xlu0 %4509  ;;  %v8620_v6 = vld [vmem:[%s8777_s0 + $0x18] sm:$0xff] }
 0xae5   :  { %v4544_v3 = vmul.f32 %v8540_v57, %v8540_v57  ;;  %v4529_v0 = vmul.f32 0.03125, %v4510_v53  ;;  %v8628_v53 = vld [vmem:[%s8777_s0 + $0x20] sm:$0xff] }
 0xae6   :  { %v8544_v52 = vsub.f32 %v4462_v44, %v4527_v18  ;;  %v5877_v18 = vpack.i.bf16 %v8620_v6, %v8615_v16 }
 0xae7   :  { %v8546_v11 = vsub.f32 %v4464_v13, %v4529_v0  ;;  %v4513_v33 = vpop.xlane.xlu1 %4512  ;;  %4561 = vrot.lane.b32.xlu1 %v4544_v3, %s6550_s2  ;;  %v8633_v3 = vld [vmem:[%s8777_s0 + $0x28] sm:$0xff] }
 0xae8   :  { %v4543_v25 = vmul.f32 %v8544_v52, %v8544_v52  ;;  %v4530_v7 = vmul.f32 0.03125, %v4513_v33  ;;  %v5882_v0 = vpack.i.bf16 %v8633_v3, %v8628_v53  ;;  %v8641_v33 = vld [vmem:[%s8777_s0 + $0x30] sm:$0xff] }
 0xae9   :  { %v4545_v19 = vmul.f32 %v8546_v11, %v8546_v11 }
 0xaea   :  { %v8553_v26 = vsub.f32 %v4465_v9, %v4530_v7  ;;  %4559 = vrot.lane.b32.xlu0 %v4543_v25, %s6550_s2  ;;  %v8646_v25 = vld [vmem:[%s8777_s0 + $0x38] sm:$0xff] }
 0xaeb   :  { %4563 = vrot.lane.b32.xlu1 %v4545_v19, %s6550_s2  ;;  %v5897_v7 = vpack.i.bf16 %v8646_v25, %v8641_v33  ;;  %v5932_v19 = vld [vmem:[%s8778_s1 + $0xb0] sm:$0xff]  }
 0xaec   :  { %v4546_v5 = vmul.f32 %v8553_v26, %v8553_v26  ;;  %5817 = vmatprep.subr.bf16.mxu0 %v5932_v19 }
 0xaed   :  { %5818 = vmatpush3.bf16.msra.mxu0 %v5932_v19 }
 0xaee   :  { %4565 = vrot.lane.b32.xlu0 %v4546_v5, %s6550_s2  ;;  %v5933_v5 = vld [vmem:[%s8778_s1 + $0xb8] sm:$0xff]  }
 0xaef   :  { %5819 = vmatprep.subr.bf16.mxu0 %v5933_v5 }
 0xaf1   :  { %5820 = vmatpush3.bf16.msra.mxu0 %v5933_v5 }
 0xb2f   :  { %v4516_v60 = vpop.xlane.xlu0 %4515 }
 0xb30   :  { %v4531_v59 = vmul.f32 0.03125, %v4516_v60 }
 0xb31   :  { %v4519_v4 = vpop.xlane.xlu1 %4518 }
 0xb32   :  { %v8560_v47 = vsub.f32 %v4466_v56, %v4531_v59  ;;  %v4532_v51 = vmul.f32 0.03125, %v4519_v4 }
 0xb33   :  { %v4522_v37 = vpop.xlane.xlu0 %4521 }
 0xb34   :  { %v4547_v39 = vmul.f32 %v8560_v47, %v8560_v47  ;;  %v8564_v38 = vsub.f32 %v4467_v22, %v4532_v51  ;;  %v4533_v17 = vmul.f32 0.03125, %v4522_v37 }
 0xb35   :  { %v4525_v44 = vpop.xlane.xlu1 %4524 }
 0xb36   :  { %v4548_v8 = vmul.f32 %v8564_v38, %v8564_v38  ;;  %v8568_v15 = vsub.f32 %v4468_v2, %v4533_v17  ;;  %v4534_v23 = vmul.f32 0.03125, %v4525_v44  ;;  %4567 = vrot.lane.b32.xlu1 %v4547_v39, %s6550_s2 }
 0xb38   :  { %v4549_v13 = vmul.f32 %v8568_v15, %v8568_v15  ;;  %v8573_v9 = vsub.f32 %v4469_v31, %v4534_v23  ;;  %4569 = vrot.lane.b32.xlu0 %v4548_v8, %s6550_s2 }
 0xb3a   :  { %v4550_v49 = vmul.f32 %v8573_v9, %v8573_v9  ;;  %4571 = vrot.lane.b32.xlu1 %v4549_v13, %s6550_s2 }
 0xb3c   :  { %4573 = vrot.lane.b32.xlu0 %v4550_v49, %s6550_s2 }
 0xb59   :  { %v4562_v56 = vpop.permute.xlu1 %4561 }
 0xb5a   :  { %v4586_v10 = vsel %vm270_vm1, %v4562_v56, 0.0 }
 0xb5b   :  { %4587 = vadd.xlane.f32.xlu0 %v4586_v10 }
 0xb5c   :  { %v4560_v22 = vpop.permute.xlu0 %4559 }
 0xb5d   :  { %v4583_v28 = vsel %vm270_vm1, %v4560_v22, 0.0  ;;  %v4564_v2 = vpop.permute.xlu1 %4563 }
 0xb5e   :  { %v4589_v40 = vsel %vm270_vm1, %v4564_v2, 0.0  ;;  %4584 = vadd.xlane.f32.xlu1 %v4583_v28  ;;  %v5934_v2 = vld [vmem:[%s8778_s1 + $0xc0] sm:$0xff]  }
 0xb5f   :  { %4590 = vadd.xlane.f32.xlu0 %v4589_v40  ;;  %5821 = vmatprep.subr.bf16.mxu0 %v5934_v2 }
 0xb60   :  { %v4566_v31 = vpop.permute.xlu0 %4565  ;;  %5822 = vmatpush3.bf16.msra.mxu0 %v5934_v2 }
 0xb61   :  { %v4592_v50 = vsel %vm270_vm1, %v4566_v31, 0.0 }
 0xb62   :  { %4593 = vadd.xlane.f32.xlu1 %v4592_v50 }
 0xba8   :  { %v4568_v54 = vpop.permute.xlu1 %4567 }
 0xba9   :  { %v4595_v21 = vsel %vm270_vm1, %v4568_v54, 0.0 }
 0xbaa   :  { %v4570_v41 = vpop.permute.xlu0 %4569 }
 0xbab   :  { %v4598_v55 = vsel %vm270_vm1, %v4570_v41, 0.0 }
 0xbac   :  { %v4572_v24 = vpop.permute.xlu1 %4571 }
 0xbad   :  { %v4601_v34 = vsel %vm270_vm1, %v4572_v24, 0.0 }
 0xbae   :  { %4602 = vadd.xlane.f32.xlu0 %v4601_v34  ;;  %v4574_v29 = vpop.permute.xlu0 %4573 }
 0xbaf   :  { %v4604_v61 = vsel %vm270_vm1, %v4574_v29, 0.0 }
 0xbb0   :  { %4605 = vadd.xlane.f32.xlu1 %v4604_v61 }
 0xbb2   :  { %4596 = vadd.xlane.f32.xlu0 %v4595_v21 }
 0xbb4   :  { %4599 = vadd.xlane.f32.xlu1 %v4598_v55  ;;  %v5935_v55 = vld [vmem:[%s8778_s1 + $0xc8] sm:$0xff]  }
 0xbb5   :  { %5823 = vmatprep.subr.bf16.mxu0 %v5935_v55 }
 0xbb6   :  { %5824 = vmatpush3.bf16.msra.mxu0 %v5935_v55 }
 0xbc5   :  { %4660 = vrot.lane.b32.xlu1 %v4658_v32, %s6547_s9 }
 0xbc8   :  { %4644 = vrot.lane.b32.xlu0 %v4642_v58, %s6547_s9 }
 0xbcc   :  { %5863 = vrot.lane.b32.xlu0 %v5862_v35, %s6550_s2 }
 0xbd0   :  { %5878 = vrot.lane.b32.xlu0 %v5877_v18, %s6550_s2 }
 0xbd4   :  { %5883 = vrot.lane.b32.xlu0 %v5882_v0, %s6550_s2 }
 0xbd8   :  { %5898 = vrot.lane.b32.xlu0 %v5897_v7, %s6550_s2 }
 0xbe8   :  { %v4588_v60 = vpop.xlane.xlu0 %4587 }
 0xbe9   :  { %v4608_v51 = vmul.f32 0.03125, %v4588_v60 }
 0xbeb   :  { %v4585_v59 = vpop.xlane.xlu1 %4584  ;;  %v4616_v8 = vadd.f32 1e-05, %v4608_v51 }
 0xbec   :  { %v4591_v4 = vpop.xlane.xlu0 %4590  ;;  %v4607_v39 = vmul.f32 0.03125, %v4585_v59 }
 0xbed   :  { %v4609_v17 = vmul.f32 0.03125, %v4591_v4  ;;  %6482 = vrsqrt.f32 %v4616_v8 }
 0xbee   :  { %v4615_v23 = vadd.f32 1e-05, %v4607_v39 }
 0xbef   :  { %v4594_v37 = vpop.xlane.xlu1 %4593  ;;  %v4617_v13 = vadd.f32 1e-05, %v4609_v17 }
 0xbf0   :  { %v4610_v44 = vmul.f32 0.03125, %v4594_v37  ;;  %6484 = vrsqrt.f32 %v4615_v23 }
 0xbf1   :  { %6486 = vrsqrt.f32 %v4617_v13 }
 0xbf2   :  { %v4618_v49 = vadd.f32 1e-05, %v4610_v44 }
 0xbf4   :  { %6488 = vrsqrt.f32 %v4618_v49 }
 0xbf7   :  { %v6483_v22 = vpop.eup %6482 }
 0xbf8   :  { %v4632_v61 = vmul.f32 %v6483_v22, %v8540_v57 }
 0xbfa   :  { %v6485_v40 = vpop.eup %6484 }
 0xbfb   :  { %v6487_v50 = vpop.eup %6486  ;;  %v4631_v48 = vmul.f32 %v6485_v40, %v8544_v52 }
 0xbfc   :  { %v4633_v58 = vmul.f32 %v6487_v50, %v8546_v11 }
 0xbfe   :  { %v6489_v24 = vpop.eup %6488 }
 0xbff   :  { %v4634_v35 = vmul.f32 %v6489_v24, %v8553_v26 }
 0xc3b   :  { %v4603_v56 = vpop.xlane.xlu0 %4602 }
 0xc3c   :  { %v4613_v10 = vmul.f32 0.03125, %v4603_v56 }
 0xc3d   :  { %v4606_v28 = vpop.xlane.xlu1 %4605 }
 0xc3e   :  { %v4614_v31 = vmul.f32 0.03125, %v4606_v28  ;;  %v4621_v54 = vadd.f32 1e-05, %v4613_v10 }
 0xc3f   :  { %v4597_v41 = vpop.xlane.xlu0 %4596 }
 0xc40   :  { %v4622_v34 = vadd.f32 1e-05, %v4614_v31  ;;  %v4611_v29 = vmul.f32 0.03125, %v4597_v41 }
 0xc41   :  { %v4600_v21 = vpop.xlane.xlu1 %4599 }
 0xc42   :  { %6490 = vrsqrt.f32 %v4622_v34  ;;  %v4619_v27 = vadd.f32 1e-05, %v4611_v29  ;;  %v4612_v32 = vmul.f32 0.03125, %v4600_v21 }
 0xc43   :  { %6492 = vrsqrt.f32 %v4621_v54  ;;  %v4645_v18 = vpop.permute.xlu0 %4644 }
 0xc44   :  { %6494 = vrsqrt.f32 %v4619_v27  ;;  %v4620_v0 = vadd.f32 1e-05, %v4612_v32  ;;  %v4647_v57 = vmul.f32 %v4645_v18, %v4631_v48  ;;  %v4648_v7 = vmul.f32 %v4645_v18, %v4632_v61 }
 0xc45   :  { %v4661_v19 = vpop.permute.xlu1 %4660  ;;  %v4649_v5 = vmul.f32 %v4645_v18, %v4633_v58  ;;  %v4650_v60 = vmul.f32 %v4645_v18, %v4634_v35 }
 0xc46   :  { %6496 = vrsqrt.f32 %v4620_v0  ;;  %v4663_v52 = vadd.f32 %v4661_v19, %v4647_v57  ;;  %v4664_v59 = vadd.f32 %v4661_v19, %v4648_v7 }
 0xc47   :  { %v4665_v51 = vadd.f32 %v4661_v19, %v4649_v5  ;;  %v4666_v37 = vadd.f32 %v4661_v19, %v4650_v60 }
 0xc48   :  { %v5867_v4 = vpack.i.bf16 %v4664_v59, %v4663_v52 }
 0xc49   :  { %v5872_v26 = vpack.i.bf16 %v4666_v37, %v4665_v51 }
 0xc4a   :  { %5868 = vrot.lane.b32.xlu1 %v5867_v4, %s6550_s2 }
 0xc4c   :  { %v6491_v11 = vpop.eup %6490 }
 0xc4d   :  { %v6493_v39 = vpop.eup %6492  ;;  %v4638_v44 = vmul.f32 %v6491_v11, %v8573_v9 }
 0xc4e   :  { %v6495_v17 = vpop.eup %6494  ;;  %5873 = vrot.lane.b32.xlu1 %v5872_v26, %s6550_s2  ;;  %v4637_v13 = vmul.f32 %v6493_v39, %v8568_v15 }
 0xc4f   :  { %v4635_v8 = vmul.f32 %v6495_v17, %v8560_v47  ;;  %v4654_v22 = vmul.f32 %v4645_v18, %v4638_v44  ;;  %v5864_v47 = vpop.permute.xlu0 %5863 }
 0xc50   :  { %v6497_v23 = vpop.eup %6496  ;;  %v4653_v40 = vmul.f32 %v4645_v18, %v4637_v13  ;;  %v5866_v9 = vunpack.i.h.bf16 %v5864_v47  ;;  %v5865_v24 = vunpack.i.l.bf16 %v5864_v47 }
 0xc51   :  { %v4636_v49 = vmul.f32 %v6497_v23, %v8564_v38  ;;  %v4651_v56 = vmul.f32 %v4645_v18, %v4635_v8  ;;  %v4670_v50 = vadd.f32 %v4661_v19, %v4654_v22  ;;  %v4749_v22 = vsub.s32 6, %v9188_v62 }
 0xc52   :  { %v4669_v54 = vadd.f32 %v4661_v19, %v4653_v40 }
 0xc53   :  { %v4652_v10 = vmul.f32 %v4645_v18, %v4636_v49  ;;  %v4667_v28 = vadd.f32 %v4661_v19, %v4651_v56  ;;  %v5879_v34 = vpop.permute.xlu0 %5878  ;;  %v5936_v56 = vld [vmem:[%s8778_s1 + $0xd0] sm:$0xff]  }
 0xc54   :  { %v5892_v41 = vpack.i.bf16 %v4670_v50, %v4669_v54  ;;  %v5881_v55 = vunpack.i.h.bf16 %v5879_v34  ;;  %v5880_v48 = vunpack.i.l.bf16 %v5879_v34  ;;  %5833 = vmatprep.subr.bf16.mxu1 %v5936_v56 }
 0xc55   :  { %v4668_v2 = vadd.f32 %v4661_v19, %v4652_v10  ;;  %5834 = vmatpush3.bf16.msra.mxu1 %v5936_v56  ;;  %v5937_v10 = vld [vmem:[%s8778_s1 + $0xd8] sm:$0xff]   ;;  %s6553_s1 = smov [#allocation2]  }
 0xc56   :  { %5835 = vmatprep.subr.bf16.mxu1 %v5937_v10 }
 0xc57   :  { %v5887_v31 = vpack.i.bf16 %v4668_v2, %v4667_v28  ;;  %v5884_v7 = vpop.permute.xlu0 %5883  ;;  %v4750_v28 = vrot.slane %v8593_v12, %v4749_v22 }
 0xc58   :  { %v5886_v19 = vunpack.i.h.bf16 %v5884_v7  ;;  %v5885_v5 = vunpack.i.l.bf16 %v5884_v7 }
 0xc59   :  { %5888 = vrot.lane.b32.xlu1 %v5887_v31, %s6550_s2  ;;  %5836 = vmatpush3.bf16.msra.mxu1 %v5937_v10 }
 0xc5b   :  { %v5899_v52 = vpop.permute.xlu0 %5898 }
 0xc5c   :  { %v5901_v11 = vunpack.i.h.bf16 %v5899_v52  ;;  %v5900_v26 = vunpack.i.l.bf16 %v5899_v52 }
 0xc5d   :  { %5893 = vrot.lane.b32.xlu1 %v5892_v41, %s6550_s2 }
 0xcbc   :  { %v5869_v15 = vpop.permute.xlu1 %5868 }
 0xcbd   :  { %v5871_v38 = vunpack.i.h.bf16 %v5869_v15  ;;  %v5870_v29 = vunpack.i.l.bf16 %v5869_v15 }
 0xcbf   :  { %v4736_v61 = vsel %vm270_vm1, %v5871_v38, %v5866_v9  ;;  %v4735_v21 = vsel %vm270_vm1, %v5870_v29, %v5865_v24 }
 0xcc0   :  { %v4743_v27 = vpack.c.bf16 %v4736_v61, %v4735_v21  ;;  %v5874_v32 = vpop.permute.xlu1 %5873 }
 0xcc1   :  { %v5876_v58 = vunpack.i.h.bf16 %v5874_v32  ;;  %v5875_v35 = vunpack.i.l.bf16 %v5874_v32 }
 0xcc2   :  { %5825 = vmatprep.mubr.msk.bf16.mxu0 %vm9206_vm0, %v4743_v27 }
 0xcc3   :  { %v4738_v18 = vsel %vm270_vm1, %v5876_v58, %v5881_v55  ;;  %v4737_v0 = vsel %vm270_vm1, %v5875_v35, %v5880_v48 }
 0xcc4   :  { %v4744_v57 = vpack.c.bf16 %v4738_v18, %v4737_v0 }
 0xcc6   :  { %5826 = vmatmul.mubr.msk.bf16.vlgmr.msra.gmra.mrb[112].mxu0 %vm9207_vm2, %v4744_v57 }
 0xccb   :  { %v5889_v60 = vpop.permute.xlu1 %5888 }
 0xccc   :  { %v5891_v59 = vunpack.i.h.bf16 %v5889_v60  ;;  %v5890_v4 = vunpack.i.l.bf16 %v5889_v60 }
 0xcce   :  { %v4740_v51 = vsel %vm270_vm1, %v5891_v59, %v5886_v19  ;;  %v4739_v37 = vsel %vm270_vm1, %v5890_v4, %v5885_v5 }
 0xccf   :  { %v4745_v39 = vpack.c.bf16 %v4740_v51, %v4739_v37  ;;  %v5894_v17 = vpop.permute.xlu1 %5893 }
 0xcd0   :  { %v5896_v44 = vunpack.i.h.bf16 %v5894_v17  ;;  %v5895_v8 = vunpack.i.l.bf16 %v5894_v17 }
 0xcd1   :  { %5829 = vmatprep.mubr.msk.bf16.mxu0 %vm9208_vm6, %v4745_v39 }
 0xcd2   :  { %v4742_v23 = vsel %vm270_vm1, %v5896_v44, %v5901_v11  ;;  %v4741_v13 = vsel %vm270_vm1, %v5895_v8, %v5900_v26 }
 0xcd3   :  { %v4746_v49 = vpack.c.bf16 %v4742_v23, %v4741_v13 }
 0xcd5   :  { %5830 = vmatmul.mubr.msk.bf16.gmra.mrb[116].mxu0 %vm9209_vm7, %v4746_v49 }
 0xd99   :  { %v5827_v2 = vpop.f32.mrb[112].mxu0 }
 0xd9a   :  { %v4830_v40 = vadd.f32 %v5827_v2, %v4750_v28  ;;  %v4821_v31 = vpop.f32.mrb[113].mxu0 }
 0xd9b   :  { %v4822_v50 = vadd.f32 %v4821_v31, %v4750_v28  ;;  %v5828_v54 = vpop.f32.mrb[114].mxu0 }
 0xd9c   :  { %v4862_v41 = vmul.f32 0.70710677, %v4830_v40  ;;  %v4833_v47 = vadd.f32 %v5828_v54, %v4750_v28  ;;  %v4824_v9 = vpop.f32.mrb[115].mxu0  ;;  %v4854_v58 = vmul.f32 0.5, %v4830_v40 }
 0xd9d   :  { %v4860_v24 = vmul.f32 0.70710677, %v4822_v50  ;;  %v4825_v15 = vadd.f32 %v4824_v9, %v4750_v28  ;;  %v4852_v7 = vmul.f32 0.5, %v4822_v50 }
 0xd9e   :  { %6498 = verf.f32 %v4862_v41  ;;  %v4863_v34 = vmul.f32 0.70710677, %v4833_v47  ;;  %v4855_v19 = vmul.f32 0.5, %v4833_v47 }
 0xd9f   :  { %6500 = verf.f32 %v4860_v24  ;;  %v4861_v38 = vmul.f32 0.70710677, %v4825_v15  ;;  %v4853_v4 = vmul.f32 0.5, %v4825_v15 }
 0xda0   :  { %6502 = verf.f32 %v4863_v34 }
 0xda1   :  { %6504 = verf.f32 %v4861_v38 }
 0xda8   :  { %v6499_v29 = vpop.eup %6498  ;;  %v5831_v61 = vpop.f32.mrb[116].mxu0 }
 0xda9   :  { %v6501_v21 = vpop.eup %6500  ;;  %v4878_v55 = vadd.f32 1.0, %v6499_v29  ;;  %v4846_v48 = vadd.f32 %v5831_v61, %v4750_v28  ;;  %v4837_v27 = vpop.f32.mrb[117].mxu0 }
 0xdaa   :  { %v6503_v32 = vpop.eup %6502  ;;  %v4876_v35 = vadd.f32 1.0, %v6501_v21  ;;  %v4838_v18 = vadd.f32 %v4837_v27, %v4750_v28  ;;  %v5832_v0 = vpop.f32.mrb[118].mxu0 }
 0xdab   :  { %v6505_v57 = vpop.eup %6504  ;;  %v4879_v5 = vadd.f32 1.0, %v6503_v32  ;;  %v4866_v60 = vmul.f32 0.70710677, %v4846_v48  ;;  %v4840_v52 = vpop.f32.mrb[119].mxu0  ;;  %v4886_v59 = vmul.f32 %v4878_v55, %v4854_v58  ;;  %v4849_v26 = vadd.f32 %v5832_v0, %v4750_v28 }
 0xdac   :  { %v4877_v51 = vadd.f32 1.0, %v6505_v57  ;;  %v4864_v37 = vmul.f32 0.70710677, %v4838_v18  ;;  %v4841_v39 = vadd.f32 %v4840_v52, %v4750_v28  ;;  %v4884_v17 = vmul.f32 %v4876_v35, %v4852_v7 }
 0xdad   :  { %v4887_v11 = vmul.f32 %v4879_v5, %v4855_v19  ;;  %6506 = verf.f32 %v4866_v60  ;;  %v4867_v23 = vmul.f32 0.70710677, %v4849_v26  ;;  %v4858_v28 = vmul.f32 0.5, %v4846_v48 }
 0xdae   :  { %v4885_v44 = vmul.f32 %v4877_v51, %v4853_v4  ;;  %6508 = verf.f32 %v4864_v37  ;;  %v4865_v49 = vmul.f32 0.70710677, %v4841_v39  ;;  %v4859_v50 = vmul.f32 0.5, %v4849_v26  ;;  %v9211_v37 = vld [vmem:[#allocation6_spill] sm:$0xff] }
 0xdaf   :  { %v4893_v8 = vpack.c.bf16 %v4887_v11, %v4886_v59  ;;  %6510 = verf.f32 %v4867_v23  ;;  %v4856_v41 = vmul.f32 0.5, %v4838_v18  ;;  %v4857_v47 = vmul.f32 0.5, %v4841_v39  ;;  %v9213_v39 = vld [vmem:[#allocation8_spill] sm:$0xff]  ;;  %v9215_v23 = vld [vmem:[#allocation13_spill] sm:$0xff] }
 0xdb0   :  { %v4892_v13 = vpack.c.bf16 %v4885_v44, %v4884_v17  ;;  %6512 = verf.f32 %v4865_v49  ;;  %v5027_v35 = vsub.s32 7, %v9188_v62  ;;  %v9210_v62 = vld [vmem:[#allocation7_spill] sm:$0xff]  ;;  %v5041_v11 = vsel %vm270_vm1, %v9211_v37, %v9198_v43  ;;  %v9217_v49 = vld [vmem:[#allocation12_spill] sm:$0xff] }
 0xdb1   :  { %v5043_v51 = vsel %vm270_vm1, %v9210_v62, %v9200_v1  ;;  %v5044_v17 = vsel %vm270_vm1, %v9213_v39, %v9201_v20  ;;  %v9214_v44 = vld [vmem:[#allocation11_spill] sm:$0xff]  ;;  %v5046_v1 = vsel %vm270_vm1, %v9215_v23, %v9203_v14 }
 0xdb2   :  { %5837 = vmatprep.mubr.msk.bf16.mxu1 %vm270_vm1, %v4892_v13  ;;  %v5028_v57 = vrot.slane %v8593_v12, %v5027_v35  ;;  %v9212_v12 = vld [vmem:[#allocation9_spill] sm:$0xff]  ;;  %v9216_v13 = vld [vmem:[#allocation10_spill] sm:$0xff] }
 0xdb3   :  { %5838 = vmatmul.mubr.msk.bf16.vlgmr.msra.gmra.mrb[112].mxu1 %vm270_vm1, %v4893_v8  ;;  %v5042_v26 = vsel %vm270_vm1, %v9212_v12, %v9199_v42  ;;  %v5045_v8 = vsel %vm270_vm1, %v9214_v44, %v9202_v45  ;;  %v5047_v43 = vsel %vm270_vm1, %v9216_v13, %v9204_v36  ;;  %v5048_v42 = vsel %vm270_vm1, %v9217_v49, %v9205_v63 }
 0xdb7   :  { %v6507_v56 = vpop.eup %6506 }
 0xdb8   :  { %v6509_v10 = vpop.eup %6508  ;;  %v4882_v22 = vadd.f32 1.0, %v6507_v56 }
 0xdb9   :  { %v6511_v2 = vpop.eup %6510  ;;  %v4880_v40 = vadd.f32 1.0, %v6509_v10 }
 0xdba   :  { %v6513_v31 = vpop.eup %6512  ;;  %v4883_v54 = vadd.f32 1.0, %v6511_v2  ;;  %v4890_v24 = vmul.f32 %v4882_v22, %v4858_v28 }
 0xdbb   :  { %v4881_v9 = vadd.f32 1.0, %v6513_v31  ;;  %v4888_v34 = vmul.f32 %v4880_v40, %v4856_v41 }
 0xdbc   :  { %v4891_v15 = vmul.f32 %v4883_v54, %v4859_v50 }
 0xdbd   :  { %v4889_v38 = vmul.f32 %v4881_v9, %v4857_v47 }
 0xdbe   :  { %v4895_v29 = vpack.c.bf16 %v4891_v15, %v4890_v24 }
 0xdbf   :  { %v4894_v61 = vpack.c.bf16 %v4889_v38, %v4888_v34 }
 0xdc1   :  { %5841 = vmatprep.mubr.msk.bf16.mxu1 %vm270_vm1, %v4894_v61 }
 0xdc2   :  { %5842 = vmatmul.mubr.msk.bf16.gmra.mrb[116].mxu1 %vm270_vm1, %v4895_v29  ;;  %vm9218_vm1 = vmmov %vm9206_vm0 }
 0xdc3   :  { %vm9230_vm0 = vmmov %vm9227_vm3 }
 0xdc4   :  { %vm9231_vm2 = vmmov %vm9230_vm0 }
 0xdc5   :  { %vm9232_vm6 = vmmov %vm9230_vm0 }
 0xdc6   :  { %vm9233_vm7 = vmmov %vm9230_vm0 }
 0xe86   :  { %v5839_v21 = vpop.f32.mrb[112].mxu1 }
 0xe87   :  { %4997 = vrot.lane.b32.xlu1 %v5839_v21, %s6548_s10  ;;  %v4954_v55 = vpop.f32.mrb[113].mxu1 }
 0xe88   :  { %v5840_v48 = vpop.f32.mrb[114].mxu1 }
 0xe89   :  { %4999 = vrot.lane.b32.xlu0 %v5840_v48, %s6548_s10  ;;  %v4957_v27 = vpop.f32.mrb[115].mxu1 }
 0xe8b   :  { %4993 = vrot.lane.b32.xlu1 %v4954_v55, %s6548_s10 }
 0xe8d   :  { %4995 = vrot.lane.b32.xlu0 %v4957_v27, %s6548_s10 }
 0xe95   :  { %v5843_v32 = vpop.f32.mrb[116].mxu1 }
 0xe96   :  { %5005 = vrot.lane.b32.xlu1 %v5843_v32, %s6548_s10  ;;  %v4970_v58 = vpop.f32.mrb[117].mxu1 }
 0xe97   :  { %v5844_v18 = vpop.f32.mrb[118].mxu1 }
 0xe98   :  { %v4973_v0 = vpop.f32.mrb[119].mxu1 }
 0xe99   :  { %5003 = vrot.lane.b32.xlu0 %v4973_v0, %s6548_s10 }
 0xe9a   :  { %5001 = vrot.lane.b32.xlu1 %v4970_v58, %s6548_s10 }
 0xe9d   :  { %5007 = vrot.lane.b32.xlu0 %v5844_v18, %s6548_s10 }
 0xe9e   :  { %5030 = vrot.lane.b32.xlu1 %v5028_v57, %s6548_s10  ;;  %s5070_s10 = sshll.u32 %s6553_s1, 4  ;;  %s8746_s10 = int_to_ptr.vmem [resolvable:$true] %s5070_s10 }
 0xe9f   :  { %s6523_s17 = scalar_lea.vmem %s8746_s10, 1024  ;;  %p6528_p1 = scmp.lt.s32.totalorder %s8746_s10, %s8746_s10 }
 0xea0   :  { %p6524_p0 = scmp.ne.s32.totalorder %s8746_s10, %s6523_s17  ;;  %p6529_p2 = scmp.lt.s32.totalorder %s6523_s17, %s6523_s17 }
 0xea2   :  { %p6530_p3 = por %p6529_p2, %p6528_p1 }
 0xea4   :  { %p6531_p4 = pnand %p6530_p3, %p6524_p0 }
 0xef9   :  { %v4998_v7 = vpop.permute.xlu1 %4997 }
 0xefa   :  { %v5019_v56 = vadd.f32 %v8615_v16, %v4998_v7 }
 0xefb   :  { %v5000_v19 = vpop.permute.xlu0 %4999 }
 0xefc   :  { %v5020_v20 = vadd.f32 %v8620_v6, %v5000_v19 }
 0xefd   :  { %v4994_v5 = vpop.permute.xlu1 %4993 }
 0xefe   :  { %v5017_v10 = vadd.f32 %v8602_v30, %v4994_v5 }
 0xeff   :  { %v4996_v60 = vpop.permute.xlu0 %4995 }
 0xf00   :  { %v5018_v45 = vadd.f32 %v8607_v46, %v4996_v60 }
 0xf08   :  { %v5006_v52 = vpop.permute.xlu1 %5005 }
 0xf09   :  { %v5023_v2 = vadd.f32 %v8641_v33, %v5006_v52 }
 0xf0b   :  { %v5004_v59 = vpop.permute.xlu0 %5003 }
 0xf0c   :  { %v5002_v4 = vpop.permute.xlu1 %5001  ;;  %v5022_v14 = vadd.f32 %v8633_v3, %v5004_v59 }
 0xf0d   :  { %v5021_v40 = vadd.f32 %v8628_v53, %v5002_v4 }
 0xf0f   :  { %v5008_v22 = vpop.permute.xlu0 %5007 }
 0xf10   :  { %v5024_v36 = vadd.f32 %v8646_v25, %v5008_v22  ;;  %v5031_v31 = vpop.permute.xlu1 %5030 }
 0xf11   :  { %v5033_v63 = vadd.f32 %v5031_v31, %v5017_v10  ;;  %v5034_v16 = vadd.f32 %v5031_v31, %v5018_v45  ;;  %v5035_v28 = vadd.f32 %v5031_v31, %v5019_v56  ;;  %v5036_v6 = vadd.f32 %v5031_v31, %v5020_v20 }
 0xf12   :  { %v5037_v50 = vadd.f32 %v5031_v31, %v5021_v40  ;;  %v5038_v30 = vadd.f32 %v5031_v31, %v5022_v14  ;;  %v5039_v54 = vadd.f32 %v5031_v31, %v5023_v2  ;;  %v5040_v46 = vadd.f32 %v5031_v31, %v5024_v36 }
 0xf13   :  { %v5049_v41 = vsel %vm9218_vm1, %v5041_v11, %v5033_v63  ;;  %v5050_v33 = vsel %vm9219_vm8, %v5042_v26, %v5034_v16  ;;  %v5051_v3 = vsel %vm9220_vm9, %v5043_v51, %v5035_v28  ;;  %v5052_v53 = vsel %vm9221_vm10, %v5044_v17, %v5036_v6 }
 0xf14   :  { %v5053_v25 = vsel %vm9222_vm11, %v5045_v8, %v5037_v50  ;;  %v5054_v47 = vsel %vm9223_vm12, %v5046_v1, %v5038_v30  ;;  %v5055_v9 = vsel %vm9224_vm13, %v5047_v43, %v5039_v54  ;;  %v5056_v24 = vsel %vm9225_vm14, %v5048_v42, %v5040_v46  ;;  %5057 = vst.msk [vmem:[#allocation2] sm:$0xff] %vm9226_vm15, %v5049_v41 }
 0xf15   :  { %5058 = vst.msk [vmem:[#allocation2 + $0x8] sm:$0xff] %vm9227_vm3, %v5050_v33 }
 0xf16   :  { %5059 = vst.msk [vmem:[#allocation2 + $0x10] sm:$0xff] %vm9228_vm4, %v5051_v3 }
 0xf17   :  { %5060 = vst.msk [vmem:[#allocation2 + $0x18] sm:$0xff] %vm9229_vm5, %v5052_v53 }
 0xf18   :  { %5061 = vst.msk [vmem:[#allocation2 + $0x20] sm:$0xff] %vm9230_vm0, %v5053_v25 }
 0xf19   :  { %5062 = vst.msk [vmem:[#allocation2 + $0x28] sm:$0xff] %vm9231_vm2, %v5054_v47 }
 0xf1a   :  { %5063 = vst.msk [vmem:[#allocation2 + $0x30] sm:$0xff] %vm9232_vm6, %v5055_v9 }
 0xf1b   :  { %5064 = vst.msk [vmem:[#allocation2 + $0x38] sm:$0xff] %vm9233_vm7, %v5056_v24 }
 0xf1c   :  { %6534 = shalt.err (!%p6531_p4)
}
 0xf1d   :  { %s6535_s20 = scalar_lea.hbm %s8781_s4, 1024 }
 0xf1e   :  { %p6536_p5 = scmp.ne.s32.totalorder %s8781_s4, %s6535_s20  ;;  %p6539_p6 = scmp.lt.u32.totalorder %s6535_s20, %s8781_s4 }
 0xf20   :  { %p6541_p7 = pnand %p6539_p6, %p6536_p5 }
 0xf22   :  { %6544 = shalt.err (!%p6541_p7)
}
 0xf23   :  { %s6554_s23 = smov 128   ;;  %s6555_s24 = smov 8  }
 0xf24   :  { %5076 = dma.vmem_to_hbm [thread:$0]  %s8746_s10, 1024, %s8781_s4, [#allocation3], %s6554_s23, %s6554_s23, %s6555_s24  }
 0xf25   :  { %6545 = dma.done.wait [#allocation3], 1024  }
 0xf26   :  { %6546 = vsyncadd [#allocation3], 4294966272 }
 0xf27   :  { %5080 = vsyncpa [#allocation3], 1 }

</bundles_post_ra>
